<compile_context>
chip_gen: v5e
topology: v5e:2x2
jax: 0.10.0
libtpu: 0.0.40
codegen_flags: <defaults>
</compile_context>

<pallas_src>
import functools

import jax
import jax.numpy as jnp
from jax.experimental import pallas as pl
from jax.experimental.pallas import tpu as pltpu

_EPS = 1e-5
_SLOPE = 0.1
_LANE = 128

_CPARAMS = pltpu.CompilerParams(dimension_semantics=("parallel",),
                                vmem_limit_bytes=32 * 1024 * 1024)


def _lrelu(x):
    return jnp.where(x >= 0, x, _SLOPE * x)


# ------------------------------ Pallas kernels ------------------------------ #

def _make_conv1_kernel(offsets, m_out, pre_act, cdt):
    """3x3 stride-1 'same' conv fused with bn1+lrelu on the input side and
    (bn2 folded into weights/bias) + lrelu on the output side."""

    def kernel(x_ref, s1_ref, b1_ref, mask_ref, w_ref, bias_ref, o_ref,
               act_ref, acc_ref):
        x = x_ref[...].astype(jnp.float32)
        if pre_act:
            # bn1 + leaky-relu, then re-zero the spatial halo (conv padding).
            a = _lrelu(x * s1_ref[...] + b1_ref[...]) * mask_ref[...]
        else:
            a = x                       # conv1 of the raw input (halo already 0)
        act_ref[...] = a                # f32 staging buffer in VMEM
        for t, off in enumerate(offsets):
            contrib = jnp.dot(act_ref[pl.ds(off, m_out), :].astype(cdt),
                              w_ref[t], preferred_element_type=jnp.float32)
            if t == 0:
                acc_ref[...] = contrib
            else:
                acc_ref[...] += contrib
        y = acc_ref[...] + bias_ref[...]          # bias = conv1_b*s2 + shift2
        o_ref[...] = _lrelu(y).astype(o_ref.dtype)

    return kernel


def _make_conv2_kernel(offsets, m_out, pre_act_shortcut, cdt):
    """3x3 stride-1 'same' conv fused with the shortcut branch (1x1 conv or
    identity, optional bn1+lrelu pre-activation) and the residual add."""

    def kernel(h_ref, w_ref, b2_ref, xs_ref, s1_ref, b1_ref, ws_ref, bs_ref,
               o_ref, h32_ref, acc_ref):
        # Stage the (possibly bf16) conv2 input as f32 so the 9 shifted tap
        # slices below are plain f32 sublane slices.
        h32_ref[...] = h_ref[...].astype(jnp.float32)

        xs = xs_ref[...]
        if pre_act_shortcut:
            xs = _lrelu(xs * s1_ref[...] + b1_ref[...])
        acc_ref[...] = (jnp.dot(xs.astype(cdt), ws_ref[...],
                                preferred_element_type=jnp.float32)
                        + bs_ref[...] + b2_ref[...])
        for t, off in enumerate(offsets):
            acc_ref[...] += jnp.dot(h32_ref[pl.ds(off, m_out), :].astype(cdt),
                                    w_ref[t], preferred_element_type=jnp.float32)
        o_ref[...] = acc_ref[...].astype(o_ref.dtype)

    return kernel


# --------------------------- pallas_call wrappers --------------------------- #

def _conv1_call(x_pf, s1, b1, mask, w1, bias1, H, W, pre_act, cdt):
    N, m_in, cp_in = x_pf.shape
    cp_out = w1.shape[2]
    m_out = H * (W + 2)
    offsets = [kh * (W + 2) + kw for kh in range(3) for kw in range(3)]
    return pl.pallas_call(
        _make_conv1_kernel(offsets, m_out, pre_act, cdt),
        out_shape=jax.ShapeDtypeStruct((N, m_out, cp_out), cdt),
        grid=(N,),
        in_specs=[
            pl.BlockSpec((None, m_in, cp_in), lambda n: (n, 0, 0)),
            pl.BlockSpec((1, cp_in), lambda n: (0, 0)),
            pl.BlockSpec((1, cp_in), lambda n: (0, 0)),
            pl.BlockSpec((m_in, 1), lambda n: (0, 0)),
            pl.BlockSpec((9, cp_in, cp_out), lambda n: (0, 0, 0)),
            pl.BlockSpec((1, cp_out), lambda n: (0, 0)),
        ],
        out_specs=pl.BlockSpec((None, m_out, cp_out), lambda n: (n, 0, 0)),
        scratch_shapes=[pltpu.VMEM((m_in, cp_in), jnp.float32),
                        pltpu.VMEM((m_out, cp_out), jnp.float32)],
        compiler_params=_CPARAMS,
    )(x_pf, s1, b1, mask, w1, bias1)


def _conv2_call(h_pf, w2, b2, xs_pf, s1, b1, ws, bs, Ho, Wo,
                pre_act_shortcut, cdt):
    N, m_in, cp = h_pf.shape
    cp_in = xs_pf.shape[2]
    cp_out = w2.shape[2]
    m_out = Ho * (Wo + 2)
    offsets = [kh * (Wo + 2) + kw for kh in range(3) for kw in range(3)]
    return pl.pallas_call(
        _make_conv2_kernel(offsets, m_out, pre_act_shortcut, cdt),
        out_shape=jax.ShapeDtypeStruct((N, m_out, cp_out), jnp.float32),
        grid=(N,),
        in_specs=[
            pl.BlockSpec((None, m_in, cp), lambda n: (n, 0, 0)),
            pl.BlockSpec((9, cp, cp_out), lambda n: (0, 0, 0)),
            pl.BlockSpec((1, cp_out), lambda n: (0, 0)),
            pl.BlockSpec((None, m_out, cp_in), lambda n: (n, 0, 0)),
            pl.BlockSpec((1, cp_in), lambda n: (0, 0)),
            pl.BlockSpec((1, cp_in), lambda n: (0, 0)),
            pl.BlockSpec((cp_in, cp_out), lambda n: (0, 0)),
            pl.BlockSpec((1, cp_out), lambda n: (0, 0)),
        ],
        out_specs=pl.BlockSpec((None, m_out, cp_out), lambda n: (n, 0, 0)),
        scratch_shapes=[pltpu.VMEM((m_in, cp), jnp.float32),
                        pltpu.VMEM((m_out, cp_out), jnp.float32)],
        compiler_params=_CPARAMS,
    )(h_pf, w2, b2, xs_pf, s1, b1, ws, bs)


# ------------------------------ JAX glue ------------------------------------ #

def _round_up(v, m):
    return (v + m - 1) // m * m


def _pad_last(a, target):
    pad = target - a.shape[-1]
    return a if pad == 0 else jnp.pad(a, [(0, 0)] * (a.ndim - 1) + [(0, pad)])


@functools.partial(jax.jit,
                   static_argnames=("stride", "activate_before_residual",
                                    "compute_dtype"))
def basic_block_forward(x_nchw, p, *, stride, activate_before_residual,
                        compute_dtype=jnp.bfloat16):
    """Pallas implementation of BasicBlock.forward (eval-mode BN, drop_rate=0)."""
    cdt = jnp.dtype(compute_dtype)
    out_planes, in_planes = p["conv1_w"].shape[0], p["conv1_w"].shape[1]
    equal = in_planes == out_planes
    N, _, H, W = x_nchw.shape
    cp_in = _round_up(in_planes, _LANE)
    cp_out = _round_up(out_planes, _LANE)

    # NHWC, channel-padded to the lane width -> lane-dense matmuls & stores.
    x = _pad_last(jnp.transpose(x_nchw, (0, 2, 3, 1)).astype(jnp.float32), cp_in)

    # Folded BN parameters.
    s1 = p["bn1_gamma"] / jnp.sqrt(p["bn1_var"] + _EPS)
    b1 = p["bn1_beta"] - p["bn1_mean"] * s1
    s2 = p["bn2_gamma"] / jnp.sqrt(p["bn2_var"] + _EPS)
    sh2 = p["bn2_beta"] - p["bn2_mean"] * s2
    s1p = _pad_last(s1[None, :], cp_in)
    b1p = _pad_last(b1[None, :], cp_in)

    # conv1 weights as 9 (Cin, Cout) taps with the bn2 scale folded in.
    w1 = jnp.transpose(p["conv1_w"], (2, 3, 1, 0)).reshape(9, in_planes, out_planes)
    w1 = w1 * s2[None, None, :]
    w1 = jnp.pad(w1, ((0, 0), (0, cp_in - in_planes),
                      (0, cp_out - out_planes))).astype(cdt)
    bias1 = _pad_last((p["conv1_b"] * s2 + sh2)[None, :], cp_out)

    # Spatially padded + flattened conv1 input, and the interior mask that
    # restores zero padding after the in-kernel bn1+lrelu.
    x_sp = jnp.pad(x, ((0, 0), (1, 2), (1, 1), (0, 0)))      # (N, H+3, W+2, Cp)
    x_pf = x_sp.reshape(N, (H + 3) * (W + 2), cp_in)
    row = jnp.arange(H + 3)[:, None]
    col = jnp.arange(W + 2)[None, :]
    mask = ((row >= 1) & (row <= H) & (col >= 1) & (col <= W))
    mask = mask.astype(jnp.float32).reshape((H + 3) * (W + 2), 1)

    # conv1 reads the activated tensor unless (not equal and not abr).
    pre_act = equal or activate_before_residual
    h_pf = _conv1_call(x_pf, s1p, b1p, mask, w1, bias1, H, W, pre_act, cdt)

    # Strip the 2 junk columns of the flattened layout and apply conv1's stride
    # by subsampling (exact for a 3x3 / pad-1 conv).
    # TODO(synk): strided in-kernel taps would avoid the extra stride>1 FLOPs.
    h = h_pf.reshape(N, H, W + 2, cp_out)[:, :, :W, :]
    if stride > 1:
        h = h[:, ::stride, ::stride, :]
    Ho, Wo = h.shape[1], h.shape[2]

    # TODO(synk): F.dropout (drop_rate > 0, training mode) not implemented.

    # conv2 input: spatial pad + flatten (already post-activation -> zero pad
    # is exact, no mask needed).
    h_pf2 = jnp.pad(h, ((0, 0), (1, 2), (1, 1), (0, 0))).reshape(
        N, (Ho + 3) * (Wo + 2), cp_out).astype(cdt)

    w2 = jnp.transpose(p["conv2_w"], (2, 3, 1, 0)).reshape(9, out_planes, out_planes)
    w2 = jnp.pad(w2, ((0, 0), (0, cp_out - out_planes),
                      (0, cp_out - out_planes))).astype(cdt)
    b2 = _pad_last(p["conv2_b"][None, :], cp_out)

    # Shortcut input: raw x subsampled, laid out like the (Ho, Wo+2) output.
    # (Also handles the degenerate equal-channels + stride>1 case gracefully.)
    xs = x[:, ::stride, ::stride, :][:, :Ho, :Wo, :]
    xs_pf = jnp.pad(xs, ((0, 0), (0, 0), (0, 2), (0, 0))).reshape(
        N, Ho * (Wo + 2), cp_in)

    if equal:
        ws = jnp.eye(cp_in, cp_out, dtype=jnp.float32).astype(cdt)   # identity
        bs = jnp.zeros((1, cp_out), jnp.float32)
        pre_act_shortcut = False
    else:
        ws = jnp.pad(p["convs_w"][:, :, 0, 0].T,
                     ((0, cp_in - in_planes), (0, cp_out - out_planes))).astype(cdt)
        bs = _pad_last(p["convs_b"][None, :], cp_out)
        pre_act_shortcut = activate_before_residual

    out_pf = _conv2_call(h_pf2, w2, b2, xs_pf, s1p, b1p, ws, bs,
                         Ho, Wo, pre_act_shortcut, cdt)
    out = out_pf.reshape(N, Ho, Wo + 2, cp_out)[:, :, :Wo, :out_planes]
    return jnp.transpose(out, (0, 3, 1, 2))        # back to NCHW


# --------------------------- pure-JAX reference ------------------------------ #

def _ref_forward(x, p, *, stride, activate_before_residual):
    out_planes, in_planes = p["conv1_w"].shape[0], p["conv1_w"].shape[1]
    equal = in_planes == out_planes

    def bn(v, g, b, m, var):
        return ((v - m[None, :, None, None])
                / jnp.sqrt(var[None, :, None, None] + _EPS)
                * g[None, :, None, None] + b[None, :, None, None])

    def conv(v, w, b, s, pad):
        y = jax.lax.conv_general_dilated(
            v, w, (s, s), [(pad, pad), (pad, pad)],
            dimension_numbers=("NCHW", "OIHW", "NCHW"))
        return y + b[None, :, None, None]

    act = _lrelu(bn(x, p["bn1_gamma"], p["bn1_beta"], p["bn1_mean"], p["bn1_var"]))
    if not equal and activate_before_residual:
        x = act
    conv1_in = act if equal else x
    h = _lrelu(bn(conv(conv1_in, p["conv1_w"], p["conv1_b"], stride, 1),
                  p["bn2_gamma"], p["bn2_beta"], p["bn2_mean"], p["bn2_var"]))
    out = conv(h, p["conv2_w"], p["conv2_b"], 1, 1)
    shortcut = x if equal else conv(x, p["convs_w"], p["convs_b"], stride, 0)
    return shortcut + out


# ----------------------------------- main ------------------------------------ #

def _make_params(key, in_planes, out_planes):
    ks = jax.random.split(key, 16)
    p = {
        "bn1_gamma": jax.random.uniform(ks[0], (in_planes,), minval=0.5, maxval=1.5),
        "bn1_beta": 0.1 * jax.random.normal(ks[1], (in_planes,)),
        "bn1_mean": 0.1 * jax.random.normal(ks[2], (in_planes,)),
        "bn1_var": jax.random.uniform(ks[3], (in_planes,), minval=0.5, maxval=1.5),
        "conv1_w": 0.1 * jax.random.normal(ks[4], (out_planes, in_planes, 3, 3)),
        "conv1_b": 0.1 * jax.random.normal(ks[5], (out_planes,)),
        "bn2_gamma": jax.random.uniform(ks[6], (out_planes,), minval=0.5, maxval=1.5),
        "bn2_beta": 0.1 * jax.random.normal(ks[7], (out_planes,)),
        "bn2_mean": 0.1 * jax.random.normal(ks[8], (out_planes,)),
        "bn2_var": jax.random.uniform(ks[9], (out_planes,), minval=0.5, maxval=1.5),
        "conv2_w": 0.1 * jax.random.normal(ks[10], (out_planes, out_planes, 3, 3)),
        "conv2_b": 0.1 * jax.random.normal(ks[11], (out_planes,)),
    }
    if in_planes != out_planes:
        p["convs_w"] = 0.1 * jax.random.normal(ks[12], (out_planes, in_planes, 1, 1))
        p["convs_b"] = 0.1 * jax.random.normal(ks[13], (out_planes,))
    return {k: v.astype(jnp.float32) for k, v in p.items()}


if __name__ == "__main__":
    key = jax.random.PRNGKey(0)
    kx, kp1, kp2, kp3 = jax.random.split(key, 4)

    N, H, W = 2, 16, 16
    x = jax.random.normal(kx, (N, 4, H, W), dtype=jnp.float32)   # NCHW like PyTorch

    configs = [
        ("A 4->8 s2 abr", _make_params(kp1, 4, 8), 2, True),
        ("B 4->4 s1 identity", _make_params(kp2, 4, 4), 1, False),
        ("C 4->8 s1 no-abr", _make_params(kp3, 4, 8), 1, False),
    ]

    # Exact-path check (f32 matmul operands).
    for name, p, stride, abr in configs:
        ref = _ref_forward(x, p, stride=stride, activate_before_residual=abr)
        out = basic_block_forward(x, p, stride=stride,
                                  activate_before_residual=abr,
                                  compute_dtype=jnp.float32)
        out = jax.block_until_ready(out)
        assert out.shape == ref.shape, (name, out.shape, ref.shape)
        err = float(jnp.max(jnp.abs(out - ref)))
        assert err < 5e-4, (name, "f32", err)

    # Fast path (bf16 matmul operands, f32 accumulation + f32 epilogues).
    name, p, stride, abr = configs[0]
    ref = _ref_forward(x, p, stride=stride, activate_before_residual=abr)
    out = basic_block_forward(x, p, stride=stride, activate_before_residual=abr,
                              compute_dtype=jnp.bfloat16)
    out = jax.block_until_ready(out)
    err = float(jnp.max(jnp.abs(out - ref)))
    assert err < 2e-1, (name, "bf16", err)

    print("KERNEL_OK")
</pallas_src>

<mosaic_0001>
module attributes {stable_mosaic.version = 11 : i64} {
  func.func @kernel(%arg0: i32, %arg1: memref<1x342x128xf32, #tpu.memory_space<vmem>>, %arg2: memref<1x128xf32, #tpu.memory_space<vmem>>, %arg3: memref<1x128xf32, #tpu.memory_space<vmem>>, %arg4: memref<342x1xf32, #tpu.memory_space<vmem>>, %arg5: memref<9x128x128xf32, #tpu.memory_space<vmem>>, %arg6: memref<1x128xf32, #tpu.memory_space<vmem>>, %arg7: memref<1x288x128xf32, #tpu.memory_space<vmem>>, %arg8: memref<342x128xf32, #tpu.memory_space<vmem>>, %arg9: memref<288x128xf32, #tpu.memory_space<vmem>>) attributes {dimension_semantics = [#tpu.dimension_semantics<parallel>], iteration_bounds = array<i64: 2>, scalar_prefetch = 0 : i64, scratch_operands = 2 : i64, tpu.core_type = #tpu.core_type<tc>, window_params = [{transform_indices = @transform_0, window_bounds = array<i64: 1, 342, 128>}, {pipeline_mode = #tpu.pipeline_mode<synchronous>, transform_indices = @transform_1, window_bounds = array<i64: 1, 128>}, {pipeline_mode = #tpu.pipeline_mode<synchronous>, transform_indices = @transform_2, window_bounds = array<i64: 1, 128>}, {pipeline_mode = #tpu.pipeline_mode<synchronous>, transform_indices = @transform_3, window_bounds = array<i64: 342, 1>}, {pipeline_mode = #tpu.pipeline_mode<synchronous>, transform_indices = @transform_4, window_bounds = array<i64: 9, 128, 128>}, {pipeline_mode = #tpu.pipeline_mode<synchronous>, transform_indices = @transform_5, window_bounds = array<i64: 1, 128>}, {transform_indices = @transform_6, window_bounds = array<i64: 1, 288, 128>}]} {
    %c0 = arith.constant 0 : index
    %c0_0 = arith.constant 0 : index
    %c0_1 = arith.constant 0 : index
    %0 = vector.load %arg1[%c0, %c0_0, %c0_1] : memref<1x342x128xf32, #tpu.memory_space<vmem>>, vector<1x342x128xf32>
    %1 = vector.shape_cast %0 : vector<1x342x128xf32> to vector<342x128xf32>
    %c0_2 = arith.constant 0 : index
    %c0_3 = arith.constant 0 : index
    %2 = vector.load %arg2[%c0_2, %c0_3] : memref<1x128xf32, #tpu.memory_space<vmem>>, vector<1x128xf32>
    %3 = vector.broadcast %2 : vector<1x128xf32> to vector<342x128xf32>
    %4 = arith.mulf %1, %3 : vector<342x128xf32>
    %c0_4 = arith.constant 0 : index
    %c0_5 = arith.constant 0 : index
    %5 = vector.load %arg3[%c0_4, %c0_5] : memref<1x128xf32, #tpu.memory_space<vmem>>, vector<1x128xf32>
    %6 = vector.broadcast %5 : vector<1x128xf32> to vector<342x128xf32>
    %7 = arith.addf %4, %6 : vector<342x128xf32>
    %cst = arith.constant 0.000000e+00 : f32
    %8 = vector.broadcast %cst : f32 to vector<342x128xf32>
    %9 = arith.cmpf oge, %7, %8 : vector<342x128xf32>
    %cst_6 = arith.constant 1.000000e-01 : f32
    %10 = vector.broadcast %cst_6 : f32 to vector<342x128xf32>
    %11 = arith.mulf %10, %7 : vector<342x128xf32>
    %12 = arith.select %9, %7, %11 : vector<342x128xi1>, vector<342x128xf32>
    %c0_7 = arith.constant 0 : index
    %c0_8 = arith.constant 0 : index
    %13 = vector.load %arg4[%c0_7, %c0_8] : memref<342x1xf32, #tpu.memory_space<vmem>>, vector<342x1xf32>
    %14 = vector.broadcast %13 : vector<342x1xf32> to vector<342x128xf32>
    %15 = arith.mulf %12, %14 : vector<342x128xf32>
    %c0_9 = arith.constant 0 : index
    %c0_10 = arith.constant 0 : index
    %16 = vector.load %arg8[%c0_9, %c0_10] : memref<342x128xf32, #tpu.memory_space<vmem>>, vector<342x128xf32>
    tpu.vector_store %arg8[%c0_9, %c0_10], %15 {strides = array<i32>} : memref<342x128xf32, #tpu.memory_space<vmem>>, vector<342x128xf32>,
    %c0_11 = arith.constant 0 : index
    %c0_12 = arith.constant 0 : index
    %17 = vector.load %arg8[%c0_11, %c0_12] : memref<342x128xf32, #tpu.memory_space<vmem>>, vector<288x128xf32>
    %c0_13 = arith.constant 0 : index
    %c0_14 = arith.constant 0 : index
    %c0_15 = arith.constant 0 : index
    %18 = vector.load %arg5[%c0_13, %c0_14, %c0_15] : memref<9x128x128xf32, #tpu.memory_space<vmem>>, vector<1x128x128xf32>
    %19 = vector.shape_cast %18 : vector<1x128x128xf32> to vector<128x128xf32>
    %cst_16 = arith.constant dense<0.000000e+00> : vector<288x128xf32>
    %20 = tpu.matmul %17, %19, %cst_16 {dimension_numbers = #tpu.dot_dimension_numbers<[1], [0], [0], [1], [0, 0, 1, 1], [], []>} : vector<288x128xf32>, vector<128x128xf32>, vector<288x128xf32> -> vector<288x128xf32>
    %c0_17 = arith.constant 0 : index
    %c0_18 = arith.constant 0 : index
    %21 = vector.load %arg9[%c0_17, %c0_18] : memref<288x128xf32, #tpu.memory_space<vmem>>, vector<288x128xf32>
    tpu.vector_store %arg9[%c0_17, %c0_18], %20 {strides = array<i32>} : memref<288x128xf32, #tpu.memory_space<vmem>>, vector<288x128xf32>,
    %c1 = arith.constant 1 : index
    %c0_19 = arith.constant 0 : index
    %22 = vector.load %arg8[%c1, %c0_19] : memref<342x128xf32, #tpu.memory_space<vmem>>, vector<288x128xf32>
    %c1_20 = arith.constant 1 : index
    %c0_21 = arith.constant 0 : index
    %c0_22 = arith.constant 0 : index
    %23 = vector.load %arg5[%c1_20, %c0_21, %c0_22] : memref<9x128x128xf32, #tpu.memory_space<vmem>>, vector<1x128x128xf32>
    %24 = vector.shape_cast %23 : vector<1x128x128xf32> to vector<128x128xf32>
    %cst_23 = arith.constant dense<0.000000e+00> : vector<288x128xf32>
    %25 = tpu.matmul %22, %24, %cst_23 {dimension_numbers = #tpu.dot_dimension_numbers<[1], [0], [0], [1], [0, 0, 1, 1], [], []>} : vector<288x128xf32>, vector<128x128xf32>, vector<288x128xf32> -> vector<288x128xf32>
    %c0_24 = arith.constant 0 : index
    %c0_25 = arith.constant 0 : index
    %26 = vector.load %arg9[%c0_24, %c0_25] : memref<288x128xf32, #tpu.memory_space<vmem>>, vector<288x128xf32>
    %27 = arith.addf %26, %25 : vector<288x128xf32>
    %c0_26 = arith.constant 0 : index
    %c0_27 = arith.constant 0 : index
    %28 = vector.load %arg9[%c0_26, %c0_27] : memref<288x128xf32, #tpu.memory_space<vmem>>, vector<288x128xf32>
    tpu.vector_store %arg9[%c0_26, %c0_27], %27 {strides = array<i32>} : memref<288x128xf32, #tpu.memory_space<vmem>>, vector<288x128xf32>,
    %c2 = arith.constant 2 : index
    %c0_28 = arith.constant 0 : index
    %29 = vector.load %arg8[%c2, %c0_28] : memref<342x128xf32, #tpu.memory_space<vmem>>, vector<288x128xf32>
    %c2_29 = arith.constant 2 : index
    %c0_30 = arith.constant 0 : index
    %c0_31 = arith.constant 0 : index
    %30 = vector.load %arg5[%c2_29, %c0_30, %c0_31] : memref<9x128x128xf32, #tpu.memory_space<vmem>>, vector<1x128x128xf32>
    %31 = vector.shape_cast %30 : vector<1x128x128xf32> to vector<128x128xf32>
    %cst_32 = arith.constant dense<0.000000e+00> : vector<288x128xf32>
    %32 = tpu.matmul %29, %31, %cst_32 {dimension_numbers = #tpu.dot_dimension_numbers<[1], [0], [0], [1], [0, 0, 1, 1], [], []>} : vector<288x128xf32>, vector<128x128xf32>, vector<288x128xf32> -> vector<288x128xf32>
    %c0_33 = arith.constant 0 : index
    %c0_34 = arith.constant 0 : index
    %33 = vector.load %arg9[%c0_33, %c0_34] : memref<288x128xf32, #tpu.memory_space<vmem>>, vector<288x128xf32>
    %34 = arith.addf %33, %32 : vector<288x128xf32>
    %c0_35 = arith.constant 0 : index
    %c0_36 = arith.constant 0 : index
    %35 = vector.load %arg9[%c0_35, %c0_36] : memref<288x128xf32, #tpu.memory_space<vmem>>, vector<288x128xf32>
    tpu.vector_store %arg9[%c0_35, %c0_36], %34 {strides = array<i32>} : memref<288x128xf32, #tpu.memory_space<vmem>>, vector<288x128xf32>,
    %c18 = arith.constant 18 : index
    %c0_37 = arith.constant 0 : index
    %36 = vector.load %arg8[%c18, %c0_37] : memref<342x128xf32, #tpu.memory_space<vmem>>, vector<288x128xf32>
    %c3 = arith.constant 3 : index
    %c0_38 = arith.constant 0 : index
    %c0_39 = arith.constant 0 : index
    %37 = vector.load %arg5[%c3, %c0_38, %c0_39] : memref<9x128x128xf32, #tpu.memory_space<vmem>>, vector<1x128x128xf32>
    %38 = vector.shape_cast %37 : vector<1x128x128xf32> to vector<128x128xf32>
    %cst_40 = arith.constant dense<0.000000e+00> : vector<288x128xf32>
    %39 = tpu.matmul %36, %38, %cst_40 {dimension_numbers = #tpu.dot_dimension_numbers<[1], [0], [0], [1], [0, 0, 1, 1], [], []>} : vector<288x128xf32>, vector<128x128xf32>, vector<288x128xf32> -> vector<288x128xf32>
    %c0_41 = arith.constant 0 : index
    %c0_42 = arith.constant 0 : index
    %40 = vector.load %arg9[%c0_41, %c0_42] : memref<288x128xf32, #tpu.memory_space<vmem>>, vector<288x128xf32>
    %41 = arith.addf %40, %39 : vector<288x128xf32>
    %c0_43 = arith.constant 0 : index
    %c0_44 = arith.constant 0 : index
    %42 = vector.load %arg9[%c0_43, %c0_44] : memref<288x128xf32, #tpu.memory_space<vmem>>, vector<288x128xf32>
    tpu.vector_store %arg9[%c0_43, %c0_44], %41 {strides = array<i32>} : memref<288x128xf32, #tpu.memory_space<vmem>>, vector<288x128xf32>,
    %c19 = arith.constant 19 : index
    %c0_45 = arith.constant 0 : index
    %43 = vector.load %arg8[%c19, %c0_45] : memref<342x128xf32, #tpu.memory_space<vmem>>, vector<288x128xf32>
    %c4 = arith.constant 4 : index
    %c0_46 = arith.constant 0 : index
    %c0_47 = arith.constant 0 : index
    %44 = vector.load %arg5[%c4, %c0_46, %c0_47] : memref<9x128x128xf32, #tpu.memory_space<vmem>>, vector<1x128x128xf32>
    %45 = vector.shape_cast %44 : vector<1x128x128xf32> to vector<128x128xf32>
    %cst_48 = arith.constant dense<0.000000e+00> : vector<288x128xf32>
    %46 = tpu.matmul %43, %45, %cst_48 {dimension_numbers = #tpu.dot_dimension_numbers<[1], [0], [0], [1], [0, 0, 1, 1], [], []>} : vector<288x128xf32>, vector<128x128xf32>, vector<288x128xf32> -> vector<288x128xf32>
    %c0_49 = arith.constant 0 : index
    %c0_50 = arith.constant 0 : index
    %47 = vector.load %arg9[%c0_49, %c0_50] : memref<288x128xf32, #tpu.memory_space<vmem>>, vector<288x128xf32>
    %48 = arith.addf %47, %46 : vector<288x128xf32>
    %c0_51 = arith.constant 0 : index
    %c0_52 = arith.constant 0 : index
    %49 = vector.load %arg9[%c0_51, %c0_52] : memref<288x128xf32, #tpu.memory_space<vmem>>, vector<288x128xf32>
    tpu.vector_store %arg9[%c0_51, %c0_52], %48 {strides = array<i32>} : memref<288x128xf32, #tpu.memory_space<vmem>>, vector<288x128xf32>,
    %c20 = arith.constant 20 : index
    %c0_53 = arith.constant 0 : index
    %50 = vector.load %arg8[%c20, %c0_53] : memref<342x128xf32, #tpu.memory_space<vmem>>, vector<288x128xf32>
    %c5 = arith.constant 5 : index
    %c0_54 = arith.constant 0 : index
    %c0_55 = arith.constant 0 : index
    %51 = vector.load %arg5[%c5, %c0_54, %c0_55] : memref<9x128x128xf32, #tpu.memory_space<vmem>>, vector<1x128x128xf32>
    %52 = vector.shape_cast %51 : vector<1x128x128xf32> to vector<128x128xf32>
    %cst_56 = arith.constant dense<0.000000e+00> : vector<288x128xf32>
    %53 = tpu.matmul %50, %52, %cst_56 {dimension_numbers = #tpu.dot_dimension_numbers<[1], [0], [0], [1], [0, 0, 1, 1], [], []>} : vector<288x128xf32>, vector<128x128xf32>, vector<288x128xf32> -> vector<288x128xf32>
    %c0_57 = arith.constant 0 : index
    %c0_58 = arith.constant 0 : index
    %54 = vector.load %arg9[%c0_57, %c0_58] : memref<288x128xf32, #tpu.memory_space<vmem>>, vector<288x128xf32>
    %55 = arith.addf %54, %53 : vector<288x128xf32>
    %c0_59 = arith.constant 0 : index
    %c0_60 = arith.constant 0 : index
    %56 = vector.load %arg9[%c0_59, %c0_60] : memref<288x128xf32, #tpu.memory_space<vmem>>, vector<288x128xf32>
    tpu.vector_store %arg9[%c0_59, %c0_60], %55 {strides = array<i32>} : memref<288x128xf32, #tpu.memory_space<vmem>>, vector<288x128xf32>,
    %c36 = arith.constant 36 : index
    %c0_61 = arith.constant 0 : index
    %57 = vector.load %arg8[%c36, %c0_61] : memref<342x128xf32, #tpu.memory_space<vmem>>, vector<288x128xf32>
    %c6 = arith.constant 6 : index
    %c0_62 = arith.constant 0 : index
    %c0_63 = arith.constant 0 : index
    %58 = vector.load %arg5[%c6, %c0_62, %c0_63] : memref<9x128x128xf32, #tpu.memory_space<vmem>>, vector<1x128x128xf32>
    %59 = vector.shape_cast %58 : vector<1x128x128xf32> to vector<128x128xf32>
    %cst_64 = arith.constant dense<0.000000e+00> : vector<288x128xf32>
    %60 = tpu.matmul %57, %59, %cst_64 {dimension_numbers = #tpu.dot_dimension_numbers<[1], [0], [0], [1], [0, 0, 1, 1], [], []>} : vector<288x128xf32>, vector<128x128xf32>, vector<288x128xf32> -> vector<288x128xf32>
    %c0_65 = arith.constant 0 : index
    %c0_66 = arith.constant 0 : index
    %61 = vector.load %arg9[%c0_65, %c0_66] : memref<288x128xf32, #tpu.memory_space<vmem>>, vector<288x128xf32>
    %62 = arith.addf %61, %60 : vector<288x128xf32>
    %c0_67 = arith.constant 0 : index
    %c0_68 = arith.constant 0 : index
    %63 = vector.load %arg9[%c0_67, %c0_68] : memref<288x128xf32, #tpu.memory_space<vmem>>, vector<288x128xf32>
    tpu.vector_store %arg9[%c0_67, %c0_68], %62 {strides = array<i32>} : memref<288x128xf32, #tpu.memory_space<vmem>>, vector<288x128xf32>,
    %c37 = arith.constant 37 : index
    %c0_69 = arith.constant 0 : index
    %64 = vector.load %arg8[%c37, %c0_69] : memref<342x128xf32, #tpu.memory_space<vmem>>, vector<288x128xf32>
    %c7 = arith.constant 7 : index
    %c0_70 = arith.constant 0 : index
    %c0_71 = arith.constant 0 : index
    %65 = vector.load %arg5[%c7, %c0_70, %c0_71] : memref<9x128x128xf32, #tpu.memory_space<vmem>>, vector<1x128x128xf32>
    %66 = vector.shape_cast %65 : vector<1x128x128xf32> to vector<128x128xf32>
    %cst_72 = arith.constant dense<0.000000e+00> : vector<288x128xf32>
    %67 = tpu.matmul %64, %66, %cst_72 {dimension_numbers = #tpu.dot_dimension_numbers<[1], [0], [0], [1], [0, 0, 1, 1], [], []>} : vector<288x128xf32>, vector<128x128xf32>, vector<288x128xf32> -> vector<288x128xf32>
    %c0_73 = arith.constant 0 : index
    %c0_74 = arith.constant 0 : index
    %68 = vector.load %arg9[%c0_73, %c0_74] : memref<288x128xf32, #tpu.memory_space<vmem>>, vector<288x128xf32>
    %69 = arith.addf %68, %67 : vector<288x128xf32>
    %c0_75 = arith.constant 0 : index
    %c0_76 = arith.constant 0 : index
    %70 = vector.load %arg9[%c0_75, %c0_76] : memref<288x128xf32, #tpu.memory_space<vmem>>, vector<288x128xf32>
    tpu.vector_store %arg9[%c0_75, %c0_76], %69 {strides = array<i32>} : memref<288x128xf32, #tpu.memory_space<vmem>>, vector<288x128xf32>,
    %c38 = arith.constant 38 : index
    %c0_77 = arith.constant 0 : index
    %71 = vector.load %arg8[%c38, %c0_77] : memref<342x128xf32, #tpu.memory_space<vmem>>, vector<288x128xf32>
    %c8 = arith.constant 8 : index
    %c0_78 = arith.constant 0 : index
    %c0_79 = arith.constant 0 : index
    %72 = vector.load %arg5[%c8, %c0_78, %c0_79] : memref<9x128x128xf32, #tpu.memory_space<vmem>>, vector<1x128x128xf32>
    %73 = vector.shape_cast %72 : vector<1x128x128xf32> to vector<128x128xf32>
    %cst_80 = arith.constant dense<0.000000e+00> : vector<288x128xf32>
    %74 = tpu.matmul %71, %73, %cst_80 {dimension_numbers = #tpu.dot_dimension_numbers<[1], [0], [0], [1], [0, 0, 1, 1], [], []>} : vector<288x128xf32>, vector<128x128xf32>, vector<288x128xf32> -> vector<288x128xf32>
    %c0_81 = arith.constant 0 : index
    %c0_82 = arith.constant 0 : index
    %75 = vector.load %arg9[%c0_81, %c0_82] : memref<288x128xf32, #tpu.memory_space<vmem>>, vector<288x128xf32>
    %76 = arith.addf %75, %74 : vector<288x128xf32>
    %c0_83 = arith.constant 0 : index
    %c0_84 = arith.constant 0 : index
    %77 = vector.load %arg9[%c0_83, %c0_84] : memref<288x128xf32, #tpu.memory_space<vmem>>, vector<288x128xf32>
    tpu.vector_store %arg9[%c0_83, %c0_84], %76 {strides = array<i32>} : memref<288x128xf32, #tpu.memory_space<vmem>>, vector<288x128xf32>,
    %c0_85 = arith.constant 0 : index
    %c0_86 = arith.constant 0 : index
    %78 = vector.load %arg9[%c0_85, %c0_86] : memref<288x128xf32, #tpu.memory_space<vmem>>, vector<288x128xf32>
    %c0_87 = arith.constant 0 : index
    %c0_88 = arith.constant 0 : index
    %79 = vector.load %arg6[%c0_87, %c0_88] : memref<1x128xf32, #tpu.memory_space<vmem>>, vector<1x128xf32>
    %80 = vector.broadcast %79 : vector<1x128xf32> to vector<288x128xf32>
    %81 = arith.addf %78, %80 : vector<288x128xf32>
    %cst_89 = arith.constant 0.000000e+00 : f32
    %82 = vector.broadcast %cst_89 : f32 to vector<288x128xf32>
    %83 = arith.cmpf oge, %81, %82 : vector<288x128xf32>
    %cst_90 = arith.constant 1.000000e-01 : f32
    %84 = vector.broadcast %cst_90 : f32 to vector<288x128xf32>
    %85 = arith.mulf %84, %81 : vector<288x128xf32>
    %86 = arith.select %83, %81, %85 : vector<288x128xi1>, vector<288x128xf32>
    %c0_91 = arith.constant 0 : index
    %c0_92 = arith.constant 0 : index
    %c0_93 = arith.constant 0 : index
    %87 = vector.load %arg7[%c0_91, %c0_92, %c0_93] : memref<1x288x128xf32, #tpu.memory_space<vmem>>, vector<1x288x128xf32>
    %88 = vector.shape_cast %87 : vector<1x288x128xf32> to vector<288x128xf32>
    %89 = vector.shape_cast %86 : vector<288x128xf32> to vector<1x288x128xf32>
    tpu.vector_store %arg7[%c0_91, %c0_92, %c0_93], %89 {strides = array<i32>} : memref<1x288x128xf32, #tpu.memory_space<vmem>>, vector<1x288x128xf32>,
    return
  }
  func.func @transform_0(%arg0: i32) -> (i32, i32, i32) {
    %c0_i32 = arith.constant 0 : i32
    %c0_i32_0 = arith.constant 0 : i32
    %c0_i32_1 = arith.constant 0 : i32
    return %arg0, %c0_i32, %c0_i32_0 : i32, i32, i32
  }
  func.func @transform_1(%arg0: i32) -> (i32, i32) {
    %c0_i32 = arith.constant 0 : i32
    %c0_i32_0 = arith.constant 0 : i32
    %c0_i32_1 = arith.constant 0 : i32
    return %c0_i32, %c0_i32_0 : i32, i32
  }
  func.func @transform_2(%arg0: i32) -> (i32, i32) {
    %c0_i32 = arith.constant 0 : i32
    %c0_i32_0 = arith.constant 0 : i32
    %c0_i32_1 = arith.constant 0 : i32
    return %c0_i32, %c0_i32_0 : i32, i32
  }
  func.func @transform_3(%arg0: i32) -> (i32, i32) {
    %c0_i32 = arith.constant 0 : i32
    %c0_i32_0 = arith.constant 0 : i32
    %c0_i32_1 = arith.constant 0 : i32
    return %c0_i32, %c0_i32_0 : i32, i32
  }
  func.func @transform_4(%arg0: i32) -> (i32, i32, i32) {
    %c0_i32 = arith.constant 0 : i32
    %c0_i32_0 = arith.constant 0 : i32
    %c0_i32_1 = arith.constant 0 : i32
    %c0_i32_2 = arith.constant 0 : i32
    return %c0_i32, %c0_i32_0, %c0_i32_1 : i32, i32, i32
  }
  func.func @transform_5(%arg0: i32) -> (i32, i32) {
    %c0_i32 = arith.constant 0 : i32
    %c0_i32_0 = arith.constant 0 : i32
    %c0_i32_1 = arith.constant 0 : i32
    return %c0_i32, %c0_i32_0 : i32, i32
  }
  func.func @transform_6(%arg0: i32) -> (i32, i32, i32) {
    %c0_i32 = arith.constant 0 : i32
    %c0_i32_0 = arith.constant 0 : i32
    %c0_i32_1 = arith.constant 0 : i32
    return %arg0, %c0_i32, %c0_i32_0 : i32, i32, i32
  }
}

module attributes {stable_mosaic.version = 11 : i64} {
  func.func @kernel(%arg0: i32, %arg1: memref<1x110x128xf32, #tpu.memory_space<vmem>>, %arg2: memref<9x128x128xf32, #tpu.memory_space<vmem>>, %arg3: memref<1x128xf32, #tpu.memory_space<vmem>>, %arg4: memref<1x80x128xf32, #tpu.memory_space<vmem>>, %arg5: memref<1x128xf32, #tpu.memory_space<vmem>>, %arg6: memref<1x128xf32, #tpu.memory_space<vmem>>, %arg7: memref<128x128xf32, #tpu.memory_space<vmem>>, %arg8: memref<1x128xf32, #tpu.memory_space<vmem>>, %arg9: memref<1x80x128xf32, #tpu.memory_space<vmem>>, %arg10: memref<110x128xf32, #tpu.memory_space<vmem>>, %arg11: memref<80x128xf32, #tpu.memory_space<vmem>>) attributes {dimension_semantics = [#tpu.dimension_semantics<parallel>], iteration_bounds = array<i64: 2>, scalar_prefetch = 0 : i64, scratch_operands = 2 : i64, tpu.core_type = #tpu.core_type<tc>, window_params = [{transform_indices = @transform_0, window_bounds = array<i64: 1, 110, 128>}, {pipeline_mode = #tpu.pipeline_mode<synchronous>, transform_indices = @transform_1, window_bounds = array<i64: 9, 128, 128>}, {pipeline_mode = #tpu.pipeline_mode<synchronous>, transform_indices = @transform_2, window_bounds = array<i64: 1, 128>}, {transform_indices = @transform_3, window_bounds = array<i64: 1, 80, 128>}, {pipeline_mode = #tpu.pipeline_mode<synchronous>, transform_indices = @transform_4, window_bounds = array<i64: 1, 128>}, {pipeline_mode = #tpu.pipeline_mode<synchronous>, transform_indices = @transform_5, window_bounds = array<i64: 1, 128>}, {pipeline_mode = #tpu.pipeline_mode<synchronous>, transform_indices = @transform_6, window_bounds = array<i64: 128, 128>}, {pipeline_mode = #tpu.pipeline_mode<synchronous>, transform_indices = @transform_7, window_bounds = array<i64: 1, 128>}, {transform_indices = @transform_8, window_bounds = array<i64: 1, 80, 128>}]} {
    %c0 = arith.constant 0 : index
    %c0_0 = arith.constant 0 : index
    %c0_1 = arith.constant 0 : index
    %0 = vector.load %arg1[%c0, %c0_0, %c0_1] : memref<1x110x128xf32, #tpu.memory_space<vmem>>, vector<1x110x128xf32>
    %1 = vector.shape_cast %0 : vector<1x110x128xf32> to vector<110x128xf32>
    %c0_2 = arith.constant 0 : index
    %c0_3 = arith.constant 0 : index
    %2 = vector.load %arg10[%c0_2, %c0_3] : memref<110x128xf32, #tpu.memory_space<vmem>>, vector<110x128xf32>
    tpu.vector_store %arg10[%c0_2, %c0_3], %1 {strides = array<i32>} : memref<110x128xf32, #tpu.memory_space<vmem>>, vector<110x128xf32>,
    %c0_4 = arith.constant 0 : index
    %c0_5 = arith.constant 0 : index
    %c0_6 = arith.constant 0 : index
    %3 = vector.load %arg4[%c0_4, %c0_5, %c0_6] : memref<1x80x128xf32, #tpu.memory_space<vmem>>, vector<1x80x128xf32>
    %4 = vector.shape_cast %3 : vector<1x80x128xf32> to vector<80x128xf32>
    %c0_7 = arith.constant 0 : index
    %c0_8 = arith.constant 0 : index
    %5 = vector.load %arg5[%c0_7, %c0_8] : memref<1x128xf32, #tpu.memory_space<vmem>>, vector<1x128xf32>
    %6 = vector.broadcast %5 : vector<1x128xf32> to vector<80x128xf32>
    %7 = arith.mulf %4, %6 : vector<80x128xf32>
    %c0_9 = arith.constant 0 : index
    %c0_10 = arith.constant 0 : index
    %8 = vector.load %arg6[%c0_9, %c0_10] : memref<1x128xf32, #tpu.memory_space<vmem>>, vector<1x128xf32>
    %9 = vector.broadcast %8 : vector<1x128xf32> to vector<80x128xf32>
    %10 = arith.addf %7, %9 : vector<80x128xf32>
    %cst = arith.constant 0.000000e+00 : f32
    %11 = vector.broadcast %cst : f32 to vector<80x128xf32>
    %12 = arith.cmpf oge, %10, %11 : vector<80x128xf32>
    %cst_11 = arith.constant 1.000000e-01 : f32
    %13 = vector.broadcast %cst_11 : f32 to vector<80x128xf32>
    %14 = arith.mulf %13, %10 : vector<80x128xf32>
    %15 = arith.select %12, %10, %14 : vector<80x128xi1>, vector<80x128xf32>
    %c0_12 = arith.constant 0 : index
    %c0_13 = arith.constant 0 : index
    %16 = vector.load %arg7[%c0_12, %c0_13] : memref<128x128xf32, #tpu.memory_space<vmem>>, vector<128x128xf32>
    %cst_14 = arith.constant dense<0.000000e+00> : vector<80x128xf32>
    %17 = tpu.matmul %15, %16, %cst_14 {dimension_numbers = #tpu.dot_dimension_numbers<[1], [0], [0], [1], [0, 0, 1, 1], [], []>} : vector<80x128xf32>, vector<128x128xf32>, vector<80x128xf32> -> vector<80x128xf32>
    %c0_15 = arith.constant 0 : index
    %c0_16 = arith.constant 0 : index
    %18 = vector.load %arg8[%c0_15, %c0_16] : memref<1x128xf32, #tpu.memory_space<vmem>>, vector<1x128xf32>
    %19 = vector.broadcast %18 : vector<1x128xf32> to vector<80x128xf32>
    %20 = arith.addf %17, %19 : vector<80x128xf32>
    %c0_17 = arith.constant 0 : index
    %c0_18 = arith.constant 0 : index
    %21 = vector.load %arg3[%c0_17, %c0_18] : memref<1x128xf32, #tpu.memory_space<vmem>>, vector<1x128xf32>
    %22 = vector.broadcast %21 : vector<1x128xf32> to vector<80x128xf32>
    %23 = arith.addf %20, %22 : vector<80x128xf32>
    %c0_19 = arith.constant 0 : index
    %c0_20 = arith.constant 0 : index
    %24 = vector.load %arg11[%c0_19, %c0_20] : memref<80x128xf32, #tpu.memory_space<vmem>>, vector<80x128xf32>
    tpu.vector_store %arg11[%c0_19, %c0_20], %23 {strides = array<i32>} : memref<80x128xf32, #tpu.memory_space<vmem>>, vector<80x128xf32>,
    %c0_21 = arith.constant 0 : index
    %c0_22 = arith.constant 0 : index
    %25 = vector.load %arg11[%c0_21, %c0_22] : memref<80x128xf32, #tpu.memory_space<vmem>>, vector<80x128xf32>
    %c0_23 = arith.constant 0 : index
    %c0_24 = arith.constant 0 : index
    %26 = vector.load %arg10[%c0_23, %c0_24] : memref<110x128xf32, #tpu.memory_space<vmem>>, vector<80x128xf32>
    %c0_25 = arith.constant 0 : index
    %c0_26 = arith.constant 0 : index
    %c0_27 = arith.constant 0 : index
    %27 = vector.load %arg2[%c0_25, %c0_26, %c0_27] : memref<9x128x128xf32, #tpu.memory_space<vmem>>, vector<1x128x128xf32>
    %28 = vector.shape_cast %27 : vector<1x128x128xf32> to vector<128x128xf32>
    %cst_28 = arith.constant dense<0.000000e+00> : vector<80x128xf32>
    %29 = tpu.matmul %26, %28, %cst_28 {dimension_numbers = #tpu.dot_dimension_numbers<[1], [0], [0], [1], [0, 0, 1, 1], [], []>} : vector<80x128xf32>, vector<128x128xf32>, vector<80x128xf32> -> vector<80x128xf32>
    %30 = arith.addf %25, %29 : vector<80x128xf32>
    %c0_29 = arith.constant 0 : index
    %c0_30 = arith.constant 0 : index
    %31 = vector.load %arg11[%c0_29, %c0_30] : memref<80x128xf32, #tpu.memory_space<vmem>>, vector<80x128xf32>
    tpu.vector_store %arg11[%c0_29, %c0_30], %30 {strides = array<i32>} : memref<80x128xf32, #tpu.memory_space<vmem>>, vector<80x128xf32>,
    %c0_31 = arith.constant 0 : index
    %c0_32 = arith.constant 0 : index
    %32 = vector.load %arg11[%c0_31, %c0_32] : memref<80x128xf32, #tpu.memory_space<vmem>>, vector<80x128xf32>
    %c1 = arith.constant 1 : index
    %c0_33 = arith.constant 0 : index
    %33 = vector.load %arg10[%c1, %c0_33] : memref<110x128xf32, #tpu.memory_space<vmem>>, vector<80x128xf32>
    %c1_34 = arith.constant 1 : index
    %c0_35 = arith.constant 0 : index
    %c0_36 = arith.constant 0 : index
    %34 = vector.load %arg2[%c1_34, %c0_35, %c0_36] : memref<9x128x128xf32, #tpu.memory_space<vmem>>, vector<1x128x128xf32>
    %35 = vector.shape_cast %34 : vector<1x128x128xf32> to vector<128x128xf32>
    %cst_37 = arith.constant dense<0.000000e+00> : vector<80x128xf32>
    %36 = tpu.matmul %33, %35, %cst_37 {dimension_numbers = #tpu.dot_dimension_numbers<[1], [0], [0], [1], [0, 0, 1, 1], [], []>} : vector<80x128xf32>, vector<128x128xf32>, vector<80x128xf32> -> vector<80x128xf32>
    %37 = arith.addf %32, %36 : vector<80x128xf32>
    %c0_38 = arith.constant 0 : index
    %c0_39 = arith.constant 0 : index
    %38 = vector.load %arg11[%c0_38, %c0_39] : memref<80x128xf32, #tpu.memory_space<vmem>>, vector<80x128xf32>
    tpu.vector_store %arg11[%c0_38, %c0_39], %37 {strides = array<i32>} : memref<80x128xf32, #tpu.memory_space<vmem>>, vector<80x128xf32>,
    %c0_40 = arith.constant 0 : index
    %c0_41 = arith.constant 0 : index
    %39 = vector.load %arg11[%c0_40, %c0_41] : memref<80x128xf32, #tpu.memory_space<vmem>>, vector<80x128xf32>
    %c2 = arith.constant 2 : index
    %c0_42 = arith.constant 0 : index
    %40 = vector.load %arg10[%c2, %c0_42] : memref<110x128xf32, #tpu.memory_space<vmem>>, vector<80x128xf32>
    %c2_43 = arith.constant 2 : index
    %c0_44 = arith.constant 0 : index
    %c0_45 = arith.constant 0 : index
    %41 = vector.load %arg2[%c2_43, %c0_44, %c0_45] : memref<9x128x128xf32, #tpu.memory_space<vmem>>, vector<1x128x128xf32>
    %42 = vector.shape_cast %41 : vector<1x128x128xf32> to vector<128x128xf32>
    %cst_46 = arith.constant dense<0.000000e+00> : vector<80x128xf32>
    %43 = tpu.matmul %40, %42, %cst_46 {dimension_numbers = #tpu.dot_dimension_numbers<[1], [0], [0], [1], [0, 0, 1, 1], [], []>} : vector<80x128xf32>, vector<128x128xf32>, vector<80x128xf32> -> vector<80x128xf32>
    %44 = arith.addf %39, %43 : vector<80x128xf32>
    %c0_47 = arith.constant 0 : index
    %c0_48 = arith.constant 0 : index
    %45 = vector.load %arg11[%c0_47, %c0_48] : memref<80x128xf32, #tpu.memory_space<vmem>>, vector<80x128xf32>
    tpu.vector_store %arg11[%c0_47, %c0_48], %44 {strides = array<i32>} : memref<80x128xf32, #tpu.memory_space<vmem>>, vector<80x128xf32>,
    %c0_49 = arith.constant 0 : index
    %c0_50 = arith.constant 0 : index
    %46 = vector.load %arg11[%c0_49, %c0_50] : memref<80x128xf32, #tpu.memory_space<vmem>>, vector<80x128xf32>
    %c10 = arith.constant 10 : index
    %c0_51 = arith.constant 0 : index
    %47 = vector.load %arg10[%c10, %c0_51] : memref<110x128xf32, #tpu.memory_space<vmem>>, vector<80x128xf32>
    %c3 = arith.constant 3 : index
    %c0_52 = arith.constant 0 : index
    %c0_53 = arith.constant 0 : index
    %48 = vector.load %arg2[%c3, %c0_52, %c0_53] : memref<9x128x128xf32, #tpu.memory_space<vmem>>, vector<1x128x128xf32>
    %49 = vector.shape_cast %48 : vector<1x128x128xf32> to vector<128x128xf32>
    %cst_54 = arith.constant dense<0.000000e+00> : vector<80x128xf32>
    %50 = tpu.matmul %47, %49, %cst_54 {dimension_numbers = #tpu.dot_dimension_numbers<[1], [0], [0], [1], [0, 0, 1, 1], [], []>} : vector<80x128xf32>, vector<128x128xf32>, vector<80x128xf32> -> vector<80x128xf32>
    %51 = arith.addf %46, %50 : vector<80x128xf32>
    %c0_55 = arith.constant 0 : index
    %c0_56 = arith.constant 0 : index
    %52 = vector.load %arg11[%c0_55, %c0_56] : memref<80x128xf32, #tpu.memory_space<vmem>>, vector<80x128xf32>
    tpu.vector_store %arg11[%c0_55, %c0_56], %51 {strides = array<i32>} : memref<80x128xf32, #tpu.memory_space<vmem>>, vector<80x128xf32>,
    %c0_57 = arith.constant 0 : index
    %c0_58 = arith.constant 0 : index
    %53 = vector.load %arg11[%c0_57, %c0_58] : memref<80x128xf32, #tpu.memory_space<vmem>>, vector<80x128xf32>
    %c11 = arith.constant 11 : index
    %c0_59 = arith.constant 0 : index
    %54 = vector.load %arg10[%c11, %c0_59] : memref<110x128xf32, #tpu.memory_space<vmem>>, vector<80x128xf32>
    %c4 = arith.constant 4 : index
    %c0_60 = arith.constant 0 : index
    %c0_61 = arith.constant 0 : index
    %55 = vector.load %arg2[%c4, %c0_60, %c0_61] : memref<9x128x128xf32, #tpu.memory_space<vmem>>, vector<1x128x128xf32>
    %56 = vector.shape_cast %55 : vector<1x128x128xf32> to vector<128x128xf32>
    %cst_62 = arith.constant dense<0.000000e+00> : vector<80x128xf32>
    %57 = tpu.matmul %54, %56, %cst_62 {dimension_numbers = #tpu.dot_dimension_numbers<[1], [0], [0], [1], [0, 0, 1, 1], [], []>} : vector<80x128xf32>, vector<128x128xf32>, vector<80x128xf32> -> vector<80x128xf32>
    %58 = arith.addf %53, %57 : vector<80x128xf32>
    %c0_63 = arith.constant 0 : index
    %c0_64 = arith.constant 0 : index
    %59 = vector.load %arg11[%c0_63, %c0_64] : memref<80x128xf32, #tpu.memory_space<vmem>>, vector<80x128xf32>
    tpu.vector_store %arg11[%c0_63, %c0_64], %58 {strides = array<i32>} : memref<80x128xf32, #tpu.memory_space<vmem>>, vector<80x128xf32>,
    %c0_65 = arith.constant 0 : index
    %c0_66 = arith.constant 0 : index
    %60 = vector.load %arg11[%c0_65, %c0_66] : memref<80x128xf32, #tpu.memory_space<vmem>>, vector<80x128xf32>
    %c12 = arith.constant 12 : index
    %c0_67 = arith.constant 0 : index
    %61 = vector.load %arg10[%c12, %c0_67] : memref<110x128xf32, #tpu.memory_space<vmem>>, vector<80x128xf32>
    %c5 = arith.constant 5 : index
    %c0_68 = arith.constant 0 : index
    %c0_69 = arith.constant 0 : index
    %62 = vector.load %arg2[%c5, %c0_68, %c0_69] : memref<9x128x128xf32, #tpu.memory_space<vmem>>, vector<1x128x128xf32>
    %63 = vector.shape_cast %62 : vector<1x128x128xf32> to vector<128x128xf32>
    %cst_70 = arith.constant dense<0.000000e+00> : vector<80x128xf32>
    %64 = tpu.matmul %61, %63, %cst_70 {dimension_numbers = #tpu.dot_dimension_numbers<[1], [0], [0], [1], [0, 0, 1, 1], [], []>} : vector<80x128xf32>, vector<128x128xf32>, vector<80x128xf32> -> vector<80x128xf32>
    %65 = arith.addf %60, %64 : vector<80x128xf32>
    %c0_71 = arith.constant 0 : index
    %c0_72 = arith.constant 0 : index
    %66 = vector.load %arg11[%c0_71, %c0_72] : memref<80x128xf32, #tpu.memory_space<vmem>>, vector<80x128xf32>
    tpu.vector_store %arg11[%c0_71, %c0_72], %65 {strides = array<i32>} : memref<80x128xf32, #tpu.memory_space<vmem>>, vector<80x128xf32>,
    %c0_73 = arith.constant 0 : index
    %c0_74 = arith.constant 0 : index
    %67 = vector.load %arg11[%c0_73, %c0_74] : memref<80x128xf32, #tpu.memory_space<vmem>>, vector<80x128xf32>
    %c20 = arith.constant 20 : index
    %c0_75 = arith.constant 0 : index
    %68 = vector.load %arg10[%c20, %c0_75] : memref<110x128xf32, #tpu.memory_space<vmem>>, vector<80x128xf32>
    %c6 = arith.constant 6 : index
    %c0_76 = arith.constant 0 : index
    %c0_77 = arith.constant 0 : index
    %69 = vector.load %arg2[%c6, %c0_76, %c0_77] : memref<9x128x128xf32, #tpu.memory_space<vmem>>, vector<1x128x128xf32>
    %70 = vector.shape_cast %69 : vector<1x128x128xf32> to vector<128x128xf32>
    %cst_78 = arith.constant dense<0.000000e+00> : vector<80x128xf32>
    %71 = tpu.matmul %68, %70, %cst_78 {dimension_numbers = #tpu.dot_dimension_numbers<[1], [0], [0], [1], [0, 0, 1, 1], [], []>} : vector<80x128xf32>, vector<128x128xf32>, vector<80x128xf32> -> vector<80x128xf32>
    %72 = arith.addf %67, %71 : vector<80x128xf32>
    %c0_79 = arith.constant 0 : index
    %c0_80 = arith.constant 0 : index
    %73 = vector.load %arg11[%c0_79, %c0_80] : memref<80x128xf32, #tpu.memory_space<vmem>>, vector<80x128xf32>
    tpu.vector_store %arg11[%c0_79, %c0_80], %72 {strides = array<i32>} : memref<80x128xf32, #tpu.memory_space<vmem>>, vector<80x128xf32>,
    %c0_81 = arith.constant 0 : index
    %c0_82 = arith.constant 0 : index
    %74 = vector.load %arg11[%c0_81, %c0_82] : memref<80x128xf32, #tpu.memory_space<vmem>>, vector<80x128xf32>
    %c21 = arith.constant 21 : index
    %c0_83 = arith.constant 0 : index
    %75 = vector.load %arg10[%c21, %c0_83] : memref<110x128xf32, #tpu.memory_space<vmem>>, vector<80x128xf32>
    %c7 = arith.constant 7 : index
    %c0_84 = arith.constant 0 : index
    %c0_85 = arith.constant 0 : index
    %76 = vector.load %arg2[%c7, %c0_84, %c0_85] : memref<9x128x128xf32, #tpu.memory_space<vmem>>, vector<1x128x128xf32>
    %77 = vector.shape_cast %76 : vector<1x128x128xf32> to vector<128x128xf32>
    %cst_86 = arith.constant dense<0.000000e+00> : vector<80x128xf32>
    %78 = tpu.matmul %75, %77, %cst_86 {dimension_numbers = #tpu.dot_dimension_numbers<[1], [0], [0], [1], [0, 0, 1, 1], [], []>} : vector<80x128xf32>, vector<128x128xf32>, vector<80x128xf32> -> vector<80x128xf32>
    %79 = arith.addf %74, %78 : vector<80x128xf32>
    %c0_87 = arith.constant 0 : index
    %c0_88 = arith.constant 0 : index
    %80 = vector.load %arg11[%c0_87, %c0_88] : memref<80x128xf32, #tpu.memory_space<vmem>>, vector<80x128xf32>
    tpu.vector_store %arg11[%c0_87, %c0_88], %79 {strides = array<i32>} : memref<80x128xf32, #tpu.memory_space<vmem>>, vector<80x128xf32>,
    %c0_89 = arith.constant 0 : index
    %c0_90 = arith.constant 0 : index
    %81 = vector.load %arg11[%c0_89, %c0_90] : memref<80x128xf32, #tpu.memory_space<vmem>>, vector<80x128xf32>
    %c22 = arith.constant 22 : index
    %c0_91 = arith.constant 0 : index
    %82 = vector.load %arg10[%c22, %c0_91] : memref<110x128xf32, #tpu.memory_space<vmem>>, vector<80x128xf32>
    %c8 = arith.constant 8 : index
    %c0_92 = arith.constant 0 : index
    %c0_93 = arith.constant 0 : index
    %83 = vector.load %arg2[%c8, %c0_92, %c0_93] : memref<9x128x128xf32, #tpu.memory_space<vmem>>, vector<1x128x128xf32>
    %84 = vector.shape_cast %83 : vector<1x128x128xf32> to vector<128x128xf32>
    %cst_94 = arith.constant dense<0.000000e+00> : vector<80x128xf32>
    %85 = tpu.matmul %82, %84, %cst_94 {dimension_numbers = #tpu.dot_dimension_numbers<[1], [0], [0], [1], [0, 0, 1, 1], [], []>} : vector<80x128xf32>, vector<128x128xf32>, vector<80x128xf32> -> vector<80x128xf32>
    %86 = arith.addf %81, %85 : vector<80x128xf32>
    %c0_95 = arith.constant 0 : index
    %c0_96 = arith.constant 0 : index
    %87 = vector.load %arg11[%c0_95, %c0_96] : memref<80x128xf32, #tpu.memory_space<vmem>>, vector<80x128xf32>
    tpu.vector_store %arg11[%c0_95, %c0_96], %86 {strides = array<i32>} : memref<80x128xf32, #tpu.memory_space<vmem>>, vector<80x128xf32>,
    %c0_97 = arith.constant 0 : index
    %c0_98 = arith.constant 0 : index
    %88 = vector.load %arg11[%c0_97, %c0_98] : memref<80x128xf32, #tpu.memory_space<vmem>>, vector<80x128xf32>
    %c0_99 = arith.constant 0 : index
    %c0_100 = arith.constant 0 : index
    %c0_101 = arith.constant 0 : index
    %89 = vector.load %arg9[%c0_99, %c0_100, %c0_101] : memref<1x80x128xf32, #tpu.memory_space<vmem>>, vector<1x80x128xf32>
    %90 = vector.shape_cast %89 : vector<1x80x128xf32> to vector<80x128xf32>
    %91 = vector.shape_cast %88 : vector<80x128xf32> to vector<1x80x128xf32>
    tpu.vector_store %arg9[%c0_99, %c0_100, %c0_101], %91 {strides = array<i32>} : memref<1x80x128xf32, #tpu.memory_space<vmem>>, vector<1x80x128xf32>,
    return
  }
  func.func @transform_0(%arg0: i32) -> (i32, i32, i32) {
    %c0_i32 = arith.constant 0 : i32
    %c0_i32_0 = arith.constant 0 : i32
    %c0_i32_1 = arith.constant 0 : i32
    return %arg0, %c0_i32, %c0_i32_0 : i32, i32, i32
  }
  func.func @transform_1(%arg0: i32) -> (i32, i32, i32) {
    %c0_i32 = arith.constant 0 : i32
    %c0_i32_0 = arith.constant 0 : i32
    %c0_i32_1 = arith.constant 0 : i32
    %c0_i32_2 = arith.constant 0 : i32
    return %c0_i32, %c0_i32_0, %c0_i32_1 : i32, i32, i32
  }
  func.func @transform_2(%arg0: i32) -> (i32, i32) {
    %c0_i32 = arith.constant 0 : i32
    %c0_i32_0 = arith.constant 0 : i32
    %c0_i32_1 = arith.constant 0 : i32
    return %c0_i32, %c0_i32_0 : i32, i32
  }
  func.func @transform_3(%arg0: i32) -> (i32, i32, i32) {
    %c0_i32 = arith.constant 0 : i32
    %c0_i32_0 = arith.constant 0 : i32
    %c0_i32_1 = arith.constant 0 : i32
    return %arg0, %c0_i32, %c0_i32_0 : i32, i32, i32
  }
  func.func @transform_4(%arg0: i32) -> (i32, i32) {
    %c0_i32 = arith.constant 0 : i32
    %c0_i32_0 = arith.constant 0 : i32
    %c0_i32_1 = arith.constant 0 : i32
    return %c0_i32, %c0_i32_0 : i32, i32
  }
  func.func @transform_5(%arg0: i32) -> (i32, i32) {
    %c0_i32 = arith.constant 0 : i32
    %c0_i32_0 = arith.constant 0 : i32
    %c0_i32_1 = arith.constant 0 : i32
    return %c0_i32, %c0_i32_0 : i32, i32
  }
  func.func @transform_6(%arg0: i32) -> (i32, i32) {
    %c0_i32 = arith.constant 0 : i32
    %c0_i32_0 = arith.constant 0 : i32
    %c0_i32_1 = arith.constant 0 : i32
    return %c0_i32, %c0_i32_0 : i32, i32
  }
  func.func @transform_7(%arg0: i32) -> (i32, i32) {
    %c0_i32 = arith.constant 0 : i32
    %c0_i32_0 = arith.constant 0 : i32
    %c0_i32_1 = arith.constant 0 : i32
    return %c0_i32, %c0_i32_0 : i32, i32
  }
  func.func @transform_8(%arg0: i32) -> (i32, i32, i32) {
    %c0_i32 = arith.constant 0 : i32
    %c0_i32_0 = arith.constant 0 : i32
    %c0_i32_1 = arith.constant 0 : i32
    return %arg0, %c0_i32, %c0_i32_0 : i32, i32, i32
  }
}

</mosaic_0001>

<bundles_post_ra>
// kernel: basic_block_forward.2
= control target key start
LH: loop header
LB: loop body
LE: loop exit
PB: predicated region body
PF: predicated region fallthrough
CT: control target
= control target key end

     0   :  { %s3887_s21 = smov 0   ;;  %s5190_s0 = inlined_call_operand.vmem [shape: f32[2,342,128], index: 0, kind: input, shape index: {}]   ;;  %s5191_s1 = inlined_call_operand.vmem [shape: f32[1,128], index: 1, kind: input, shape index: {}]   ;;  %s5192_s2 = inlined_call_operand.vmem [shape: f32[1,128], index: 2, kind: input, shape index: {}]   ;;  %s5193_s3 = inlined_call_operand.vmem [shape: f32[342,1], index: 3, kind: input, shape index: {}]   ;;  %s5194_s4 = inlined_call_operand.vmem [shape: f32[9,128,128], index: 4, kind: input, shape index: {}]   ;;  %s5195_s5 = inlined_call_operand.vmem [shape: f32[1,128], index: 5, kind: input, shape index: {}]   ;;  %s5196_s6 = inlined_call_operand.vmem [shape: f32[2,288,128], index: 6, kind: output, shape index: {}]  }
   0x1 LB: > { %s3638_s22 = sadd.s32 4294967295, %s3849_s21   ;;  %p3642_p0 = scmp.ge.s32.totalorder %s3849_s21, 1  ;;  %s3849_s21 = sphi %s3887_s21, %s16_s21  }
   0x2   : > { %p212_p1 = scmp.lt.s32.totalorder %s3849_s21, 3 }
   0x4   : > { %p213_p2 = pnand %p3642_p0, %p212_p1 }
   0x5   : > { %p3978_p3 = scmp.lt.s32.totalorder (!%p213_p2), %s3638_s22, 1 }
   0x6   : > { %216 = sbr.rel (%p213_p2) target bundleno = 938 (0x3aa), region = 44 }
   0xb   : > { %v536_v0 = vld [vmem:[%s5193_s3 + $0x90] sm:$0xff]  ;;  %v527_v1 = vld [vmem:[%s5193_s3 + $0x48] sm:$0xff]  ;;  %v518_v2 = vld [vmem:[%s5193_s3] sm:$0xff]  ;;  %v3851_v3 = vmov 0   ;;  %s5199_s22 = smov (!%p3978_p3, %s3638_s22), 1 }
   0xc   : > { %3836 = vset.pattern.permute.xlu2 %v3851_v3  ;;  %3835 = vset.pattern.permute.xlu1 %v3851_v3  ;;  %v537_v4 = vld [vmem:[%s5193_s3 + $0x98] sm:$0xff]  ;;  %v546_v6 = vld [vmem:[%s5193_s3 + $0xe0] sm:$0xff]  ;;  %v528_v8 = vld [vmem:[%s5193_s3 + $0x50] sm:$0xff]  ;;  %s3823_s26 = smul.u32 344, %s5199_s22 }
   0xd   : > { %3834 = vset.pattern.permute.xlu0 %v3851_v3  ;;  %608 = vperm.xlu1 %3835, %v527_v1   ;;  %v545_v5 = vld [vmem:[%s5193_s3 + $0xd8] sm:$0xff]  ;;  %v538_v7 = vld [vmem:[%s5193_s3 + $0xa0] sm:$0xff]  ;;  %v519_v9 = vld [vmem:[%s5193_s3 + $0x8] sm:$0xff]  ;;  %s3824_s24 = smul.u32 288, %s5199_s22 }
   0xe   : > { %653 = vperm.xlu0 %3834, %v536_v0   ;;  %563 = vperm.xlu2 %3836, %v518_v2   ;;  %v529_v10 = vld [vmem:[%s5193_s3 + $0x58] sm:$0xff]  ;;  %v547_v11 = vld [vmem:[%s5193_s3 + $0xe8] sm:$0xff]  ;;  %v548_v13 = vld [vmem:[%s5193_s3 + $0xf0] sm:$0xff]  ;;  %s4025_s13 = scalar_lea.vmem %s5190_s0, %s3823_s26 }
   0xf   : > { %v539_v12 = vld [vmem:[%s5193_s3 + $0xa8] sm:$0xff]  ;;  %v520_v14 = vld [vmem:[%s5193_s3 + $0x10] sm:$0xff]  ;;  %v530_v15 = vld [vmem:[%s5193_s3 + $0x60] sm:$0xff]  ;;  %s5051_s22 = scalar_lea.vmem %s5196_s6, %s3824_s24 }
  0x10   : > { %v521_v16 = vld [vmem:[%s5193_s3 + $0x18] sm:$0xff]  ;;  %v540_v17 = vld [vmem:[%s5193_s3 + $0xb0] sm:$0xff]  ;;  %v531_v20 = vld [vmem:[%s5193_s3 + $0x68] sm:$0xff] }
  0x11   : > { %v549_v18 = vld [vmem:[%s5193_s3 + $0xf8] sm:$0xff]  ;;  %v522_v21 = vld [vmem:[%s5193_s3 + $0x20] sm:$0xff]  ;;  %v532_v22 = vld [vmem:[%s5193_s3 + $0x70] sm:$0xff] }
  0x12   : > { %v541_v19 = vld [vmem:[%s5193_s3 + $0xb8] sm:$0xff]  ;;  %v550_v23 = vld [vmem:[%s5193_s3 + $0x100] sm:$0xff]  ;;  %v912_v26 = vld [vmem:[%s5194_s4 + $0x70] sm:$0xff] }
  0x13   : > { %v542_v24 = vld [vmem:[%s5193_s3 + $0xc0] sm:$0xff]  ;;  %v913_v25 = vld [vmem:[%s5194_s4 + $0x78] sm:$0xff]  ;;  %v911_v27 = vld [vmem:[%s5194_s4 + $0x68] sm:$0xff] }
  0x14   : > { %914 = vmatpush.msra.mxu0 %v913_v25  ;;  %3776 = vmatpush.msra.mxu2 %v913_v25  ;;  %v910_v28 = vld [vmem:[%s5194_s4 + $0x60] sm:$0xff]  ;;  %v551_v29 = vld [vmem:[%s5193_s3 + $0x108] sm:$0xff]  ;;  %v533_v31 = vld [vmem:[%s5193_s3 + $0x78] sm:$0xff] }
  0x15   : > { %658 = vperm.xlu1 %3835, %v537_v4   ;;  %3775 = vmatpush.msra.mxu1 %v913_v25  ;;  %v523_v30 = vld [vmem:[%s5193_s3 + $0x28] sm:$0xff]  ;;  %v909_v32 = vld [vmem:[%s5194_s4 + $0x58] sm:$0xff]  ;;  %v908_v33 = vld [vmem:[%s5194_s4 + $0x50] sm:$0xff] }
  0x16   : > { %698 = vperm.xlu0 %3834, %v545_v5   ;;  %703 = vperm.xlu2 %3836, %v546_v6   ;;  %v907_v34 = vld [vmem:[%s5194_s4 + $0x48] sm:$0xff]  ;;  %v906_v35 = vld [vmem:[%s5194_s4 + $0x40] sm:$0xff]  ;;  %v524_v36 = vld [vmem:[%s5193_s3 + $0x30] sm:$0xff] }
  0x17   : > { %915 = vmatpush.msra.mxu0 %v912_v26  ;;  %3779 = vmatpush.msra.mxu2 %v912_v26  ;;  %v543_v37 = vld [vmem:[%s5193_s3 + $0xc8] sm:$0xff]  ;;  %v552_v38 = vld [vmem:[%s5193_s3 + $0x110] sm:$0xff]  ;;  %v905_v39 = vld [vmem:[%s5194_s4 + $0x38] sm:$0xff] }
  0x18   : > { %3778 = vmatpush.msra.mxu1 %v912_v26  ;;  %3777 = vmatpush.msra.mxu3 %v913_v25  ;;  %v4033_v40 = vld [vmem:[%s5191_s1] ss:$0 sm:$0xff]  ;;  %v904_v41 = vld [vmem:[%s5194_s4 + $0x30] sm:$0xff]  ;;  %v903_v43 = vld [vmem:[%s5194_s4 + $0x28] sm:$0xff] }
  0x19   : > { %916 = vmatpush.msra.mxu0 %v911_v27  ;;  %3782 = vmatpush.msra.mxu2 %v911_v27  ;;  %v252_v42 = vld [vmem:[%s4025_s13] sm:$0xff]  ;;  %v544_v44 = vld [vmem:[%s5193_s3 + $0xd0] sm:$0xff]  ;;  %v525_v48 = vld [vmem:[%s5193_s3 + $0x38] sm:$0xff] }
  0x1a   : > { %3781 = vmatpush.msra.mxu1 %v911_v27  ;;  %3780 = vmatpush.msra.mxu3 %v912_v26  ;;  %v299_v45 = vmul.f32 %v4033_v40, %v252_v42  ;;  %v4049_v46 = vld [vmem:[%s5192_s2] ss:$0 sm:$0xff]  ;;  %v901_v51 = vld [vmem:[%s5194_s4 + $0x18] sm:$0xff]  ;;  %v900_v53 = vld [vmem:[%s5194_s4 + $0x10] sm:$0xff] }
  0x1b   : > { %917 = vmatpush.msra.mxu0 %v910_v28  ;;  %3785 = vmatpush.msra.mxu2 %v910_v28  ;;  %v534_v47 = vld [vmem:[%s5193_s3 + $0x80] sm:$0xff]  ;;  %v535_v54 = vld [vmem:[%s5193_s3 + $0x88] sm:$0xff]  ;;  %v553_v58 = vld [vmem:[%s5193_s3 + $0x118] sm:$0xff] }
  0x1c   : > { %3784 = vmatpush.msra.mxu1 %v910_v28  ;;  %3783 = vmatpush.msra.mxu3 %v911_v27  ;;  %v902_v49 = vld [vmem:[%s5194_s4 + $0x20] sm:$0xff]  ;;  %v346_v50 = vadd.f32 %v4049_v46, %v299_v45  ;;  %v899_v57 = vld [vmem:[%s5194_s4 + $0x8] sm:$0xff]  ;;  %v556_v6 = vld [vmem:[%s5193_s3 + $0x130] sm:$0xff] }
  0x1d   : > { %663 = vperm.xlu1 %3835, %v538_v7   ;;  %918 = vmatpush.msra.mxu0 %v909_v32  ;;  %v280_v52 = vld [vmem:[%s4025_s13 + $0xe0] sm:$0xff]  ;;  %v253_v63 = vld [vmem:[%s4025_s13 + $0x8] sm:$0xff]  ;;  %v271_v25 = vld [vmem:[%s4025_s13 + $0x98] sm:$0xff] }
  0x1e   : > { %613 = vperm.xlu0 %3834, %v528_v8   ;;  %568 = vperm.xlu2 %3836, %v519_v9   ;;  %v432_v55 = vmul.f32 0.1, %v346_v50  ;;  %v327_v56 = vmul.f32 %v4033_v40, %v280_v52  ;;  %v526_v59 = vld [vmem:[%s5193_s3 + $0x40] sm:$0xff]  ;;  %vm389_vm0 = vcmp.ge.f32.partialorder %v346_v50, 0.0  ;;  %v555_v2 = vld [vmem:[%s5193_s3 + $0x128] sm:$0xff]  ;;  %v300_v4 = vmul.f32 %v4033_v40, %v253_v63  ;;  %v270_v9 = vld [vmem:[%s4025_s13 + $0x90] sm:$0xff] }
  0x1f   : > { %3788 = vmatpush.msra.mxu2 %v909_v32  ;;  %3787 = vmatpush.msra.mxu1 %v909_v32  ;;  %v898_v60 = vld [vmem:[%s5194_s4] sm:$0xff]  ;;  %v279_v26 = vld [vmem:[%s4025_s13 + $0xd8] sm:$0xff] }
  0x20   : > { %919 = vmatpush.msra.mxu0 %v908_v33  ;;  %3786 = vmatpush.msra.mxu3 %v910_v28  ;;  %v475_v61 = vsel %vm389_vm0, %v346_v50, %v432_v55  ;;  %v374_v62 = vadd.f32 %v4049_v46, %v327_v56  ;;  %v554_v5 = vld [vmem:[%s5193_s3 + $0x120] sm:$0xff]  ;;  %v347_v8 = vadd.f32 %v4049_v46, %v300_v4  ;;  %v3692_v63 = vld [vmem:[%s5194_s4 + $0x1f8] sm:$0xff]  ;;  %v3691_v4 = vld [vmem:[%s5194_s4 + $0x1f0] sm:$0xff] }
  0x21   : > { %3791 = vmatpush.msra.mxu2 %v908_v33  ;;  %3790 = vmatpush.msra.mxu1 %v908_v33  ;;  %v264_v27 = vld [vmem:[%s4025_s13 + $0x60] sm:$0xff] }
  0x22   : > { %920 = vmatpush.msra.mxu0 %v907_v34  ;;  %3789 = vmatpush.msra.mxu3 %v909_v32  ;;  %v460_v3 = vmul.f32 0.1, %v374_v62  ;;  %vm417_vm1 = vcmp.ge.f32.partialorder %v374_v62, 0.0  ;;  %vm390_vm2 = vcmp.ge.f32.partialorder %v347_v8, 0.0  ;;  %v318_v32 = vmul.f32 %v4033_v40, %v271_v25  ;;  %v3674_v25 = vld [vmem:[%s5194_s4 + $0x168] sm:$0xff] }
  0x23   : > { %3794 = vmatpush.msra.mxu2 %v907_v34  ;;  %3793 = vmatpush.msra.mxu1 %v907_v34 }
  0x24   : > { %921 = vmatpush.msra.mxu0 %v906_v35  ;;  %3792 = vmatpush.msra.mxu3 %v908_v33  ;;  %v503_v7 = vsel %vm417_vm1, %v374_v62, %v460_v3  ;;  %v3676_v62 = vld [vmem:[%s5194_s4 + $0x178] sm:$0xff]  ;;  %v3675_v3 = vld [vmem:[%s5194_s4 + $0x170] sm:$0xff] }
  0x25   : > { %618 = vperm.xlu1 %3835, %v529_v10   ;;  %3797 = vmatpush.msra.mxu2 %v906_v35  ;;  %v261_v10 = vld [vmem:[%s4025_s13 + $0x48] sm:$0xff] }
  0x26   : > { %708 = vperm.xlu0 %3834, %v547_v11   ;;  %668 = vperm.xlu2 %3836, %v539_v12   ;;  %v273_v11 = vld [vmem:[%s4025_s13 + $0xa8] sm:$0xff] }
  0x27   : > { %3796 = vmatpush.msra.mxu1 %v906_v35  ;;  %922 = vmatpush.msra.mxu0 %v905_v39 }
  0x28   : > { %3800 = vmatpush.msra.mxu2 %v905_v39  ;;  %3795 = vmatpush.msra.mxu3 %v907_v34  ;;  %v326_v34 = vmul.f32 %v4033_v40, %v279_v26  ;;  %v3708_v26 = vld [vmem:[%s5194_s4 + $0x278] sm:$0xff] }
  0x29   : > { %3799 = vmatpush.msra.mxu1 %v905_v39  ;;  %923 = vmatpush.msra.mxu0 %v904_v41 }
  0x2a   : > { %3803 = vmatpush.msra.mxu2 %v904_v41  ;;  %3798 = vmatpush.msra.mxu3 %v906_v35  ;;  %v311_v35 = vmul.f32 %v4033_v40, %v264_v27 }
  0x2b   : > { %3802 = vmatpush.msra.mxu1 %v904_v41  ;;  %924 = vmatpush.msra.mxu0 %v903_v43 }
  0x2c   : > { %3806 = vmatpush.msra.mxu2 %v903_v43  ;;  %3801 = vmatpush.msra.mxu3 %v905_v39  ;;  %v262_v39 = vld [vmem:[%s4025_s13 + $0x50] sm:$0xff]  ;;  %v358_v45 = vadd.f32 %v4049_v46, %v311_v35 }
  0x2d   : > { %713 = vperm.xlu1 %3835, %v548_v13   ;;  %3805 = vmatpush.msra.mxu1 %v903_v43  ;;  %v309_v52 = vmul.f32 %v4033_v40, %v262_v39  ;;  %v276_v39 = vld [vmem:[%s4025_s13 + $0xc0] sm:$0xff] }
  0x2e   : > { %573 = vperm.xlu0 %3834, %v520_v14   ;;  %623 = vperm.xlu2 %3836, %v530_v15   ;;  %v317_v14 = vmul.f32 %v4033_v40, %v270_v9  ;;  %v308_v15 = vmul.f32 %v4033_v40, %v261_v10  ;;  %vm401_vm8 = vcmp.ge.f32.partialorder %v358_v45, 0.0  ;;  %v281_v9 = vld [vmem:[%s4025_s13 + $0xe8] sm:$0xff]  ;;  %v256_v10 = vld [vmem:[%s4025_s13 + $0x20] sm:$0xff] }
  0x2f   : > { %925 = vmatpush.msra.mxu0 %v902_v49  ;;  %3809 = vmatpush.msra.mxu2 %v902_v49 }
  0x30   : > { %3808 = vmatpush.msra.mxu1 %v902_v49  ;;  %3804 = vmatpush.msra.mxu3 %v904_v41  ;;  %v272_v41 = vld [vmem:[%s4025_s13 + $0xa0] sm:$0xff] }
  0x31   : > { %926 = vmatpush.msra.mxu0 %v901_v51  ;;  %3812 = vmatpush.msra.mxu2 %v901_v51 }
  0x32   : > { %3811 = vmatpush.msra.mxu1 %v901_v51  ;;  %3807 = vmatpush.msra.mxu3 %v903_v43 }
  0x33   : > { %927 = vmatpush.msra.mxu0 %v900_v53  ;;  %3815 = vmatpush.msra.mxu2 %v900_v53 }
  0x34   : > { %3814 = vmatpush.msra.mxu1 %v900_v53  ;;  %3810 = vmatpush.msra.mxu3 %v902_v49 }
  0x35   : > { %578 = vperm.xlu1 %3835, %v521_v16   ;;  %928 = vmatpush.msra.mxu0 %v899_v57  ;;  %v558_v16 = vld [vmem:[%s5193_s3 + $0x140] sm:$0xff] }
  0x36   : > { %673 = vperm.xlu0 %3834, %v540_v17   ;;  %718 = vperm.xlu2 %3836, %v549_v18   ;;  %v433_v17 = vmul.f32 0.1, %v347_v8  ;;  %v320_v18 = vmul.f32 %v4033_v40, %v273_v11 }
  0x37   : > { %3818 = vmatpush.msra.mxu2 %v899_v57  ;;  %3817 = vmatpush.msra.mxu1 %v899_v57 }
  0x38   : > { %929 = vmatpush.msra.mxu0 %v898_v60  ;;  %3813 = vmatpush.msra.mxu3 %v901_v51 }
  0x39   : > { %3821 = vmatpush.msra.mxu2 %v898_v60  ;;  %3820 = vmatpush.msra.mxu1 %v898_v60 }
  0x3a   : > { %3816 = vmatpush.msra.mxu3 %v900_v53  ;;  %v319_v53 = vmul.f32 %v4033_v40, %v272_v41  ;;  %1986 = vmatpush.msrb.mxu0 %v3708_v26  ;;  %v3704_v26 = vld [vmem:[%s5194_s4 + $0x258] sm:$0xff] }
  0x3b   : > { %1414 = vmatpush.msrb.mxu2 %v3676_v62 }
  0x3c   : > { %3819 = vmatpush.msra.mxu3 %v899_v57 }
  0x3d   : > { %678 = vperm.xlu1 %3835, %v541_v19   ;;  %v557_v19 = vld [vmem:[%s5193_s3 + $0x138] sm:$0xff]  ;;  %1415 = vmatpush.msrb.mxu2 %v3675_v3 }
  0x3e   : > { %628 = vperm.xlu0 %3834, %v531_v20   ;;  %583 = vperm.xlu2 %3836, %v522_v21   ;;  %v559_v20 = vld [vmem:[%s5193_s3 + $0x148] sm:$0xff]  ;;  %v364_v21 = vadd.f32 %v4049_v46, %v317_v14 }
  0x3f   : > { %3822 = vmatpush.msra.mxu3 %v898_v60  ;;  %v356_v60 = vadd.f32 %v4049_v46, %v309_v52  ;;  %1416 = vmatpush.msrb.mxu2 %v3674_v25  ;;  %v323_v52 = vmul.f32 %v4033_v40, %v276_v39  ;;  %v3670_v25 = vld [vmem:[%s5194_s4 + $0x148] sm:$0xff] }
  0x40   : > { %vm407_vm4 = vcmp.ge.f32.partialorder %v364_v21, 0.0 }
  0x41   : > { %1700 = vmatpush.msrb.mxu3 %v3692_v63  ;;  %vm399_vm9 = vcmp.ge.f32.partialorder %v356_v60, 0.0 }
  0x43   : > { %1701 = vmatpush.msrb.mxu3 %v3691_v4  ;;  %v274_v4 = vld [vmem:[%s4025_s13 + $0xb0] sm:$0xff] }
  0x45   : > { %633 = vperm.xlu1 %3835, %v532_v22   ;;  %v355_v22 = vadd.f32 %v4049_v46, %v308_v15  ;;  %v442_v15 = vmul.f32 0.1, %v356_v60 }
  0x46   : > { %723 = vperm.xlu0 %3834, %v550_v23   ;;  %683 = vperm.xlu2 %3836, %v542_v24   ;;  %v476_v23 = vsel %vm390_vm2, %v347_v8, %v433_v17  ;;  %v367_v24 = vadd.f32 %v4049_v46, %v320_v18 }
  0x47   : > { %vm398_vm3 = vcmp.ge.f32.partialorder %v355_v22, 0.0  ;;  %v485_v27 = vsel %vm399_vm9, %v356_v60, %v442_v15  ;;  %v3688_v60 = vld [vmem:[%s5194_s4 + $0x1d8] sm:$0xff] }
  0x48   : > { %v453_v33 = vmul.f32 0.1, %v367_v24  ;;  %vm410_vm5 = vcmp.ge.f32.partialorder %v367_v24, 0.0 }
  0x4a   : > { %v496_v43 = vsel %vm410_vm5, %v367_v24, %v453_v33  ;;  %v3659_v24 = vld [vmem:[%s5194_s4 + $0xf0] sm:$0xff] }
  0x4d   : > { %728 = vperm.xlu1 %3835, %v551_v29  }
  0x4e   : > { %588 = vperm.xlu0 %3834, %v523_v30   ;;  %638 = vperm.xlu2 %3836, %v533_v31   ;;  %v450_v30 = vmul.f32 0.1, %v364_v21  ;;  %v441_v31 = vmul.f32 0.1, %v355_v22 }
  0x50   : > { %v493_v42 = vsel %vm407_vm4, %v364_v21, %v450_v30  ;;  %v328_v21 = vmul.f32 %v4033_v40, %v281_v9  ;;  %v3690_v30 = vld [vmem:[%s5194_s4 + $0x1e8] sm:$0xff] }
  0x51   : > { %1702 = vmatpush.msrb.mxu3 %v3690_v30 }
  0x55   : > { %593 = vperm.xlu1 %3835, %v524_v36   ;;  %v560_v36 = vld [vmem:[%s5193_s3 + $0x150] sm:$0x3f] }
  0x56   : > { %688 = vperm.xlu0 %3834, %v543_v37   ;;  %733 = vperm.xlu2 %3836, %v552_v38   ;;  %v484_v37 = vsel %vm398_vm3, %v355_v22, %v441_v31  ;;  %v365_v38 = vadd.f32 %v4049_v46, %v318_v32  ;;  %v303_v22 = vmul.f32 %v4033_v40, %v256_v10  ;;  %v3658_v31 = vld [vmem:[%s5194_s4 + $0xe8] sm:$0xff]  ;;  %v3673_v32 = vld [vmem:[%s5194_s4 + $0x160] sm:$0xff] }
  0x57   : > { %1417 = vmatpush.msrb.mxu2 %v3673_v32  ;;  %v3654_v32 = vld [vmem:[%s5194_s4 + $0xc8] sm:$0xff] }
  0x58   : > { %v451_v56 = vmul.f32 0.1, %v365_v38  ;;  %vm408_vm6 = vcmp.ge.f32.partialorder %v365_v38, 0.0  ;;  %v350_v35 = vadd.f32 %v4049_v46, %v303_v22  ;;  %v3655_v22 = vld [vmem:[%s5194_s4 + $0xd0] sm:$0xff] }
  0x5a   : > { %vm393_vm14 = vcmp.ge.f32.partialorder %v350_v35, 0.0 }
  0x5d   : > { %693 = vperm.xlu1 %3835, %v544_v44   ;;  %v373_v44 = vadd.f32 %v4049_v46, %v326_v34  ;;  %v375_v34 = vadd.f32 %v4049_v46, %v328_v21  ;;  %v3687_v21 = vld [vmem:[%s5194_s4 + $0x1d0] sm:$0xff] }
  0x5e   : > { %643 = vperm.xlu0 %3834, %v534_v47   ;;  %598 = vperm.xlu2 %3836, %v525_v48   ;;  %v283_v47 = vld [vmem:[%s4025_s13 + $0xf8] sm:$0xff] }
  0x5f   : > { %v330_v57 = vmul.f32 %v4033_v40, %v283_v47  ;;  %vm416_vm7 = vcmp.ge.f32.partialorder %v373_v44, 0.0  ;;  %vm418_vm13 = vcmp.ge.f32.partialorder %v375_v34, 0.0 }
  0x65   : > { %648 = vperm.xlu1 %3835, %v535_v54  }
  0x66   : > { %738 = vperm.xlu0 %3834, %v553_v58   ;;  %603 = vperm.xlu2 %3836, %v526_v59   ;;  %v459_v58 = vmul.f32 0.1, %v373_v44  ;;  %v444_v59 = vmul.f32 0.1, %v358_v45 }
  0x68   : > { %v564_v0 = vpop.permute.xlu2 %563 }
  0x69   : > { %v776_v1 = vmul.f32 %v564_v0, %v475_v61  ;;  %v366_v61 = vadd.f32 %v4049_v46, %v319_v53  ;;  %v3660_v0 = vld [vmem:[%s5194_s4 + $0xf8] sm:$0xff] }
  0x6a   : > { %1128 = vmatpush.msrb.mxu1 %v3660_v0  ;;  %v370_v0 = vadd.f32 %v4049_v46, %v323_v52  ;;  %v3703_v52 = vld [vmem:[%s5194_s4 + $0x250] sm:$0xff] }
  0x6b   : > { %819 = vst [vmem:[#allocation2] sm:$0xff] %v776_v1  ;;  %930 = vmatmul.f32.vlgmr.msra.gmra.mxu0 %v776_v1  ;;  %v494_v1 = vsel %vm408_vm6, %v365_v38, %v451_v56  ;;  %vm409_vm10 = vcmp.ge.f32.partialorder %v366_v61, 0.0  ;;  %v3657_v56 = vld [vmem:[%s5194_s4 + $0xe0] sm:$0xff] }
  0x6c   : > { %1129 = vmatpush.msrb.mxu1 %v3659_v24  ;;  %v456_v15 = vmul.f32 0.1, %v370_v0  ;;  %vm413_vm1 = vcmp.ge.f32.partialorder %v370_v0, 0.0 }
  0x6d   : > { %748 = vperm.xlu1 %3835, %v555_v2   ;;  %v377_v2 = vadd.f32 %v4049_v46, %v330_v57  ;;  %v3672_v57 = vld [vmem:[%s5194_s4 + $0x158] sm:$0xff] }
  0x6e   : > { %743 = vperm.xlu0 %3834, %v554_v5   ;;  %753 = vperm.xlu2 %3836, %v556_v6   ;;  %v502_v5 = vsel %vm416_vm7, %v373_v44, %v459_v58  ;;  %v487_v6 = vsel %vm401_vm8, %v358_v45, %v444_v59 }
  0x6f   : > { %vm420_vm11 = vcmp.ge.f32.partialorder %v377_v2, 0.0  ;;  %1130 = vmatpush.msrb.mxu1 %v3658_v31  ;;  %1418 = vmatpush.msrb.mxu2 %v3672_v57  ;;  %v265_v31 = vld [vmem:[%s4025_s13 + $0x68] sm:$0xff]  ;;  %v3668_v57 = vld [vmem:[%s5194_s4 + $0x138] sm:$0xff] }
  0x70   : > { %v704_v12 = vpop.permute.xlu2 %703 }
  0x71   : > { %v4100_v13 = vmul.f32 %v704_v12, %v503_v7  ;;  %v263_v7 = vld [vmem:[%s4025_s13 + $0x58] sm:$0xff]  ;;  %1131 = vmatpush.msrb.mxu1 %v3657_v56  ;;  %v3653_v56 = vld [vmem:[%s5194_s4 + $0xc0] sm:$0xff] }
  0x73   : > { %847 = vst [vmem:[#allocation2 + $0xe0] sm:$0xff] %v4100_v13 }
  0x75   : > { %763 = vperm.xlu1 %3835, %v558_v16   ;;  %v452_v16 = vmul.f32 0.1, %v366_v61 }
  0x76   : > { %758 = vperm.xlu0 %3834, %v557_v19   ;;  %768 = vperm.xlu2 %3836, %v559_v20   ;;  %v463_v19 = vmul.f32 0.1, %v377_v2  ;;  %v310_v20 = vmul.f32 %v4033_v40, %v263_v7 }
  0x78   : > { %v569_v28 = vpop.permute.xlu2 %568  ;;  %v506_v33 = vsel %vm420_vm11, %v377_v2, %v463_v19  ;;  %v3671_v2 = vld [vmem:[%s5194_s4 + $0x150] sm:$0xff]  ;;  %v275_v19 = vld [vmem:[%s4025_s13 + $0xb8] sm:$0xff] }
  0x79   : > { %v777_v29 = vmul.f32 %v569_v28, %v476_v23  ;;  %v282_v23 = vld [vmem:[%s4025_s13 + $0xf0] sm:$0xff]  ;;  %v495_v28 = vsel %vm409_vm10, %v366_v61, %v452_v16  ;;  %v3656_v61 = vld [vmem:[%s5194_s4 + $0xd8] sm:$0xff]  ;;  %1419 = vmatpush.msrb.mxu2 %v3671_v2  ;;  %v321_v16 = vmul.f32 %v4033_v40, %v274_v4 }
  0x7a   : > { %v329_v44 = vmul.f32 %v4033_v40, %v282_v23  ;;  %1132 = vmatpush.msrb.mxu1 %v3656_v61  ;;  %v3684_v61 = vld [vmem:[%s5194_s4 + $0x1b8] sm:$0xff] }
  0x7b   : > { %820 = vst [vmem:[#allocation2 + $0x8] sm:$0xff] %v777_v29  ;;  %933 = vmatmul.f32.gmra.mxu0 %v777_v29  ;;  %v357_v29 = vadd.f32 %v4049_v46, %v310_v20  ;;  %v3705_v20 = vld [vmem:[%s5194_s4 + $0x260] sm:$0xff]  ;;  %1420 = vmatpush.msrb.mxu2 %v3670_v25 }
  0x7c   : > { %v376_v53 = vadd.f32 %v4049_v46, %v329_v44  ;;  %1133 = vmatpush.msrb.mxu1 %v3655_v22  ;;  %v3651_v22 = vld [vmem:[%s5194_s4 + $0xb0] sm:$0xff] }
  0x7d   : > { %vm400_vm12 = vcmp.ge.f32.partialorder %v357_v29, 0.0 }
  0x7e   : > { %773 = vperm.xlu0 %3834, %v560_v36   ;;  %v254_v36 = vld [vmem:[%s4025_s13 + $0x10] sm:$0xff]  ;;  %vm419_vm15 = vcmp.ge.f32.partialorder %v376_v53, 0.0  ;;  %v462_v9 = vmul.f32 0.1, %v376_v53  ;;  %1134 = vmatpush.msrb.mxu1 %v3654_v32 }
  0x7f   : > { %v609_v48 = vpop.permute.xlu1 %608 }
  0x80   : > { %v654_v49 = vpop.permute.xlu0 %653  ;;  %v785_v50 = vmul.f32 %v609_v48, %v484_v37  ;;  %v669_v51 = vpop.permute.xlu2 %668  ;;  %v3707_v37 = vld [vmem:[%s5194_s4 + $0x270] sm:$0xff]  ;;  %v443_v48 = vmul.f32 0.1, %v357_v29  ;;  %v505_v23 = vsel %vm419_vm15, %v376_v53, %v462_v9  ;;  %v3685_v53 = vld [vmem:[%s5194_s4 + $0x1c0] sm:$0xff]  ;;  %1135 = vmatpush.msrb.mxu1 %v3653_v56 }
  0x81   : > { %v794_v54 = vmul.f32 %v654_v49, %v493_v42  ;;  %v4135_v55 = vmul.f32 %v669_v51, %v496_v43  ;;  %1987 = vmatpush.msrb.mxu0 %v3707_v37  ;;  %v301_v49 = vmul.f32 %v4033_v40, %v254_v36  ;;  %v436_v51 = vmul.f32 0.1, %v350_v35 }
  0x82   : > { %828 = vst [vmem:[#allocation2 + $0x48] sm:$0xff] %v785_v50  ;;  %957 = vmatmul.f32.vlgmr.msra.gmra.mxu1 %v785_v50  ;;  %v461_v50 = vmul.f32 0.1, %v375_v34  ;;  %v486_v58 = vsel %vm400_vm12, %v357_v29, %v443_v48  ;;  %v368_v29 = vadd.f32 %v4049_v46, %v321_v16  ;;  %v3652_v16 = vld [vmem:[%s5194_s4 + $0xb8] sm:$0xff] }
  0x83   : > { %837 = vst [vmem:[#allocation2 + $0x90] sm:$0xff] %v794_v54  ;;  %984 = vmatmul.f32.vlgmr.msra.gmra.mxu2 %v794_v54  ;;  %v3689_v54 = vld [vmem:[%s5194_s4 + $0x1e0] sm:$0xff]  ;;  %v348_v59 = vadd.f32 %v4049_v46, %v301_v49  ;;  %v479_v63 = vsel %vm393_vm14, %v350_v35, %v436_v51  ;;  %v266_v49 = vld [vmem:[%s4025_s13 + $0x70] sm:$0xff]  ;;  %1136 = vmatpush.msrb.mxu1 %v3652_v16 }
  0x84   : > { %840 = vst [vmem:[#allocation2 + $0xa8] sm:$0xff] %v4135_v55  ;;  %1703 = vmatpush.msrb.mxu3 %v3689_v54  ;;  %v504_v62 = vsel %vm418_vm13, %v375_v34, %v461_v50  ;;  %v286_v34 = vld [vmem:[%s4025_s13 + $0x110] sm:$0xff]  ;;  %v454_v44 = vmul.f32 0.1, %v368_v29  ;;  %vm411_vm3 = vcmp.ge.f32.partialorder %v368_v29, 0.0  ;;  %v3669_v51 = vld [vmem:[%s5194_s4 + $0x140] sm:$0xff]  ;;  %v313_v4 = vmul.f32 %v4033_v40, %v266_v49 }
  0x85   : > { %vm391_vm0 = vcmp.ge.f32.partialorder %v348_v59, 0.0  ;;  %v333_v48 = vmul.f32 %v4033_v40, %v286_v34  ;;  %1421 = vmatpush.msrb.mxu2 %v3669_v51  ;;  %1137 = vmatpush.msrb.mxu1 %v3651_v22  ;;  %v3650_v49 = vld [vmem:[%s5194_s4 + $0xa8] sm:$0xff]  ;;  %v3679_v16 = vld [vmem:[%s5194_s4 + $0x190] sm:$0xff] }
  0x86   : > { %1704 = vmatpush.msrb.mxu3 %v3688_v60 }
  0x87   : > { %v659_v8 = vpop.permute.xlu1 %658  ;;  %v380_v60 = vadd.f32 %v4049_v46, %v333_v48  ;;  %1422 = vmatpush.msrb.mxu2 %v3668_v57  ;;  %1138 = vmatpush.msrb.mxu1 %v3650_v49 }
  0x88   : > { %v699_v11 = vpop.permute.xlu0 %698  ;;  %v795_v12 = vmul.f32 %v659_v8, %v494_v1  ;;  %v624_v14 = vpop.permute.xlu2 %623  ;;  %v255_v1 = vld [vmem:[%s4025_s13 + $0x18] sm:$0xff]  ;;  %1705 = vmatpush.msrb.mxu3 %v3687_v21 }
  0x89   : > { %v803_v17 = vmul.f32 %v699_v11, %v502_v5  ;;  %v4160_v18 = vmul.f32 %v624_v14, %v487_v6  ;;  %v267_v5 = vld [vmem:[%s4025_s13 + $0x78] sm:$0xff]  ;;  %v302_v14 = vmul.f32 %v4033_v40, %v255_v1  ;;  %v466_v9 = vmul.f32 0.1, %v380_v60 }
  0x8a   : > { %838 = vst [vmem:[#allocation2 + $0x98] sm:$0xff] %v795_v12  ;;  %vm423_vm7 = vcmp.ge.f32.partialorder %v380_v60, 0.0 }
  0x8b   : > { %846 = vst [vmem:[#allocation2 + $0xd8] sm:$0xff] %v803_v17  ;;  %987 = vmatmul.f32.gmra.mxu2 %v795_v12  ;;  %1011 = vmatmul.f32.vlgmr.msra.gmra.mxu3 %v803_v17  ;;  %v434_v12 = vmul.f32 0.1, %v348_v59  ;;  %v314_v17 = vmul.f32 %v4033_v40, %v267_v5  ;;  %v349_v24 = vadd.f32 %v4049_v46, %v302_v14  ;;  %v285_v14 = vld [vmem:[%s4025_s13 + $0x108] sm:$0xff] }
  0x8c   : > { %831 = vst [vmem:[#allocation2 + $0x60] sm:$0xff] %v4160_v18  ;;  %v332_v34 = vmul.f32 %v4033_v40, %v285_v14  ;;  %v3680_v14 = vld [vmem:[%s5194_s4 + $0x198] sm:$0xff] }
  0x8d   : > { %v361_v30 = vadd.f32 %v4049_v46, %v314_v17  ;;  %vm392_vm2 = vcmp.ge.f32.partialorder %v349_v24, 0.0  ;;  %v3667_v17 = vld [vmem:[%s5194_s4 + $0x130] sm:$0xff] }
  0x8e   : > { %1423 = vmatpush.msrb.mxu2 %v3667_v17  ;;  %v379_v48 = vadd.f32 %v4049_v46, %v332_v34 }
  0x8f   : > { %v664_v38 = vpop.permute.xlu1 %663  ;;  %vm404_vm4 = vcmp.ge.f32.partialorder %v361_v30, 0.0 }
  0x90   : > { %v614_v41 = vpop.permute.xlu0 %613  ;;  %v796_v42 = vmul.f32 %v664_v38, %v495_v28  ;;  %v719_v43 = vpop.permute.xlu2 %718  ;;  %v499_v28 = vsel %vm413_vm1, %v370_v0, %v456_v15  ;;  %v322_v38 = vmul.f32 %v4033_v40, %v275_v19  ;;  %v259_v0 = vld [vmem:[%s4025_s13 + $0x38] sm:$0xff]  ;;  %v360_v15 = vadd.f32 %v4049_v46, %v313_v4  ;;  %v3701_v19 = vld [vmem:[%s5194_s4 + $0x240] sm:$0xff] }
  0x91   : > { %v786_v45 = vmul.f32 %v614_v41, %v485_v27  ;;  %v4195_v47 = vmul.f32 %v719_v43, %v506_v33  ;;  %v3686_v27 = vld [vmem:[%s5194_s4 + $0x1c8] sm:$0xff]  ;;  %v312_v43 = vmul.f32 %v4033_v40, %v265_v31  ;;  %vm422_vm11 = vcmp.ge.f32.partialorder %v379_v48, 0.0 }
  0x92   : > { %839 = vst [vmem:[#allocation2 + $0xa0] sm:$0xff] %v796_v42  ;;  %1706 = vmatpush.msrb.mxu3 %v3686_v27  ;;  %v369_v50 = vadd.f32 %v4049_v46, %v322_v38  ;;  %v3700_v27 = vld [vmem:[%s5194_s4 + $0x238] sm:$0xff]  ;;  %vm403_vm8 = vcmp.ge.f32.partialorder %v360_v15, 0.0  ;;  %v465_v4 = vmul.f32 0.1, %v379_v48 }
  0x93   : > { %829 = vst [vmem:[#allocation2 + $0x50] sm:$0xff] %v786_v45  ;;  %960 = vmatmul.f32.gmra.mxu1 %v786_v45  ;;  %990 = vmatmul.f32.gmra.mxu2 %v796_v42  ;;  %v435_v42 = vmul.f32 0.1, %v349_v24  ;;  %v447_v45 = vmul.f32 0.1, %v361_v30  ;;  %v359_v54 = vadd.f32 %v4049_v46, %v312_v43 }
  0x94   : > { %850 = vst [vmem:[#allocation2 + $0xf8] sm:$0xff] %v4195_v47  ;;  %1014 = vmatmul.f32.gmra.mxu3 %v4100_v13  ;;  %v3706_v13 = vld [vmem:[%s5194_s4 + $0x268] sm:$0xff]  ;;  %vm412_vm5 = vcmp.ge.f32.partialorder %v369_v50, 0.0 }
  0x95   : > { %1988 = vmatpush.msrb.mxu0 %v3706_v13  ;;  %v490_v13 = vsel %vm404_vm4, %v361_v30, %v447_v45  ;;  %1707 = vmatpush.msrb.mxu3 %v3685_v53  ;;  %vm402_vm6 = vcmp.ge.f32.partialorder %v359_v54, 0.0  ;;  %v260_v30 = vld [vmem:[%s4025_s13 + $0x40] sm:$0xff]  ;;  %v258_v45 = vld [vmem:[%s4025_s13 + $0x30] sm:$0xff] }
  0x96   : > { %v307_v43 = vmul.f32 %v4033_v40, %v260_v30  ;;  %v3649_v53 = vld [vmem:[%s5194_s4 + $0xa0] sm:$0xff] }
  0x97   : > { %v619_v3 = vpop.permute.xlu1 %618  ;;  %1989 = vmatpush.msrb.mxu0 %v3705_v20  ;;  %1708 = vmatpush.msrb.mxu3 %v3684_v61  ;;  %v290_v61 = vld [vmem:[%s4025_s13 + $0x130] sm:$0xff] }
  0x98   : > { %v709_v6 = vpop.permute.xlu0 %708  ;;  %v787_v7 = vmul.f32 %v619_v3, %v486_v58  ;;  %v584_v8 = vpop.permute.xlu2 %583  ;;  %v3702_v58 = vld [vmem:[%s5194_s4 + $0x248] sm:$0xff]  ;;  %1139 = vmatpush.msrb.mxu1 %v3649_v53  ;;  %v287_v53 = vld [vmem:[%s4025_s13 + $0x118] sm:$0xff] }
  0x99   : > { %v805_v10 = vmul.f32 %v709_v6, %v504_v62  ;;  %v4230_v11 = vmul.f32 %v584_v8, %v479_v63  ;;  %1990 = vmatpush.msrb.mxu0 %v3704_v26  ;;  %v284_v63 = vld [vmem:[%s4025_s13 + $0x100] sm:$0xff]  ;;  %v445_v8 = vmul.f32 0.1, %v359_v54  ;;  %v257_v26 = vld [vmem:[%s4025_s13 + $0x28] sm:$0xff] }
  0x9a   : > { %830 = vst [vmem:[#allocation2 + $0x58] sm:$0xff] %v787_v7  ;;  %v304_v38 = vmul.f32 %v4033_v40, %v257_v26  ;;  %v268_v26 = vld [vmem:[%s4025_s13 + $0x80] sm:$0xff] }
  0x9b   : > { %848 = vst [vmem:[#allocation2 + $0xe8] sm:$0xff] %v805_v10  ;;  %963 = vmatmul.f32.gmra.mxu1 %v787_v7  ;;  %993 = vmatmul.f32.gmra.mxu2 %v4135_v55  ;;  %v477_v55 = vsel %vm391_vm0, %v348_v59, %v434_v12  ;;  %v497_v59 = vsel %vm411_vm3, %v368_v29, %v454_v44  ;;  %v455_v7 = vmul.f32 0.1, %v369_v50  ;;  %v3665_v44 = vld [vmem:[%s5194_s4 + $0x120] sm:$0xff] }
  0x9c   : > { %823 = vst [vmem:[#allocation2 + $0x20] sm:$0xff] %v4230_v11  ;;  %1017 = vmatmul.f32.gmra.mxu3 %v805_v10  ;;  %1991 = vmatpush.msrb.mxu0 %v3703_v52  ;;  %v331_v10 = vmul.f32 %v4033_v40, %v284_v63  ;;  %v306_v12 = vmul.f32 %v4033_v40, %v259_v0 }
  0x9d   : > { %v498_v20 = vsel %vm412_vm5, %v369_v50, %v455_v7  ;;  %v488_v21 = vsel %vm402_vm6, %v359_v54, %v445_v8  ;;  %v3699_v50 = vld [vmem:[%s5194_s4 + $0x230] sm:$0xff]  ;;  %v351_v52 = vadd.f32 %v4049_v46, %v304_v38  ;;  %v3698_v54 = vld [vmem:[%s5194_s4 + $0x228] sm:$0xff] }
  0x9e   : > { %1992 = vmatpush.msrb.mxu0 %v3702_v58  ;;  %v353_v25 = vadd.f32 %v4049_v46, %v306_v12  ;;  %v354_v58 = vadd.f32 %v4049_v46, %v307_v43  ;;  %v3662_v12 = vld [vmem:[%s5194_s4 + $0x108] sm:$0xff]  ;;  %v315_v43 = vmul.f32 %v4033_v40, %v268_v26 }
  0x9f   : > { %v714_v33 = vpop.permute.xlu1 %713  ;;  %vm394_vm12 = vcmp.ge.f32.partialorder %v351_v52, 0.0  ;;  %v3694_v38 = vld [vmem:[%s5194_s4 + $0x208] sm:$0xff] }
  0xa0   : > { %v806_v35 = vmul.f32 %v714_v33, %v505_v23  ;;  %v574_v36 = vpop.permute.xlu0 %573  ;;  %v684_v37 = vpop.permute.xlu2 %683  ;;  %v3666_v23 = vld [vmem:[%s5194_s4 + $0x128] sm:$0xff]  ;;  %1993 = vmatpush.msrb.mxu0 %v3701_v19  ;;  %vm396_vm10 = vcmp.ge.f32.partialorder %v353_v25, 0.0  ;;  %v440_v7 = vmul.f32 0.1, %v354_v58  ;;  %vm397_vm13 = vcmp.ge.f32.partialorder %v354_v58, 0.0  ;;  %v3647_v19 = vld [vmem:[%s5194_s4 + $0x90] sm:$0xff] }
  0xa1   : > { %v778_v39 = vmul.f32 %v574_v36, %v477_v55  ;;  %v4267_v41 = vmul.f32 %v684_v37, %v499_v28  ;;  %v509_v55 = vsel %vm423_vm7, %v380_v60, %v466_v9  ;;  %v3682_v28 = vld [vmem:[%s5194_s4 + $0x1a8] sm:$0xff]  ;;  %1424 = vmatpush.msrb.mxu2 %v3666_v23  ;;  %v446_v37 = vmul.f32 0.1, %v360_v15 }
  0xa2   : > { %849 = vst [vmem:[#allocation2 + $0xf0] sm:$0xff] %v806_v35  ;;  %1994 = vmatpush.msrb.mxu0 %v3700_v27  ;;  %v277_v60 = vld [vmem:[%s4025_s13 + $0xc8] sm:$0xff]  ;;  %v337_v9 = vmul.f32 %v4033_v40, %v290_v61  ;;  %v483_v22 = vsel %vm397_vm13, %v354_v58, %v440_v7  ;;  %v3695_v27 = vld [vmem:[%s5194_s4 + $0x210] sm:$0xff] }
  0xa3   : > { %821 = vst [vmem:[#allocation2 + $0x10] sm:$0xff] %v778_v39  ;;  %936 = vmatmul.f32.gmra.mxu0 %v778_v39  ;;  %966 = vmatmul.f32.gmra.mxu1 %v4160_v18  ;;  %v478_v18 = vsel %vm392_vm2, %v349_v24, %v435_v42  ;;  %v378_v24 = vadd.f32 %v4049_v46, %v331_v10  ;;  %v439_v42 = vmul.f32 0.1, %v353_v25  ;;  %v3697_v10 = vld [vmem:[%s5194_s4 + $0x220] sm:$0xff] }
  0xa4   : > { %843 = vst [vmem:[#allocation2 + $0xc0] sm:$0xff] %v4267_v41  ;;  %1020 = vmatmul.f32.gmra.mxu3 %v806_v35  ;;  %v489_v51 = vsel %vm403_vm8, %v360_v15, %v446_v37  ;;  %1425 = vmatpush.msrb.mxu2 %v3665_v44  ;;  %v324_v8 = vmul.f32 %v4033_v40, %v277_v60  ;;  %v3648_v15 = vld [vmem:[%s5194_s4 + $0x98] sm:$0xff]  ;;  %v3677_v44 = vld [vmem:[%s5194_s4 + $0x180] sm:$0xff] }
  0xa5   : > { %v464_v39 = vmul.f32 0.1, %v378_v24  ;;  %vm421_vm9 = vcmp.ge.f32.partialorder %v378_v24, 0.0  ;;  %v482_v57 = vsel %vm396_vm10, %v353_v25, %v439_v42  ;;  %1995 = vmatpush.msrb.mxu0 %v3699_v50  ;;  %1140 = vmatpush.msrb.mxu1 %v3648_v15 }
  0xa6   : > { %v371_v23 = vadd.f32 %v4049_v46, %v324_v8  ;;  %v289_v8 = vld [vmem:[%s4025_s13 + $0x128] sm:$0xff] }
  0xa7   : > { %v579_v62 = vpop.permute.xlu1 %578  ;;  %v507_v56 = vsel %vm421_vm9, %v378_v24, %v464_v39  ;;  %1996 = vmatpush.msrb.mxu0 %v3698_v54  ;;  %v278_v24 = vld [vmem:[%s4025_s13 + $0xd0] sm:$0xff]  ;;  %1141 = vmatpush.msrb.mxu1 %v3647_v19 }
  0xa8   : > { %v779_v1 = vmul.f32 %v579_v62, %v478_v18  ;;  %v674_v2 = vpop.permute.xlu0 %673  ;;  %v639_v3 = vpop.permute.xlu2 %638  ;;  %v3664_v18 = vld [vmem:[%s5194_s4 + $0x118] sm:$0xff]  ;;  %v325_v37 = vmul.f32 %v4033_v40, %v278_v24  ;;  %v457_v39 = vmul.f32 0.1, %v371_v23  ;;  %vm414_vm15 = vcmp.ge.f32.partialorder %v371_v23, 0.0 }
  0xa9   : > { %v798_v5 = vmul.f32 %v674_v2, %v497_v59  ;;  %v4304_v6 = vmul.f32 %v639_v3, %v490_v13  ;;  %v3663_v59 = vld [vmem:[%s5194_s4 + $0x110] sm:$0xff]  ;;  %1426 = vmatpush.msrb.mxu2 %v3664_v18  ;;  %1997 = vmatpush.msrb.mxu0 %v3697_v10  ;;  %v288_v10 = vld [vmem:[%s4025_s13 + $0x120] sm:$0xff] }
  0xaa   : > { %822 = vst [vmem:[#allocation2 + $0x18] sm:$0xff] %v779_v1  ;;  %v372_v49 = vadd.f32 %v4049_v46, %v325_v37  ;;  %v1361_v37 = vld [vmem:[#allocation2 + $0x2] sm:$0xff] }
  0xab   : > { %841 = vst [vmem:[#allocation2 + $0xb0] sm:$0xff] %v798_v5  ;;  %939 = vmatmul.f32.gmra.mxu0 %v779_v1  ;;  %996 = vmatmul.f32.gmra.mxu2 %v798_v5  ;;  %v305_v1 = vmul.f32 %v4033_v40, %v258_v45  ;;  %v437_v5 = vmul.f32 0.1, %v351_v52  ;;  %v3645_v45 = vld [vmem:[%s5194_s4 + $0x80] sm:$0xff] }
  0xac   : > { %834 = vst [vmem:[#allocation2 + $0x78] sm:$0xff] %v4304_v6  ;;  %1023 = vmatmul.f32.gmra.mxu3 %v4195_v47  ;;  %v3683_v47 = vld [vmem:[%s5194_s4 + $0x1b0] sm:$0xff]  ;;  %1427 = vmatpush.msrb.mxu2 %v3663_v59  ;;  %v3693_v40 = vld [vmem:[%s5194_s4 + $0x200] sm:$0xff]  ;;  %v458_v59 = vmul.f32 0.1, %v372_v49  ;;  %vm415_vm1 = vcmp.ge.f32.partialorder %v372_v49, 0.0 }
  0xad   : > { %1709 = vmatpush.msrb.mxu3 %v3683_v47  ;;  %v352_v17 = vadd.f32 %v4049_v46, %v305_v1  ;;  %v480_v47 = vsel %vm394_vm12, %v351_v52, %v437_v5 }
  0xae   : > { %1428 = vmatpush.msrb.mxu2 %v3662_v12  ;;  %v501_v1 = vsel %vm415_vm1, %v372_v49, %v458_v59 }
  0xaf   : > { %v679_v29 = vpop.permute.xlu1 %678  ;;  %1710 = vmatpush.msrb.mxu3 %v3682_v28  ;;  %vm395_vm14 = vcmp.ge.f32.partialorder %v352_v17, 0.0 }
  0xb0   : > { %v799_v31 = vmul.f32 %v679_v29, %v498_v20  ;;  %v629_v32 = vpop.permute.xlu0 %628  ;;  %v734_v33 = vpop.permute.xlu2 %733  ;;  %v3696_v20 = vld [vmem:[%s5194_s4 + $0x218] sm:$0xff] }
  0xb1   : > { %v789_v35 = vmul.f32 %v629_v32, %v488_v21  ;;  %v4344_v36 = vmul.f32 %v734_v33, %v509_v55  ;;  %v508_v21 = vsel %vm422_vm11, %v379_v48, %v465_v4  ;;  %v384_v55 = vadd.f32 %v4049_v46, %v337_v9  ;;  %1998 = vmatpush.msrb.mxu0 %v3696_v20  ;;  %v3646_v32 = vld [vmem:[%s5194_s4 + $0x88] sm:$0xff] }
  0xb2   : > { %842 = vst [vmem:[#allocation2 + $0xb8] sm:$0xff] %v799_v31  ;;  %1142 = vmatpush.msrb.mxu1 %v3646_v32 }
  0xb3   : > { %832 = vst [vmem:[#allocation2 + $0x68] sm:$0xff] %v789_v35  ;;  %942 = vmatmul.f32.gmra.mxu0 %v4230_v11  ;;  %969 = vmatmul.f32.gmra.mxu1 %v789_v35  ;;  %v3681_v11 = vld [vmem:[%s5194_s4 + $0x1a0] sm:$0xff]  ;;  %v438_v35 = vmul.f32 0.1, %v352_v17  ;;  %v470_v42 = vmul.f32 0.1, %v384_v55 }
  0xb4   : > { %853 = vst [vmem:[#allocation2 + $0x110] sm:$0xff] %v4344_v36  ;;  %999 = vmatmul.f32.gmra.mxu2 %v799_v31  ;;  %1711 = vmatpush.msrb.mxu3 %v3681_v11  ;;  %v3678_v31 = vld [vmem:[%s5194_s4 + $0x188] sm:$0xff]  ;;  %vm427_vm0 = vcmp.ge.f32.partialorder %v384_v55, 0.0  ;;  %v362_v11 = vadd.f32 %v4049_v46, %v315_v43 }
  0xb5   : > { %1999 = vmatpush.msrb.mxu0 %v3695_v27  ;;  %v481_v48 = vsel %vm395_vm14, %v352_v17, %v438_v35  ;;  %1143 = vmatpush.msrb.mxu1 %v3645_v45  ;;  %v513_v50 = vsel %vm427_vm0, %v384_v55, %v470_v42  ;;  %v291_v27 = vld [vmem:[%s4025_s13 + $0x138] sm:$0xff] }
  0xb6   : > { %1712 = vmatpush.msrb.mxu3 %v3680_v14  ;;  %v448_v46 = vmul.f32 0.1, %v362_v11  ;;  %vm405_vm2 = vcmp.ge.f32.partialorder %v362_v11, 0.0 }
  0xb7   : > { %v634_v13 = vpop.permute.xlu1 %633  ;;  %2000 = vmatpush.msrb.mxu0 %v3694_v38  ;;  %v3771_v38 = vld [vmem:[%s5194_s4 + $0x470] sm:$0xff] }
  0xb8   : > { %v790_v62 = vmul.f32 %v634_v13, %v489_v51  ;;  %v724_v63 = vpop.permute.xlu0 %723  ;;  %v599_v0 = vpop.permute.xlu2 %598  ;;  %1713 = vmatpush.msrb.mxu3 %v3679_v16  ;;  %v269_v51 = vld [vmem:[%s4025_s13 + $0x88] sm:$0xff]  ;;  %v4457_v13 = vld [vmem:[%s5191_s1] ss:$0 sm:$0xff]  ;;  %v491_v5 = vsel %vm405_vm2, %v362_v11, %v448_v46  ;;  %v1933_v11 = vld [vmem:[#allocation2 + $0x13] sm:$0xff] }
  0xb9   : > { %v808_v2 = vmul.f32 %v724_v63, %v507_v56  ;;  %v4384_v3 = vmul.f32 %v599_v0, %v482_v57  ;;  %2001 = vmatpush.msrb.mxu0 %v3693_v40  ;;  %v316_v60 = vmul.f32 %v4457_v13, %v269_v51  ;;  %v334_v61 = vmul.f32 %v4457_v13, %v287_v53  ;;  %v3756_v63 = vld [vmem:[%s5194_s4 + $0x3f8] sm:$0xff]  ;;  %v1362_v51 = vld [vmem:[#allocation2 + $0xa] sm:$0xff] }
  0xba   : > { %833 = vst [vmem:[#allocation2 + $0x70] sm:$0xff] %v790_v62  ;;  %1714 = vmatpush.msrb.mxu3 %v3678_v31  ;;  %v3724_v0 = vld [vmem:[%s5194_s4 + $0x2f8] sm:$0xff]  ;;  %v335_v20 = vmul.f32 %v4457_v13, %v288_v10  ;;  %v338_v35 = vmul.f32 %v4457_v13, %v291_v27  ;;  %v3738_v53 = vld [vmem:[%s5194_s4 + $0x368] sm:$0xff] }
  0xbb   : > { %851 = vst [vmem:[#allocation2 + $0x100] sm:$0xff] %v808_v2  ;;  %972 = vmatmul.f32.gmra.mxu1 %v790_v62  ;;  %1026 = vmatmul.f32.gmra.mxu3 %v808_v2  ;;  %v3740_v62 = vld [vmem:[%s5194_s4 + $0x378] sm:$0xff]  ;;  %v3841_v2 = vld [vmem:[%s5192_s2] ss:$0 sm:$0xff]  ;;  %v1076_v46 = vld [vmem:[#allocation2 + $0x9] sm:$0xff] }
  0xbc   : > { %826 = vst [vmem:[#allocation2 + $0x38] sm:$0xff] %v4384_v3  ;;  %1002 = vmatmul.f32.gmra.mxu2 %v4267_v41  ;;  %v3661_v41 = vld [vmem:[%s5194_s4 + $0x100] sm:$0xff]  ;;  %1715 = vmatpush.msrb.mxu3 %v3677_v44  ;;  %v363_v4 = vadd.f32 %v3841_v2, %v316_v60  ;;  %v381_v7 = vadd.f32 %v3841_v2, %v334_v61  ;;  %v3768_v27 = vld [vmem:[%s5194_s4 + $0x458] sm:$0xff] }
  0xbd   : > { %1429 = vmatpush.msrb.mxu2 %v3661_v41  ;;  %2272 = vmatpush.msra.mxu1 %v3724_v0  ;;  %v3755_v41 = vld [vmem:[%s5194_s4 + $0x3f0] sm:$0xff]  ;;  %v382_v24 = vadd.f32 %v3841_v2, %v335_v20  ;;  %v385_v44 = vadd.f32 %v3841_v2, %v338_v35  ;;  %v1934_v61 = vld [vmem:[#allocation2 + $0x1b] sm:$0xff] }
  0xbe   : > { %2844 = vmatpush.msra.mxu3 %v3756_v63  ;;  %v449_v17 = vmul.f32 0.1, %v363_v4  ;;  %vm406_vm3 = vcmp.ge.f32.partialorder %v363_v4, 0.0  ;;  %v467_v19 = vmul.f32 0.1, %v381_v7  ;;  %vm424_vm4 = vcmp.ge.f32.partialorder %v381_v7, 0.0 }
  0xbf   : > { %v729_v25 = vpop.permute.xlu1 %728  ;;  %2558 = vmatpush.msra.mxu2 %v3740_v62  ;;  %vm425_vm6 = vcmp.ge.f32.partialorder %v382_v24, 0.0  ;;  %vm428_vm8 = vcmp.ge.f32.partialorder %v385_v44, 0.0  ;;  %v1648_v62 = vld [vmem:[#allocation2 + $0x1a] sm:$0xff]  ;;  %v3770_v63 = vld [vmem:[%s5194_s4 + $0x468] sm:$0xff]  ;;  %v3735_v35 = vld [vmem:[%s5194_s4 + $0x350] sm:$0xff] }
  0xc0   : > { %v809_v28 = vmul.f32 %v729_v25, %v508_v21  ;;  %v589_v29 = vpop.permute.xlu0 %588  ;;  %v604_v30 = vpop.permute.xlu2 %603  ;;  %v3772_v21 = vld [vmem:[%s5194_s4 + $0x478] sm:$0xff]  ;;  %2845 = vmatpush.msra.mxu3 %v3755_v41  ;;  %v510_v55 = vsel %vm424_vm4, %v381_v7, %v467_v19  ;;  %v292_v25 = vld [vmem:[%s4025_s13 + $0x140] sm:$0xff] }
  0xc1   : > { %v781_v33 = vmul.f32 %v589_v29, %v480_v47  ;;  %v4431_v34 = vmul.f32 %v604_v30, %v483_v22  ;;  %3130 = vmatpush.msra.mxu0 %v3772_v21  ;;  %v3739_v47 = vld [vmem:[%s5194_s4 + $0x370] sm:$0xff]  ;;  %v492_v22 = vsel %vm406_vm3, %v363_v4, %v449_v17  ;;  %v339_v32 = vmul.f32 %v4457_v13, %v292_v25  ;;  %v3753_v7 = vld [vmem:[%s5194_s4 + $0x3e0] sm:$0xff]  ;;  %v3752_v41 = vld [vmem:[%s5194_s4 + $0x3d8] sm:$0xff] }
  0xc2   : > { %852 = vst [vmem:[#allocation2 + $0x108] sm:$0xff] %v809_v28  ;;  %2559 = vmatpush.msra.mxu2 %v3739_v47 }
  0xc3   : > { %824 = vst [vmem:[#allocation2 + $0x28] sm:$0xff] %v781_v33  ;;  %945 = vmatmul.f32.gmra.mxu0 %v781_v33  ;;  %975 = vmatmul.f32.gmra.mxu1 %v4304_v6  ;;  %v500_v6 = vsel %vm414_vm15, %v371_v23, %v457_v39  ;;  %v468_v33 = vmul.f32 0.1, %v382_v24  ;;  %v386_v42 = vadd.f32 %v3841_v2, %v339_v32  ;;  %v1654_v32 = vld [vmem:[#allocation2 + $0x4a] sm:$0xff] }
  0xc4   : > { %827 = vst [vmem:[#allocation2 + $0x40] sm:$0xff] %v4431_v34  ;;  %1029 = vmatmul.f32.gmra.mxu3 %v809_v28  ;;  %3131 = vmatpush.msra.mxu0 %v3771_v38 }
  0xc5   : > { %v511_v43 = vsel %vm425_vm6, %v382_v24, %v468_v33  ;;  %vm429_vm7 = vcmp.ge.f32.partialorder %v386_v42, 0.0  ;;  %2560 = vmatpush.msra.mxu2 %v3738_v53  ;;  %v3734_v53 = vld [vmem:[%s5194_s4 + $0x348] sm:$0xff] }
  0xc6   : > { %3132 = vmatpush.msra.mxu0 %v3770_v63  ;;  %v1086_v63 = vld [vmem:[#allocation2 + $0x59] sm:$0xff] }
  0xc7   : > { %v594_v52 = vpop.permute.xlu1 %593 }
  0xc8   : > { %v782_v18 = vmul.f32 %v594_v52, %v481_v48  ;;  %v689_v54 = vpop.permute.xlu0 %688  ;;  %v754_v56 = vpop.permute.xlu2 %753  ;;  %v1647_v52 = vld [vmem:[#allocation2 + $0x12] sm:$0xff] }
  0xc9   : > { %v801_v57 = vmul.f32 %v689_v54, %v500_v6  ;;  %v814_v58 = vmul.f32 %v754_v56, %v513_v50  ;;  %v472_v6 = vmul.f32 0.1, %v386_v42  ;;  %v1075_v50 = vld [vmem:[#allocation2 + $0x1] sm:$0xff] }
  0xca   : > { %825 = vst [vmem:[#allocation2 + $0x30] sm:$0xff] %v782_v18  ;;  %v3754_v56 = vld [vmem:[%s5194_s4 + $0x3e8] sm:$0xff] }
  0xcb   : > { %844 = vst [vmem:[#allocation2 + $0xc8] sm:$0xff] %v801_v57  ;;  %948 = vmatmul.f32.gmra.mxu0 %v782_v18  ;;  %1005 = vmatmul.f32.gmra.mxu2 %v801_v57  ;;  %v515_v18 = vsel %vm429_vm7, %v386_v42, %v472_v6  ;;  %v3722_v57 = vld [vmem:[%s5194_s4 + $0x2e8] sm:$0xff]  ;;  %v1938_v20 = vld [vmem:[#allocation2 + $0x3b] sm:$0xff] }
  0xcc   : > { %857 = vst [vmem:[#allocation2 + $0x130] sm:$0xff] %v814_v58  ;;  %1032 = vmatmul.f32.gmra.mxu3 %v4344_v36  ;;  %v336_v36 = vmul.f32 %v4457_v13, %v289_v8  ;;  %v1649_v4 = vld [vmem:[#allocation2 + $0x22] sm:$0xff]  ;;  %v1078_v8 = vld [vmem:[#allocation2 + $0x19] sm:$0xff] }
  0xcd   : > { %2846 = vmatpush.msra.mxu3 %v3754_v56  ;;  %v1652_v21 = vld [vmem:[#allocation2 + $0x3a] sm:$0xff]  ;;  %v1939_v24 = vld [vmem:[#allocation2 + $0x43] sm:$0xff] }
  0xce   : > { %v383_v23 = vadd.f32 %v3841_v2, %v336_v36  ;;  %v1935_v2 = vld [vmem:[#allocation2 + $0x23] sm:$0xff]  ;;  %v3736_v36 = vld [vmem:[%s5194_s4 + $0x358] sm:$0xff] }
  0xcf   : > { %v694_v9 = vpop.permute.xlu1 %693  ;;  %2847 = vmatpush.msra.mxu3 %v3753_v7  ;;  %v3718_v56 = vld [vmem:[%s5194_s4 + $0x2c8] sm:$0xff]  ;;  %v3733_v7 = vld [vmem:[%s5194_s4 + $0x340] sm:$0xff] }
  0xd0   : > { %v802_v12 = vmul.f32 %v694_v9, %v501_v1  ;;  %v644_v14 = vpop.permute.xlu0 %643  ;;  %v769_v15 = vpop.permute.xlu2 %768  ;;  %v469_v31 = vmul.f32 0.1, %v383_v23  ;;  %vm426_vm5 = vcmp.ge.f32.partialorder %v383_v23, 0.0  ;;  %v1077_v1 = vld [vmem:[#allocation2 + $0x11] sm:$0xff] }
  0xd1   : > { %v792_v16 = vmul.f32 %v644_v14, %v491_v5  ;;  %v3737_v5 = vld [vmem:[%s5194_s4 + $0x360] sm:$0xff]  ;;  %v1936_v9 = vld [vmem:[#allocation2 + $0x2b] sm:$0xff]  ;;  %2848 = vmatpush.msra.mxu3 %v3752_v41 }
  0xd2   : > { %845 = vst [vmem:[#allocation2 + $0xd0] sm:$0xff] %v802_v12  ;;  %v512_v39 = vsel %vm426_vm5, %v383_v23, %v469_v31  ;;  %2561 = vmatpush.msra.mxu2 %v3737_v5  ;;  %v1650_v10 = vld [vmem:[#allocation2 + $0x2a] sm:$0xff]  ;;  %v3769_v14 = vld [vmem:[%s5194_s4 + $0x460] sm:$0xff]  ;;  %v1651_v17 = vld [vmem:[#allocation2 + $0x32] sm:$0xff] }
  0xd3   : > { %835 = vst [vmem:[#allocation2 + $0x80] sm:$0xff] %v792_v16  ;;  %951 = vmatmul.f32.gmra.mxu0 %v4384_v3  ;;  %978 = vmatmul.f32.gmra.mxu1 %v792_v16  ;;  %v3723_v3 = vld [vmem:[%s5194_s4 + $0x2f0] sm:$0xff]  ;;  %v1079_v15 = vld [vmem:[#allocation2 + $0x21] sm:$0xff] }
  0xd4   : > { %1008 = vmatmul.f32.gmra.mxu2 %v802_v12  ;;  %2273 = vmatpush.msra.mxu1 %v3723_v3  ;;  %v3721_v12 = vld [vmem:[%s5194_s4 + $0x2e0] sm:$0xff]  ;;  %v1937_v16 = vld [vmem:[#allocation2 + $0x33] sm:$0xff]  ;;  %v1080_v19 = vld [vmem:[#allocation2 + $0x29] sm:$0xff] }
  0xd5   : > { %3133 = vmatpush.msra.mxu0 %v3769_v14  ;;  %2562 = vmatpush.msra.mxu2 %v3736_v36  ;;  %v3720_v3 = vld [vmem:[%s5194_s4 + $0x2d8] sm:$0xff]  ;;  %v1940_v31 = vld [vmem:[#allocation2 + $0x4b] sm:$0xff] }
  0xd6   : > { %2274 = vmatpush.msra.mxu1 %v3722_v57 }
  0xd7   : > { %v649_v26 = vpop.permute.xlu1 %648  ;;  %3134 = vmatpush.msra.mxu0 %v3768_v27  ;;  %2563 = vmatpush.msra.mxu2 %v3735_v35 }
  0xd8   : > { %v793_v28 = vmul.f32 %v649_v26, %v492_v22  ;;  %v739_v29 = vpop.permute.xlu0 %738  ;;  %2275 = vmatpush.msra.mxu1 %v3721_v12  ;;  %v1653_v26 = vld [vmem:[#allocation2 + $0x42] sm:$0xff]  ;;  %v1945_v12 = vld [vmem:[#allocation2 + $0x73] sm:$0xff] }
  0xd9   : > { %v811_v30 = vmul.f32 %v739_v29, %v510_v55  ;;  %v1081_v55 = vld [vmem:[#allocation2 + $0x31] sm:$0xff]  ;;  %2564 = vmatpush.msra.mxu2 %v3734_v53 }
  0xda   : > { %836 = vst [vmem:[#allocation2 + $0x88] sm:$0xff] %v793_v28  ;;  %2276 = vmatpush.msra.mxu1 %v3720_v3  ;;  %v1946_v41 = vld [vmem:[#allocation2 + $0x7b] sm:$0xff] }
  0xdb   : > { %854 = vst [vmem:[#allocation2 + $0x118] sm:$0xff] %v811_v30  ;;  %954 = vmatmul.f32.gmra.mxu0 %v4431_v34  ;;  %981 = vmatmul.f32.gmra.mxu1 %v793_v28  ;;  %v471_v34 = vmul.f32 0.1, %v385_v44  ;;  %v1660_v3 = vld [vmem:[#allocation2 + $0x7a] sm:$0xff] }
  0xdc   : > { %1035 = vmatmul.f32.gmra.mxu3 %v811_v30  ;;  %1430 = vmatmul.f32.vlgmr.msrb.gmra.mxu2 %v1361_v37  ;;  %v1082_v30 = vld [vmem:[#allocation2 + $0x39] sm:$0xff]  ;;  %v3751_v37 = vld [vmem:[%s5194_s4 + $0x3d0] sm:$0xff] }
  0xdd   : > { %v514_v54 = vsel %vm428_vm8, %v385_v44, %v471_v34  ;;  %2849 = vmatpush.msra.mxu3 %v3751_v37  ;;  %v1083_v44 = vld [vmem:[#allocation2 + $0x41] sm:$0xff]  ;;  %2565 = vmatpush.msra.mxu2 %v3733_v7  ;;  %v3748_v37 = vld [vmem:[%s5194_s4 + $0x3b8] sm:$0xff]  ;;  %v3747_v7 = vld [vmem:[%s5194_s4 + $0x3b0] sm:$0xff] }
  0xde   : > { %v3764_v53 = vld [vmem:[%s5194_s4 + $0x438] sm:$0xff] }
  0xdf   : > { %v749_v45 = vpop.permute.xlu1 %748 }
  0xe0   : > { %v813_v40 = vmul.f32 %v749_v45, %v512_v39  ;;  %v744_v48 = vpop.permute.xlu0 %743  ;;  %v3719_v39 = vld [vmem:[%s5194_s4 + $0x2d0] sm:$0xff] }
  0xe1   : > { %v812_v49 = vmul.f32 %v744_v48, %v511_v43  ;;  %2277 = vmatpush.msra.mxu1 %v3719_v39  ;;  %v1941_v45 = vld [vmem:[#allocation2 + $0x53] sm:$0xff]  ;;  %v1661_v35 = vld [vmem:[#allocation2 + $0x82] sm:$0xff] }
  0xe2   : > { %856 = vst [vmem:[#allocation2 + $0x128] sm:$0xff] %v813_v40  ;;  %v1655_v40 = vld [vmem:[#allocation2 + $0x52] sm:$0xff] }
  0xe3   : > { %855 = vst [vmem:[#allocation2 + $0x120] sm:$0xff] %v812_v49  ;;  %1144 = vmatmul.f32.vlgmr.msrb.gmra.mxu1 %v1075_v50  ;;  %2002 = vmatmul.f32.vlgmr.msrb.gmra.mxu0 %v1933_v11  ;;  %v3767_v49 = vld [vmem:[%s5194_s4 + $0x450] sm:$0xff]  ;;  %v1942_v11 = vld [vmem:[#allocation2 + $0x5b] sm:$0xff] }
  0xe4   : > { %1433 = vmatmul.f32.gmra.mxu2 %v1362_v51  ;;  %1716 = vmatmul.f32.vlgmr.msrb.gmra.mxu3 %v1647_v52  ;;  %v1084_v50 = vld [vmem:[#allocation2 + $0x49] sm:$0xff]  ;;  %v1656_v51 = vld [vmem:[#allocation2 + $0x5a] sm:$0xff] }
  0xe5   : > { %3135 = vmatpush.msra.mxu0 %v3767_v49  ;;  %2278 = vmatpush.msra.mxu1 %v3718_v56  ;;  %v3716_v39 = vld [vmem:[%s5194_s4 + $0x2b8] sm:$0xff] }
  0xe7   : > { %v764_v58 = vpop.permute.xlu1 %763 }
  0xe8   : > { %v816_v59 = vmul.f32 %v764_v58, %v515_v18  ;;  %v759_v13 = vpop.permute.xlu0 %758  ;;  %v4536_v23 = vpop.f32.mrf.mxu0 }
  0xe9   : > { %v815_v60 = vmul.f32 %v759_v13, %v514_v54  ;;  %v3750_v54 = vld [vmem:[%s5194_s4 + $0x3c8] sm:$0xff] }
  0xea   : > { %859 = vst [vmem:[#allocation2 + $0x140] sm:$0xff] %v816_v59  ;;  %2850 = vmatpush.msra.mxu3 %v3750_v54  ;;  %v1085_v59 = vld [vmem:[#allocation2 + $0x51] sm:$0xff]  ;;  %v1943_v13 = vld [vmem:[#allocation2 + $0x63] sm:$0xff] }
  0xeb   : > { %858 = vst [vmem:[#allocation2 + $0x138] sm:$0xff] %v815_v60  ;;  %1147 = vmatmul.f32.gmra.mxu1 %v1076_v46  ;;  %2005 = vmatmul.f32.gmra.mxu0 %v1934_v61  ;;  %v1657_v60 = vld [vmem:[#allocation2 + $0x62] sm:$0xff] }
  0xec   : > { %1436 = vmatmul.f32.gmra.mxu2 %v1647_v52  ;;  %1719 = vmatmul.f32.gmra.mxu3 %v1648_v62  ;;  %v3766_v61 = vld [vmem:[%s5194_s4 + $0x448] sm:$0xff] }
  0xed   : > { %3136 = vmatpush.msra.mxu0 %v3766_v61  ;;  %v1091_v61 = vld [vmem:[#allocation2 + $0x81] sm:$0xff] }
  0xf0   : > { %v774_v0 = vpop.permute.xlu0 %773 }
  0xf1   : > { %v1944_v0 = vld [vmem:[#allocation2 + $0x6b] sm:$0xff] }
  0xf3   : > { %1150 = vmatmul.f32.gmra.mxu1 %v1077_v1  ;;  %2008 = vmatmul.f32.gmra.mxu0 %v1935_v2  ;;  %v1658_v2 = vld [vmem:[#allocation2 + $0x6a] sm:$0xff] }
  0xf4   : > { %1439 = vmatmul.f32.gmra.mxu2 %v1648_v62  ;;  %1722 = vmatmul.f32.gmra.mxu3 %v1649_v4 }
  0xf8   : > { %v4547_v33 = vpop.f32.mrf.mxu0 }
  0xfb   : > { %1153 = vmatmul.f32.gmra.mxu1 %v1078_v8  ;;  %2011 = vmatmul.f32.gmra.mxu0 %v1936_v9  ;;  %v3749_v9 = vld [vmem:[%s5194_s4 + $0x3c0] sm:$0xff] }
  0xfc   : > { %1442 = vmatmul.f32.gmra.mxu2 %v1649_v4  ;;  %1725 = vmatmul.f32.gmra.mxu3 %v1650_v10 }
  0xfd   : > { %2851 = vmatpush.msra.mxu3 %v3749_v9 }
  0xff   : > { %v4534_v22 = vpop.f32.mrf.mxu1  ;;  %2852 = vmatpush.msra.mxu3 %v3748_v37 }
 0x101   : > { %2853 = vmatpush.msra.mxu3 %v3747_v7 }
 0x103   : > { %1156 = vmatmul.f32.gmra.mxu1 %v1079_v15  ;;  %2014 = vmatmul.f32.gmra.mxu0 %v1937_v16  ;;  %v1659_v15 = vld [vmem:[#allocation2 + $0x72] sm:$0xff]  ;;  %v3717_v16 = vld [vmem:[%s5194_s4 + $0x2c0] sm:$0xff] }
 0x104   : > { %1445 = vmatmul.f32.gmra.mxu2 %v1650_v10  ;;  %1728 = vmatmul.f32.gmra.mxu3 %v1651_v17  ;;  %v1087_v10 = vld [vmem:[#allocation2 + $0x61] sm:$0xff] }
 0x105   : > { %2279 = vmatpush.msra.mxu1 %v3717_v16 }
 0x106   : > { %v4526_v47 = vpop.f32.mrf.mxu2 }
 0x107   : > { %2280 = vmatpush.msra.mxu1 %v3716_v39 }
 0x10b   : > { %1159 = vmatmul.f32.gmra.mxu1 %v1080_v19  ;;  %2017 = vmatmul.f32.gmra.mxu0 %v1938_v20  ;;  %v3765_v20 = vld [vmem:[%s5194_s4 + $0x440] sm:$0xff] }
 0x10c   : > { %1448 = vmatmul.f32.gmra.mxu2 %v1651_v17  ;;  %1731 = vmatmul.f32.gmra.mxu3 %v1652_v21 }
 0x10d   : > { %3137 = vmatpush.msra.mxu0 %v3765_v20  ;;  %v3715_v20 = vld [vmem:[%s5194_s4 + $0x2b0] sm:$0xff] }
 0x10e   : > { %v4538_v25 = vpop.f32.mrf.mxu3  ;;  %v4543_v28 = vpop.f32.mrf.mxu2  ;;  %2281 = vmatpush.msra.mxu1 %v3715_v20  ;;  %v1666_v20 = vld [vmem:[#allocation2 + $0xaa] sm:$0xff] }
 0x10f   : > { %3138 = vmatpush.msra.mxu0 %v3764_v53  ;;  %v1951_v53 = vld [vmem:[#allocation2 + $0xa3] sm:$0xff] }
 0x110   : > { %v4545_v29 = vpop.f32.mrf.mxu1 }
 0x113   : > { %1162 = vmatmul.f32.gmra.mxu1 %v1081_v55  ;;  %2020 = vmatmul.f32.gmra.mxu0 %v1939_v24 }
 0x114   : > { %1451 = vmatmul.f32.gmra.mxu2 %v1652_v21  ;;  %1734 = vmatmul.f32.gmra.mxu3 %v1653_v26  ;;  %v1088_v21 = vld [vmem:[#allocation2 + $0x69] sm:$0xff] }
 0x116   : > { %v4560_v42 = vpop.f32.mrf.mxu2 }
 0x117   : > { %v4555_v38 = vpop.f32.mrf.mxu3 }
 0x118   : > { %v4562_v43 = vpop.f32.mrf.mxu1 }
 0x11b   : > { %1165 = vmatmul.f32.gmra.mxu1 %v1082_v30  ;;  %2023 = vmatmul.f32.gmra.mxu0 %v1940_v31  ;;  %v3732_v30 = vld [vmem:[%s5194_s4 + $0x338] sm:$0xff] }
 0x11c   : > { %1454 = vmatmul.f32.gmra.mxu2 %v1653_v26  ;;  %1737 = vmatmul.f32.gmra.mxu3 %v1654_v32  ;;  %v1089_v31 = vld [vmem:[#allocation2 + $0x71] sm:$0xff] }
 0x11d   : > { %2566 = vmatpush.msra.mxu2 %v3732_v30  ;;  %v1664_v30 = vld [vmem:[#allocation2 + $0x9a] sm:$0xff] }
 0x11e   : > { %v4571_v34 = vpop.f32.mrf.mxu2 }
 0x11f   : > { %v4569_v6 = vpop.f32.mrf.mxu3 }
 0x120   : > { %v4564_v48 = vpop.f32.mrf.mxu0  ;;  %v4573_v52 = vpop.f32.mrf.mxu1 }
 0x123   : > { %1168 = vmatmul.f32.gmra.mxu1 %v1083_v44  ;;  %2026 = vmatmul.f32.gmra.mxu0 %v1941_v45 }
 0x124   : > { %1457 = vmatmul.f32.gmra.mxu2 %v1654_v32  ;;  %1740 = vmatmul.f32.gmra.mxu3 %v1655_v40  ;;  %v1947_v32 = vld [vmem:[#allocation2 + $0x83] sm:$0xff] }
 0x127   : > { %v4586_v57 = vpop.f32.mrf.mxu3 }
 0x128   : > { %v4578_v18 = vpop.f32.mrf.mxu0 }
 0x12b   : > { %1171 = vmatmul.f32.gmra.mxu1 %v1084_v50  ;;  %2029 = vmatmul.f32.gmra.mxu0 %v1942_v11  ;;  %v1090_v50 = vld [vmem:[#allocation2 + $0x79] sm:$0xff]  ;;  %v1948_v11 = vld [vmem:[#allocation2 + $0x8b] sm:$0xff] }
 0x12c   : > { %1460 = vmatmul.f32.gmra.mxu2 %v1655_v40  ;;  %1743 = vmatmul.f32.gmra.mxu3 %v1656_v51 }
 0x12e   : > { %v4588_v58 = vpop.f32.mrf.mxu2 }
 0x12f   : > { %v4597_v1 = vpop.f32.mrf.mxu3 }
 0x130   : > { %v4590_v46 = vpop.f32.mrf.mxu1  ;;  %v4595_v62 = vpop.f32.mrf.mxu0 }
 0x133   : > { %1174 = vmatmul.f32.gmra.mxu1 %v1085_v59  ;;  %2032 = vmatmul.f32.gmra.mxu0 %v1943_v13 }
 0x134   : > { %1463 = vmatmul.f32.gmra.mxu2 %v1656_v51  ;;  %1746 = vmatmul.f32.gmra.mxu3 %v1657_v60  ;;  %v1662_v51 = vld [vmem:[#allocation2 + $0x8a] sm:$0xff] }
 0x137   : > { %v4599_v4 = vpop.f32.mrf.mxu2 }
 0x138   : > { %v4601_v5 = vpop.f32.mrf.mxu1 }
 0x13b   : > { %1177 = vmatmul.f32.gmra.mxu1 %v1086_v63  ;;  %2035 = vmatmul.f32.gmra.mxu0 %v1944_v0  ;;  %v1949_v63 = vld [vmem:[#allocation2 + $0x93] sm:$0xff] }
 0x13c   : > { %1466 = vmatmul.f32.gmra.mxu2 %v1657_v60  ;;  %1749 = vmatmul.f32.gmra.mxu3 %v1658_v2  ;;  %v1663_v0 = vld [vmem:[#allocation2 + $0x92] sm:$0xff] }
 0x13e   : > { %v4611_v14 = vpop.f32.mrf.mxu3 }
 0x13f   : > { %v4616_v17 = vpop.f32.mrf.mxu2 }
 0x140   : > { %v4606_v8 = vpop.f32.mrf.mxu0  ;;  %v4618_v36 = vpop.f32.mrf.mxu1 }
 0x143   : > { %1180 = vmatmul.f32.gmra.mxu1 %v1087_v10  ;;  %2038 = vmatmul.f32.gmra.mxu0 %v1945_v12 }
 0x144   : > { %1469 = vmatmul.f32.gmra.mxu2 %v1658_v2  ;;  %1752 = vmatmul.f32.gmra.mxu3 %v1659_v15  ;;  %v3731_v2 = vld [vmem:[%s5194_s4 + $0x330] sm:$0xff] }
 0x145   : > { %2567 = vmatpush.msra.mxu2 %v3731_v2 }
 0x147   : > { %v4625_v55 = vpop.f32.mrf.mxu3 }
 0x148   : > { %v4620_v19 = vpop.f32.mrf.mxu0 }
 0x14b   : > { %1183 = vmatmul.f32.gmra.mxu1 %v1088_v21  ;;  %2041 = vmatmul.f32.gmra.mxu0 %v1946_v41  ;;  %v1092_v41 = vld [vmem:[#allocation2 + $0x89] sm:$0xff] }
 0x14c   : > { %1472 = vmatmul.f32.gmra.mxu2 %v1659_v15  ;;  %1755 = vmatmul.f32.gmra.mxu3 %v1660_v3 }
 0x14e   : > { %v4627_v24 = vpop.f32.mrf.mxu2 }
 0x14f   : > { %v4642_v44 = vpop.f32.mrf.mxu3 }
 0x150   : > { %v4629_v26 = vpop.f32.mrf.mxu0  ;;  %v4631_v27 = vpop.f32.mrf.mxu1 }
 0x153   : > { %1186 = vmatmul.f32.gmra.mxu1 %v1089_v31  ;;  %2044 = vmatmul.f32.gmra.mxu0 %v1947_v32  ;;  %v3763_v31 = vld [vmem:[%s5194_s4 + $0x430] sm:$0xff] }
 0x154   : > { %1475 = vmatmul.f32.gmra.mxu2 %v1660_v3  ;;  %1758 = vmatmul.f32.gmra.mxu3 %v1661_v35  ;;  %v1950_v3 = vld [vmem:[#allocation2 + $0x9b] sm:$0xff] }
 0x155   : > { %3139 = vmatpush.msra.mxu0 %v3763_v31 }
 0x157   : > { %v4644_v45 = vpop.f32.mrf.mxu2 }
 0x158   : > { %v4646_v40 = vpop.f32.mrf.mxu0  ;;  %v4648_v49 = vpop.f32.mrf.mxu1 }
 0x15b   : > { %1189 = vmatmul.f32.gmra.mxu1 %v1090_v50  ;;  %2047 = vmatmul.f32.gmra.mxu0 %v1948_v11 }
 0x15c   : > { %1478 = vmatmul.f32.gmra.mxu2 %v1661_v35  ;;  %1761 = vmatmul.f32.gmra.mxu3 %v1662_v51 }
 0x15f   : > { %v4653_v54 = vpop.f32.mrf.mxu3  ;;  %v1431_v56 = vpop.f32.mrf.mxu2 }
 0x160   : > { %v1145_v59 = vpop.f32.mrf.mxu1  ;;  %v4655_v13 = vpop.f32.mrf.mxu0 }
 0x161   : > { %v1289_v60 = vadd.f32 %v1145_v59, %v4536_v23  ;;  %v3730_v59 = vld [vmem:[%s5194_s4 + $0x328] sm:$0xff] }
 0x162   : > { %2568 = vmatpush.msra.mxu2 %v3730_v59 }
 0x163   : > { %1192 = vmatmul.f32.gmra.mxu1 %v1091_v61  ;;  %2050 = vmatmul.f32.gmra.mxu0 %v1949_v63  ;;  %v1575_v9 = vadd.f32 %v1431_v56, %v1289_v60  ;;  %v1665_v56 = vld [vmem:[#allocation2 + $0xa2] sm:$0xff] }
 0x164   : > { %1481 = vmatmul.f32.gmra.mxu2 %v1662_v51  ;;  %1764 = vmatmul.f32.gmra.mxu3 %v1663_v0  ;;  %v1093_v51 = vld [vmem:[#allocation2 + $0x91] sm:$0xff] }
 0x167   : > { %v1434_v10 = vpop.f32.mrf.mxu2  ;;  %v1717_v23 = vpop.f32.mrf.mxu3 }
 0x168   : > { %v4664_v12 = vadd.f32 %v1717_v23, %v1575_v9  ;;  %v1148_v15 = vpop.f32.mrf.mxu1  ;;  %v4666_v16 = vpop.f32.mrf.mxu0  ;;  %v3714_v9 = vld [vmem:[%s5194_s4 + $0x2a8] sm:$0xff]  ;;  %v1094_v23 = vld [vmem:[#allocation2 + $0x99] sm:$0xff] }
 0x169   : > { %v1290_v21 = vadd.f32 %v1148_v15, %v4547_v33  ;;  %v1952_v15 = vld [vmem:[#allocation2 + $0xab] sm:$0xff]  ;;  %2282 = vmatpush.msra.mxu1 %v3714_v9  ;;  %v1954_v9 = vld [vmem:[#allocation2 + $0xbb] sm:$0xff] }
 0x16b   : > { %1195 = vmatmul.f32.gmra.mxu1 %v1092_v41  ;;  %2053 = vmatmul.f32.gmra.mxu0 %v1950_v3  ;;  %v1576_v32 = vadd.f32 %v1434_v10, %v1290_v21 }
 0x16c   : > { %1484 = vmatmul.f32.gmra.mxu2 %v1663_v0  ;;  %1767 = vmatmul.f32.gmra.mxu3 %v1664_v30 }
 0x16f   : > { %v1437_v35 = vpop.f32.mrf.mxu2  ;;  %v1720_v37 = vpop.f32.mrf.mxu3 }
 0x170   : > { %v4675_v39 = vadd.f32 %v1720_v37, %v1576_v32  ;;  %v1151_v50 = vpop.f32.mrf.mxu1  ;;  %v4677_v11 = vpop.f32.mrf.mxu0  ;;  %v1095_v37 = vld [vmem:[#allocation2 + $0xa1] sm:$0xff] }
 0x171   : > { %v1291_v33 = vadd.f32 %v1151_v50, %v4564_v48  ;;  %v3746_v48 = vld [vmem:[%s5194_s4 + $0x3a8] sm:$0xff]  ;;  %v1953_v50 = vld [vmem:[#allocation2 + $0xb3] sm:$0xff] }
 0x172   : > { %2854 = vmatpush.msra.mxu3 %v3746_v48  ;;  %v1096_v48 = vld [vmem:[#allocation2 + $0xa9] sm:$0xff] }
 0x173   : > { %1198 = vmatmul.f32.gmra.mxu1 %v1093_v51  ;;  %2056 = vmatmul.f32.gmra.mxu0 %v1951_v53  ;;  %v1577_v60 = vadd.f32 %v1437_v35, %v1291_v33  ;;  %v1667_v33 = vld [vmem:[#allocation2 + $0xb2] sm:$0xff] }
 0x174   : > { %1487 = vmatmul.f32.gmra.mxu2 %v1664_v30  ;;  %1770 = vmatmul.f32.gmra.mxu3 %v1665_v56 }
 0x177   : > { %v1440_v61 = vpop.f32.mrf.mxu2  ;;  %v1723_v63 = vpop.f32.mrf.mxu3 }
 0x178   : > { %v4683_v0 = vadd.f32 %v1723_v63, %v1577_v60  ;;  %v1154_v2 = vpop.f32.mrf.mxu1  ;;  %v4685_v7 = vpop.f32.mrf.mxu0  ;;  %v3729_v63 = vld [vmem:[%s5194_s4 + $0x320] sm:$0xff] }
 0x179   : > { %v1292_v10 = vadd.f32 %v1154_v2, %v4578_v18  ;;  %v3762_v18 = vld [vmem:[%s5194_s4 + $0x428] sm:$0xff]  ;;  %2569 = vmatpush.msra.mxu2 %v3729_v63 }
 0x17a   : > { %3140 = vmatpush.msra.mxu0 %v3762_v18 }
 0x17b   : > { %1201 = vmatmul.f32.gmra.mxu1 %v1094_v23  ;;  %2059 = vmatmul.f32.gmra.mxu0 %v1952_v15  ;;  %v1578_v21 = vadd.f32 %v1440_v61, %v1292_v10  ;;  %v1668_v10 = vld [vmem:[#allocation2 + $0xba] sm:$0xff] }
 0x17c   : > { %1490 = vmatmul.f32.gmra.mxu2 %v1665_v56  ;;  %1773 = vmatmul.f32.gmra.mxu3 %v1666_v20  ;;  %v3713_v23 = vld [vmem:[%s5194_s4 + $0x2a0] sm:$0xff] }
 0x17d   : > { %2283 = vmatpush.msra.mxu1 %v3713_v23 }
 0x17f   : > { %v1443_v41 = vpop.f32.mrf.mxu2  ;;  %v1726_v3 = vpop.f32.mrf.mxu3 }
 0x180   : > { %v4694_v30 = vadd.f32 %v1726_v3, %v1578_v21  ;;  %v1157_v31 = vpop.f32.mrf.mxu1  ;;  %v4696_v32 = vpop.f32.mrf.mxu0 }
 0x181   : > { %v1293_v35 = vadd.f32 %v1157_v31, %v4595_v62  ;;  %v3745_v62 = vld [vmem:[%s5194_s4 + $0x3a0] sm:$0xff] }
 0x182   : > { %2855 = vmatpush.msra.mxu3 %v3745_v62  ;;  %v3761_v31 = vld [vmem:[%s5194_s4 + $0x420] sm:$0xff] }
 0x183   : > { %1204 = vmatmul.f32.gmra.mxu1 %v1095_v37  ;;  %2062 = vmatmul.f32.gmra.mxu0 %v1953_v50  ;;  %v1579_v51 = vadd.f32 %v1443_v41, %v1293_v35  ;;  %v1097_v35 = vld [vmem:[#allocation2 + $0xb1] sm:$0xff]  ;;  %v1955_v37 = vld [vmem:[#allocation2 + $0xc3] sm:$0xff] }
 0x184   : > { %1493 = vmatmul.f32.gmra.mxu2 %v1666_v20  ;;  %1776 = vmatmul.f32.gmra.mxu3 %v1667_v33  ;;  %v1669_v50 = vld [vmem:[#allocation2 + $0xc2] sm:$0xff] }
 0x185   : > { %3141 = vmatpush.msra.mxu0 %v3761_v31 }
 0x187   : > { %v1446_v53 = vpop.f32.mrf.mxu2  ;;  %v1729_v56 = vpop.f32.mrf.mxu3 }
 0x188   : > { %v4702_v59 = vadd.f32 %v1729_v56, %v1579_v51  ;;  %v1160_v60 = vpop.f32.mrf.mxu1  ;;  %v4704_v61 = vpop.f32.mrf.mxu0  ;;  %v4726_v51 = vadd.f32 %v4655_v13, %v4664_v12  ;;  %v3744_v13 = vld [vmem:[%s5194_s4 + $0x398] sm:$0xff] }
 0x189   : > { %v1294_v2 = vadd.f32 %v1160_v60, %v4606_v8  ;;  %v3712_v12 = vld [vmem:[%s5194_s4 + $0x298] sm:$0xff]  ;;  %2856 = vmatpush.msra.mxu3 %v3744_v13 }
 0x18a   : > { %2284 = vmatpush.msra.mxu1 %v3712_v12 }
 0x18b   : > { %1207 = vmatmul.f32.gmra.mxu1 %v1096_v48  ;;  %2065 = vmatmul.f32.gmra.mxu0 %v1954_v9  ;;  %v1580_v15 = vadd.f32 %v1446_v53, %v1294_v2  ;;  %v1098_v48 = vld [vmem:[#allocation2 + $0xb9] sm:$0xff]  ;;  %v1956_v9 = vld [vmem:[#allocation2 + $0xcb] sm:$0xff] }
 0x18c   : > { %1496 = vmatmul.f32.gmra.mxu2 %v1667_v33  ;;  %1779 = vmatmul.f32.gmra.mxu3 %v1668_v10 }
 0x18f   : > { %v1449_v20 = vpop.f32.mrf.mxu2  ;;  %v1732_v21 = vpop.f32.mrf.mxu3 }
 0x190   : > { %v4716_v41 = vadd.f32 %v1732_v21, %v1580_v15  ;;  %v1163_v3 = vpop.f32.mrf.mxu1  ;;  %v4718_v8 = vpop.f32.mrf.mxu0 }
 0x191   : > { %v1295_v18 = vadd.f32 %v1163_v3, %v4620_v19  ;;  %v3728_v19 = vld [vmem:[%s5194_s4 + $0x318] sm:$0xff] }
 0x192   : > { %2570 = vmatpush.msra.mxu2 %v3728_v19 }
 0x193   : > { %1210 = vmatmul.f32.gmra.mxu1 %v1097_v35  ;;  %2068 = vmatmul.f32.gmra.mxu0 %v1955_v37  ;;  %v1581_v33 = vadd.f32 %v1449_v20, %v1295_v18  ;;  %v1099_v35 = vld [vmem:[#allocation2 + $0xc1] sm:$0xff]  ;;  %v1957_v37 = vld [vmem:[#allocation2 + $0xd3] sm:$0xff] }
 0x194   : > { %1499 = vmatmul.f32.gmra.mxu2 %v1668_v10  ;;  %1782 = vmatmul.f32.gmra.mxu3 %v1669_v50  ;;  %v1670_v10 = vld [vmem:[#allocation2 + $0xca] sm:$0xff] }
 0x197   : > { %v1452_v53 = vpop.f32.mrf.mxu2  ;;  %v1735_v56 = vpop.f32.mrf.mxu3 }
 0x198   : > { %v4728_v60 = vadd.f32 %v1735_v56, %v1581_v33  ;;  %v1166_v63 = vpop.f32.mrf.mxu1  ;;  %v4730_v62 = vpop.f32.mrf.mxu0  ;;  %v4756_v33 = vadd.f32 %v4677_v11, %v4683_v0  ;;  %v3727_v11 = vld [vmem:[%s5194_s4 + $0x310] sm:$0xff] }
 0x199   : > { %v1296_v2 = vadd.f32 %v1166_v63, %v4629_v26  ;;  %v4744_v26 = vadd.f32 %v4666_v16, %v4675_v39  ;;  %v3760_v16 = vld [vmem:[%s5194_s4 + $0x418] sm:$0xff]  ;;  %v3743_v0 = vld [vmem:[%s5194_s4 + $0x390] sm:$0xff]  ;;  %2571 = vmatpush.msra.mxu2 %v3727_v11 }
 0x19a   : > { %3142 = vmatpush.msra.mxu0 %v3760_v16  ;;  %2857 = vmatpush.msra.mxu3 %v3743_v0  ;;  %v1673_v16 = vld [vmem:[#allocation2 + $0xe2] sm:$0xff]  ;;  %v1674_v11 = vld [vmem:[#allocation2 + $0xea] sm:$0xff]  ;;  %v4798_v0 = vadd.f32 %v4704_v61, %v4716_v41  ;;  %v1961_v41 = vld [vmem:[#allocation2 + $0xf3] sm:$0xff] }
 0x19b   : > { %1213 = vmatmul.f32.gmra.mxu1 %v1098_v48  ;;  %2071 = vmatmul.f32.gmra.mxu0 %v1956_v9  ;;  %v1582_v23 = vadd.f32 %v1452_v53, %v1296_v2  ;;  %v1100_v48 = vld [vmem:[#allocation2 + $0xc9] sm:$0xff]  ;;  %v1958_v9 = vld [vmem:[#allocation2 + $0xdb] sm:$0xff] }
 0x19c   : > { %1502 = vmatmul.f32.gmra.mxu2 %v1669_v50  ;;  %1785 = vmatmul.f32.gmra.mxu3 %v1670_v10  ;;  %v1671_v50 = vld [vmem:[#allocation2 + $0xd2] sm:$0xff]  ;;  %v1103_v61 = vld [vmem:[#allocation2 + $0xe1] sm:$0xff] }
 0x19f   : > { %v1455_v15 = vpop.f32.mrf.mxu2  ;;  %v1738_v20 = vpop.f32.mrf.mxu3 }
 0x1a0   : > { %v4746_v21 = vadd.f32 %v1738_v20, %v1582_v23  ;;  %v1169_v3 = vpop.f32.mrf.mxu1  ;;  %v4748_v31 = vpop.f32.mrf.mxu0 }
 0x1a1   : > { %v1297_v18 = vadd.f32 %v1169_v3, %v4646_v40 }
 0x1a3   : > { %1216 = vmatmul.f32.gmra.mxu1 %v1099_v35  ;;  %2074 = vmatmul.f32.gmra.mxu0 %v1957_v37  ;;  %v1583_v39 = vadd.f32 %v1455_v15, %v1297_v18  ;;  %v3711_v18 = vld [vmem:[%s5194_s4 + $0x290] sm:$0xff] }
 0x1a4   : > { %1505 = vmatmul.f32.gmra.mxu2 %v1670_v10  ;;  %1788 = vmatmul.f32.gmra.mxu3 %v1671_v50  ;;  %v1672_v10 = vld [vmem:[#allocation2 + $0xda] sm:$0xff]  ;;  %v1101_v37 = vld [vmem:[#allocation2 + $0xd1] sm:$0xff] }
 0x1a5   : > { %2285 = vmatpush.msra.mxu1 %v3711_v18  ;;  %v3742_v18 = vld [vmem:[%s5194_s4 + $0x388] sm:$0xff] }
 0x1a6   : > { %2858 = vmatpush.msra.mxu3 %v3742_v18  ;;  %v3725_v18 = vld [vmem:[%s5194_s4 + $0x300] sm:$0xff] }
 0x1a7   : > { %v1458_v53 = vpop.f32.mrf.mxu2  ;;  %v1741_v56 = vpop.f32.mrf.mxu3 }
 0x1a8   : > { %v4758_v40 = vadd.f32 %v1741_v56, %v1583_v39  ;;  %v1172_v63 = vpop.f32.mrf.mxu1  ;;  %v4760_v19 = vpop.f32.mrf.mxu0  ;;  %v4786_v39 = vadd.f32 %v4696_v32, %v4702_v59  ;;  %v3726_v32 = vld [vmem:[%s5194_s4 + $0x308] sm:$0xff] }
 0x1a9   : > { %v1298_v2 = vadd.f32 %v1172_v63, %v4534_v22  ;;  %v4771_v22 = vadd.f32 %v4685_v7, %v4694_v30  ;;  %v3759_v7 = vld [vmem:[%s5194_s4 + $0x410] sm:$0xff]  ;;  %2572 = vmatpush.msra.mxu2 %v3726_v32  ;;  %v1676_v32 = vld [vmem:[#allocation2 + $0xfa] sm:$0xff] }
 0x1aa   : > { %3143 = vmatpush.msra.mxu0 %v3759_v7  ;;  %v4813_v7 = vadd.f32 %v4718_v8, %v4728_v60 }
 0x1ab   : > { %1219 = vmatmul.f32.gmra.mxu1 %v1100_v48  ;;  %2077 = vmatmul.f32.gmra.mxu0 %v1958_v9  ;;  %v1584_v13 = vadd.f32 %v1458_v53, %v1298_v2  ;;  %v1102_v9 = vld [vmem:[#allocation2 + $0xd9] sm:$0xff] }
 0x1ac   : > { %1508 = vmatmul.f32.gmra.mxu2 %v1671_v50  ;;  %1791 = vmatmul.f32.gmra.mxu3 %v1672_v10  ;;  %v1959_v50 = vld [vmem:[#allocation2 + $0xe3] sm:$0xff] }
 0x1ad   : > { %2573 = vmatpush.msra.mxu2 %v3725_v18 }
 0x1af   : > { %v1461_v12 = vpop.f32.mrf.mxu2  ;;  %v1744_v23 = vpop.f32.mrf.mxu3 }
 0x1b0   : > { %v4773_v15 = vadd.f32 %v1744_v23, %v1584_v13  ;;  %v1175_v20 = vpop.f32.mrf.mxu1  ;;  %v4775_v3 = vpop.f32.mrf.mxu0 }
 0x1b1   : > { %v1299_v35 = vadd.f32 %v1175_v20, %v4545_v29 }
 0x1b3   : > { %1222 = vmatmul.f32.gmra.mxu1 %v1101_v37  ;;  %2080 = vmatmul.f32.gmra.mxu0 %v1959_v50  ;;  %v1585_v30 = vadd.f32 %v1461_v12, %v1299_v35  ;;  %v3710_v35 = vld [vmem:[%s5194_s4 + $0x288] sm:$0xff]  ;;  %v1675_v50 = vld [vmem:[#allocation2 + $0xf2] sm:$0xff] }
 0x1b4   : > { %1511 = vmatmul.f32.gmra.mxu2 %v1672_v10  ;;  %1794 = vmatmul.f32.gmra.mxu3 %v1673_v16  ;;  %v1960_v10 = vld [vmem:[#allocation2 + $0xeb] sm:$0xff] }
 0x1b5   : > { %2286 = vmatpush.msra.mxu1 %v3710_v35 }
 0x1b7   : > { %v1464_v53 = vpop.f32.mrf.mxu2  ;;  %v1747_v56 = vpop.f32.mrf.mxu3 }
 0x1b8   : > { %v4788_v29 = vadd.f32 %v1747_v56, %v1585_v30  ;;  %v1178_v63 = vpop.f32.mrf.mxu1  ;;  %v4790_v2 = vpop.f32.mrf.mxu0 }
 0x1b9   : > { %v1300_v48 = vadd.f32 %v1178_v63, %v4562_v43 }
 0x1bb   : > { %1225 = vmatmul.f32.gmra.mxu1 %v1102_v9  ;;  %2083 = vmatmul.f32.gmra.mxu0 %v1960_v10  ;;  %v1586_v59 = vadd.f32 %v1464_v53, %v1300_v48  ;;  %v1104_v10 = vld [vmem:[#allocation2 + $0xe9] sm:$0xff] }
 0x1bc   : > { %1514 = vmatmul.f32.gmra.mxu2 %v1673_v16  ;;  %1797 = vmatmul.f32.gmra.mxu3 %v1674_v11 }
 0x1bf   : > { %v1467_v13 = vpop.f32.mrf.mxu2  ;;  %v1750_v12 = vpop.f32.mrf.mxu3 }
 0x1c0   : > { %v4800_v43 = vadd.f32 %v1750_v12, %v1586_v59  ;;  %v1181_v23 = vpop.f32.mrf.mxu1  ;;  %v4802_v20 = vpop.f32.mrf.mxu0 }
 0x1c1   : > { %v1301_v37 = vadd.f32 %v1181_v23, %v4573_v52  ;;  %v3758_v52 = vld [vmem:[%s5194_s4 + $0x408] sm:$0xff] }
 0x1c2   : > { %3144 = vmatpush.msra.mxu0 %v3758_v52 }
 0x1c3   : > { %1228 = vmatmul.f32.gmra.mxu1 %v1103_v61  ;;  %2086 = vmatmul.f32.gmra.mxu0 %v1961_v41  ;;  %v1587_v16 = vadd.f32 %v1467_v13, %v1301_v37  ;;  %v1105_v37 = vld [vmem:[#allocation2 + $0xf1] sm:$0xff]  ;;  %v1963_v61 = vld [vmem:[#allocation2 + $0x103] sm:$0xff] }
 0x1c4   : > { %1517 = vmatmul.f32.gmra.mxu2 %v1674_v11  ;;  %1800 = vmatmul.f32.gmra.mxu3 %v1675_v50  ;;  %v1962_v11 = vld [vmem:[#allocation2 + $0xfb] sm:$0xff] }
 0x1c5   : > { %v1677_v41 = vld [vmem:[#allocation2 + $0x102] sm:$0xff] }
 0x1c7   : > { %v1470_v30 = vpop.f32.mrf.mxu2  ;;  %v1753_v53 = vpop.f32.mrf.mxu3 }
 0x1c8   : > { %v4815_v56 = vadd.f32 %v1753_v53, %v1587_v16  ;;  %v1184_v63 = vpop.f32.mrf.mxu1  ;;  %v4817_v48 = vpop.f32.mrf.mxu0  ;;  %v4839_v16 = vadd.f32 %v4730_v62, %v4746_v21  ;;  %v1678_v62 = vld [vmem:[#allocation2 + $0x10a] sm:$0xff] }
 0x1c9   : > { %v1302_v9 = vadd.f32 %v1184_v63, %v4590_v46  ;;  %v3741_v46 = vld [vmem:[%s5194_s4 + $0x380] sm:$0xff] }
 0x1ca   : > { %2859 = vmatpush.msra.mxu3 %v3741_v46 }
 0x1cb   : > { %1231 = vmatmul.f32.gmra.mxu1 %v1104_v10  ;;  %2089 = vmatmul.f32.gmra.mxu0 %v1962_v11  ;;  %v1588_v8 = vadd.f32 %v1470_v30, %v1302_v9  ;;  %v3757_v10 = vld [vmem:[%s5194_s4 + $0x400] sm:$0xff] }
 0x1cc   : > { %1520 = vmatmul.f32.gmra.mxu2 %v1675_v50  ;;  %1803 = vmatmul.f32.gmra.mxu3 %v1676_v32  ;;  %v3709_v50 = vld [vmem:[%s5194_s4 + $0x280] sm:$0xff] }
 0x1cd   : > { %2287 = vmatpush.msra.mxu1 %v3709_v50  ;;  %3145 = vmatpush.msra.mxu0 %v3757_v10 }
 0x1cf   : > { %v1473_v60 = vpop.f32.mrf.mxu2  ;;  %v1756_v59 = vpop.f32.mrf.mxu3 }
 0x1d0   : > { %v4823_v13 = vadd.f32 %v1756_v59, %v1588_v8  ;;  %v1187_v12 = vpop.f32.mrf.mxu1  ;;  %v4825_v23 = vpop.f32.mrf.mxu0  ;;  %v1964_v8 = vld [vmem:[#allocation2 + $0x10b] sm:$0xff] }
 0x1d1   : > { %v1303_v35 = vadd.f32 %v1187_v12, %v4601_v5 }
 0x1d3   : > { %1234 = vmatmul.f32.gmra.mxu1 %v1105_v37  ;;  %2092 = vmatmul.f32.gmra.mxu0 %v1963_v61  ;;  %v1589_v30 = vadd.f32 %v1473_v60, %v1303_v35  ;;  %v1107_v37 = vld [vmem:[#allocation2 + $0x101] sm:$0xff]  ;;  %v1679_v61 = vld [vmem:[#allocation2 + $0x112] sm:$0xff] }
 0x1d4   : > { %1523 = vmatmul.f32.gmra.mxu2 %v1676_v32  ;;  %1806 = vmatmul.f32.gmra.mxu3 %v1677_v41  ;;  %v1106_v32 = vld [vmem:[#allocation2 + $0xf9] sm:$0xff] }
 0x1d7   : > { %v1476_v53 = vpop.f32.mrf.mxu2  ;;  %v1759_v5 = vpop.f32.mrf.mxu3 }
 0x1d8   : > { %v4841_v63 = vadd.f32 %v1759_v5, %v1589_v30  ;;  %v1190_v52 = vpop.f32.mrf.mxu1  ;;  %v4843_v9 = vpop.f32.mrf.mxu0 }
 0x1d9   : > { %v1304_v11 = vadd.f32 %v1190_v52, %v4618_v36  ;;  %v1965_v36 = vld [vmem:[#allocation2 + $0x113] sm:$0xff] }
 0x1db   : > { %1237 = vmatmul.f32.gmra.mxu1 %v1106_v32  ;;  %2095 = vmatmul.f32.gmra.mxu0 %v1964_v8  ;;  %v1590_v21 = vadd.f32 %v1476_v53, %v1304_v11  ;;  %v1108_v11 = vld [vmem:[#allocation2 + $0x109] sm:$0xff]  ;;  %v1966_v32 = vld [vmem:[#allocation2 + $0x11b] sm:$0xff] }
 0x1dc   : > { %1526 = vmatmul.f32.gmra.mxu2 %v1677_v41  ;;  %1809 = vmatmul.f32.gmra.mxu3 %v1678_v62  ;;  %v4856_v41 = vadd.f32 %v4748_v31, %v4758_v40  ;;  %v1680_v8 = vld [vmem:[#allocation2 + $0x11a] sm:$0xff]  ;;  %v4865_v31 = vadd.f32 %v4760_v19, %v4773_v15  ;;  %v4874_v19 = vadd.f32 %v4775_v3, %v4788_v29 }
 0x1dd   : > { %v4883_v3 = vadd.f32 %v4790_v2, %v4800_v43  ;;  %v4892_v2 = vadd.f32 %v4802_v20, %v4815_v56  ;;  %v4901_v20 = vadd.f32 %v4817_v48, %v4823_v13  ;;  %v4910_v48 = vadd.f32 %v4825_v23, %v4841_v63 }
 0x1df   : > { %v1479_v60 = vpop.f32.mrf.mxu2  ;;  %v1762_v59 = vpop.f32.mrf.mxu3 }
 0x1e0   : > { %v4849_v12 = vadd.f32 %v1762_v59, %v1590_v21  ;;  %v1193_v18 = vpop.f32.mrf.mxu1  ;;  %v4851_v46 = vpop.f32.mrf.mxu0 }
 0x1e1   : > { %v1305_v35 = vadd.f32 %v1193_v18, %v4631_v27 }
 0x1e2   : > { %v4919_v23 = vadd.f32 %v4843_v9, %v4849_v12 }
 0x1e3   : > { %1240 = vmatmul.f32.gmra.mxu1 %v1107_v37  ;;  %2098 = vmatmul.f32.gmra.mxu0 %v1965_v36  ;;  %v1591_v50 = vadd.f32 %v1479_v60, %v1305_v35  ;;  %v1109_v35 = vld [vmem:[#allocation2 + $0x111] sm:$0xff]  ;;  %v1967_v37 = vld [vmem:[#allocation2 + $0x123] sm:$0xff] }
 0x1e4   : > { %1529 = vmatmul.f32.gmra.mxu2 %v1678_v62  ;;  %1812 = vmatmul.f32.gmra.mxu3 %v1679_v61  ;;  %v1681_v36 = vld [vmem:[#allocation2 + $0x122] sm:$0xff] }
 0x1e7   : > { %v1482_v30 = vpop.f32.mrf.mxu2  ;;  %v1765_v53 = vpop.f32.mrf.mxu3 }
 0x1e8   : > { %v4858_v5 = vadd.f32 %v1765_v53, %v1591_v50  ;;  %v1196_v52 = vpop.f32.mrf.mxu1  ;;  %v4860_v10 = vpop.f32.mrf.mxu0 }
 0x1e9   : > { %v1306_v27 = vadd.f32 %v1196_v52, %v4648_v49 }
 0x1ea   : > { %v4928_v9 = vadd.f32 %v4851_v46, %v4858_v5 }
 0x1eb   : > { %1243 = vmatmul.f32.gmra.mxu1 %v1108_v11  ;;  %2101 = vmatmul.f32.gmra.mxu0 %v1966_v32  ;;  %v1592_v40 = vadd.f32 %v1482_v30, %v1306_v27  ;;  %v1110_v27 = vld [vmem:[#allocation2 + $0x119] sm:$0xff]  ;;  %v1968_v11 = vld [vmem:[#allocation2 + $0x12b] sm:$0xff] }
 0x1ec   : > { %1532 = vmatmul.f32.gmra.mxu2 %v1679_v61  ;;  %1815 = vmatmul.f32.gmra.mxu3 %v1680_v8  ;;  %v1682_v32 = vld [vmem:[#allocation2 + $0x12a] sm:$0xff] }
 0x1ef   : > { %v1485_v62 = vpop.f32.mrf.mxu2  ;;  %v1768_v21 = vpop.f32.mrf.mxu3 }
 0x1f0   : > { %v4867_v60 = vadd.f32 %v1768_v21, %v1592_v40  ;;  %v1199_v59 = vpop.f32.mrf.mxu1  ;;  %v4869_v18 = vpop.f32.mrf.mxu0 }
 0x1f1   : > { %v1307_v49 = vadd.f32 %v1199_v59, %v4526_v47 }
 0x1f2   : > { %v4937_v46 = vadd.f32 %v4860_v10, %v4867_v60 }
 0x1f3   : > { %1246 = vmatmul.f32.gmra.mxu1 %v1109_v35  ;;  %2104 = vmatmul.f32.gmra.mxu0 %v1967_v37  ;;  %v1593_v15 = vadd.f32 %v1485_v62, %v1307_v49  ;;  %v2219_v35 = vld [vmem:[#allocation2 + $0x14] sm:$0xff]  ;;  %v3077_v37 = vld [vmem:[#allocation2 + $0x26] sm:$0xff] }
 0x1f4   : > { %1535 = vmatmul.f32.gmra.mxu2 %v1680_v8  ;;  %1818 = vmatmul.f32.gmra.mxu3 %v1681_v36  ;;  %v2505_v8 = vld [vmem:[#allocation2 + $0x24] sm:$0xff]  ;;  %v2506_v36 = vld [vmem:[#allocation2 + $0x2c] sm:$0xff] }
 0x1f7   : > { %v1488_v61 = vpop.f32.mrf.mxu2  ;;  %v1771_v50 = vpop.f32.mrf.mxu3 }
 0x1f8   : > { %v4876_v30 = vadd.f32 %v1771_v50, %v1593_v15  ;;  %v1202_v53 = vpop.f32.mrf.mxu1  ;;  %v4878_v52 = vpop.f32.mrf.mxu0  ;;  %v2791_v15 = vld [vmem:[#allocation2 + $0x25] sm:$0xff] }
 0x1f9   : > { %v1308_v47 = vadd.f32 %v1202_v53, %v4543_v28 }
 0x1fa   : > { %v4946_v10 = vadd.f32 %v4869_v18, %v4876_v30 }
 0x1fb   : > { %1249 = vmatmul.f32.gmra.mxu1 %v1110_v27  ;;  %2107 = vmatmul.f32.gmra.mxu0 %v1968_v11  ;;  %v1594_v29 = vadd.f32 %v1488_v61, %v1308_v47  ;;  %v2220_v11 = vld [vmem:[#allocation2 + $0x1c] sm:$0xff] }
 0x1fc   : > { %1821 = vmatmul.f32.gmra.mxu3 %v1682_v32  ;;  %2574 = vmatmul.f32.vlgmr.msra.gmra.mxu2 %v2505_v8  ;;  %v3078_v32 = vld [vmem:[#allocation2 + $0x2e] sm:$0xff] }
 0x1ff   : > { %v1491_v40 = vpop.f32.mrf.mxu2  ;;  %v1774_v62 = vpop.f32.mrf.mxu3 }
 0x200   : > { %v4885_v21 = vadd.f32 %v1774_v62, %v1594_v29  ;;  %v1205_v59 = vpop.f32.mrf.mxu1  ;;  %v4887_v49 = vpop.f32.mrf.mxu0  ;;  %v2507_v29 = vld [vmem:[#allocation2 + $0x34] sm:$0xff] }
 0x201   : > { %v1309_v28 = vadd.f32 %v1205_v59, %v4560_v42  ;;  %v2792_v62 = vld [vmem:[#allocation2 + $0x2d] sm:$0xff] }
 0x202   : > { %v4955_v18 = vadd.f32 %v4878_v52, %v4885_v21 }
 0x203   : > { %2288 = vmatmul.f32.vlgmr.msra.gmra.mxu1 %v2219_v35  ;;  %3146 = vmatmul.f32.vlgmr.msra.gmra.mxu0 %v3077_v37  ;;  %v1595_v43 = vadd.f32 %v1491_v40, %v1309_v28 }
 0x204   : > { %2577 = vmatmul.f32.gmra.mxu2 %v2506_v36  ;;  %2860 = vmatmul.f32.vlgmr.msra.gmra.mxu3 %v2791_v15  ;;  %v3079_v15 = vld [vmem:[#allocation2 + $0x36] sm:$0xff] }
 0x207   : > { %v1494_v61 = vpop.f32.mrf.mxu2  ;;  %v1777_v50 = vpop.f32.mrf.mxu3 }
 0x208   : > { %v4894_v53 = vadd.f32 %v1777_v50, %v1595_v43  ;;  %v1208_v47 = vpop.f32.mrf.mxu1  ;;  %v4896_v27 = vpop.f32.mrf.mxu0  ;;  %v2508_v43 = vld [vmem:[#allocation2 + $0x3c] sm:$0xff] }
 0x209   : > { %v1310_v42 = vadd.f32 %v1208_v47, %v4571_v34  ;;  %v2793_v50 = vld [vmem:[#allocation2 + $0x35] sm:$0xff] }
 0x20a   : > { %v4964_v52 = vadd.f32 %v4887_v49, %v4894_v53 }
 0x20b   : > { %2291 = vmatmul.f32.gmra.mxu1 %v2220_v11  ;;  %3149 = vmatmul.f32.gmra.mxu0 %v3078_v32  ;;  %v1596_v56 = vadd.f32 %v1494_v61, %v1310_v42 }
 0x20c   : > { %2580 = vmatmul.f32.gmra.mxu2 %v2507_v29  ;;  %2863 = vmatmul.f32.gmra.mxu3 %v2792_v62  ;;  %v2509_v62 = vld [vmem:[#allocation2 + $0x44] sm:$0xff] }
 0x20f   : > { %v1497_v40 = vpop.f32.mrf.mxu2  ;;  %v1780_v59 = vpop.f32.mrf.mxu3 }
 0x210   : > { %v4903_v28 = vadd.f32 %v1780_v59, %v1596_v56  ;;  %v1211_v35 = vpop.f32.mrf.mxu1  ;;  %v4905_v37 = vpop.f32.mrf.mxu0  ;;  %v2794_v56 = vld [vmem:[#allocation2 + $0x3d] sm:$0xff] }
 0x211   : > { %v1311_v34 = vadd.f32 %v1211_v35, %v4588_v58 }
 0x212   : > { %v4973_v49 = vadd.f32 %v4896_v27, %v4903_v28 }
 0x213   : > { %2294 = vmatmul.f32.gmra.mxu1 %v2505_v8  ;;  %3152 = vmatmul.f32.gmra.mxu0 %v3079_v15  ;;  %v1597_v13 = vadd.f32 %v1497_v40, %v1311_v34  ;;  %v3080_v8 = vld [vmem:[#allocation2 + $0x3e] sm:$0xff] }
 0x214   : > { %2583 = vmatmul.f32.gmra.mxu2 %v2508_v43  ;;  %2866 = vmatmul.f32.gmra.mxu3 %v2793_v50  ;;  %v2510_v50 = vld [vmem:[#allocation2 + $0x4c] sm:$0xff] }
 0x217   : > { %v1500_v61 = vpop.f32.mrf.mxu2  ;;  %v1783_v47 = vpop.f32.mrf.mxu3 }
 0x218   : > { %v4912_v42 = vadd.f32 %v1783_v47, %v1597_v13  ;;  %v1214_v11 = vpop.f32.mrf.mxu1  ;;  %v4914_v32 = vpop.f32.mrf.mxu0  ;;  %v2795_v13 = vld [vmem:[#allocation2 + $0x45] sm:$0xff] }
 0x219   : > { %v1312_v58 = vadd.f32 %v1214_v11, %v4599_v4 }
 0x21a   : > { %v4982_v27 = vadd.f32 %v4905_v37, %v4912_v42 }
 0x21b   : > { %2297 = vmatmul.f32.gmra.mxu1 %v2506_v36  ;;  %3155 = vmatmul.f32.gmra.mxu0 %v3080_v8  ;;  %v1598_v63 = vadd.f32 %v1500_v61, %v1312_v58  ;;  %v3081_v36 = vld [vmem:[#allocation2 + $0x46] sm:$0xff] }
 0x21c   : > { %2586 = vmatmul.f32.gmra.mxu2 %v2509_v62  ;;  %2869 = vmatmul.f32.gmra.mxu3 %v2794_v56  ;;  %v2511_v56 = vld [vmem:[#allocation2 + $0x54] sm:$0xff] }
 0x21f   : > { %v1503_v40 = vpop.f32.mrf.mxu2  ;;  %v1786_v59 = vpop.f32.mrf.mxu3 }
 0x220   : > { %v4921_v35 = vadd.f32 %v1786_v59, %v1598_v63  ;;  %v1217_v34 = vpop.f32.mrf.mxu1  ;;  %v4923_v15 = vpop.f32.mrf.mxu0  ;;  %v2796_v63 = vld [vmem:[#allocation2 + $0x4d] sm:$0xff] }
 0x221   : > { %v1313_v4 = vadd.f32 %v1217_v34, %v4616_v17 }
 0x222   : > { %v4991_v37 = vadd.f32 %v4914_v32, %v4921_v35 }
 0x223   : > { %2300 = vmatmul.f32.gmra.mxu1 %v2507_v29  ;;  %3158 = vmatmul.f32.gmra.mxu0 %v3081_v36  ;;  %v1599_v12 = vadd.f32 %v1503_v40, %v1313_v4  ;;  %v3082_v29 = vld [vmem:[#allocation2 + $0x4e] sm:$0xff] }
 0x224   : > { %2589 = vmatmul.f32.gmra.mxu2 %v2510_v50  ;;  %2872 = vmatmul.f32.gmra.mxu3 %v2795_v13  ;;  %v2512_v13 = vld [vmem:[#allocation2 + $0x5c] sm:$0xff] }
 0x227   : > { %v1506_v61 = vpop.f32.mrf.mxu2  ;;  %v1789_v47 = vpop.f32.mrf.mxu3 }
 0x228   : > { %v4930_v11 = vadd.f32 %v1789_v47, %v1599_v12  ;;  %v1220_v58 = vpop.f32.mrf.mxu1  ;;  %v4932_v8 = vpop.f32.mrf.mxu0  ;;  %v2797_v12 = vld [vmem:[#allocation2 + $0x55] sm:$0xff] }
 0x229   : > { %v1314_v17 = vadd.f32 %v1220_v58, %v4627_v24 }
 0x22a   : > { %v5000_v32 = vadd.f32 %v4923_v15, %v4930_v11 }
 0x22b   : > { %2303 = vmatmul.f32.gmra.mxu1 %v2508_v43  ;;  %3161 = vmatmul.f32.gmra.mxu0 %v3082_v29  ;;  %v1600_v5 = vadd.f32 %v1506_v61, %v1314_v17  ;;  %v3083_v43 = vld [vmem:[#allocation2 + $0x56] sm:$0xff] }
 0x22c   : > { %2592 = vmatmul.f32.gmra.mxu2 %v2511_v56  ;;  %2875 = vmatmul.f32.gmra.mxu3 %v2796_v63  ;;  %v2513_v63 = vld [vmem:[#allocation2 + $0x64] sm:$0xff] }
 0x22f   : > { %v1509_v40 = vpop.f32.mrf.mxu2  ;;  %v1792_v59 = vpop.f32.mrf.mxu3 }
 0x230   : > { %v4939_v34 = vadd.f32 %v1792_v59, %v1600_v5  ;;  %v1223_v4 = vpop.f32.mrf.mxu1  ;;  %v4941_v36 = vpop.f32.mrf.mxu0  ;;  %v2798_v5 = vld [vmem:[#allocation2 + $0x5d] sm:$0xff] }
 0x231   : > { %v1315_v24 = vadd.f32 %v1223_v4, %v4644_v45 }
 0x232   : > { %v5009_v15 = vadd.f32 %v4932_v8, %v4939_v34 }
 0x233   : > { %2306 = vmatmul.f32.gmra.mxu1 %v2509_v62  ;;  %3164 = vmatmul.f32.gmra.mxu0 %v3083_v43  ;;  %v1601_v60 = vadd.f32 %v1509_v40, %v1315_v24  ;;  %v3084_v62 = vld [vmem:[#allocation2 + $0x5e] sm:$0xff] }
 0x234   : > { %2595 = vmatmul.f32.gmra.mxu2 %v2512_v13  ;;  %2878 = vmatmul.f32.gmra.mxu3 %v2797_v12  ;;  %v2514_v12 = vld [vmem:[#allocation2 + $0x6c] sm:$0xff] }
 0x237   : > { %v1512_v61 = vpop.f32.mrf.mxu2  ;;  %v1795_v47 = vpop.f32.mrf.mxu3 }
 0x238   : > { %v4948_v58 = vadd.f32 %v1795_v47, %v1601_v60  ;;  %v1226_v17 = vpop.f32.mrf.mxu1  ;;  %v4950_v29 = vpop.f32.mrf.mxu0  ;;  %v2799_v60 = vld [vmem:[#allocation2 + $0x65] sm:$0xff] }
 0x239   : > { %v1316_v45 = vadd.f32 %v1226_v17, %v4538_v25 }
 0x23a   : > { %v5018_v8 = vadd.f32 %v4941_v36, %v4948_v58 }
 0x23b   : > { %2309 = vmatmul.f32.gmra.mxu1 %v2510_v50  ;;  %3167 = vmatmul.f32.gmra.mxu0 %v3084_v62  ;;  %v1602_v30 = vadd.f32 %v1512_v61, %v1316_v45  ;;  %v3085_v50 = vld [vmem:[#allocation2 + $0x66] sm:$0xff] }
 0x23c   : > { %2598 = vmatmul.f32.gmra.mxu2 %v2513_v63  ;;  %2881 = vmatmul.f32.gmra.mxu3 %v2798_v5  ;;  %v2515_v5 = vld [vmem:[#allocation2 + $0x74] sm:$0xff] }
 0x23f   : > { %v1515_v40 = vpop.f32.mrf.mxu2  ;;  %v1798_v59 = vpop.f32.mrf.mxu3 }
 0x240   : > { %v4957_v4 = vadd.f32 %v1798_v59, %v1602_v30  ;;  %v1229_v24 = vpop.f32.mrf.mxu1  ;;  %v4959_v43 = vpop.f32.mrf.mxu0  ;;  %v2800_v30 = vld [vmem:[#allocation2 + $0x6d] sm:$0xff] }
 0x241   : > { %v1317_v25 = vadd.f32 %v1229_v24, %v4555_v38 }
 0x242   : > { %v5027_v36 = vadd.f32 %v4950_v29, %v4957_v4 }
 0x243   : > { %2312 = vmatmul.f32.gmra.mxu1 %v2511_v56  ;;  %3170 = vmatmul.f32.gmra.mxu0 %v3085_v50  ;;  %v1603_v21 = vadd.f32 %v1515_v40, %v1317_v25  ;;  %v3086_v56 = vld [vmem:[#allocation2 + $0x6e] sm:$0xff] }
 0x244   : > { %2601 = vmatmul.f32.gmra.mxu2 %v2514_v12  ;;  %2884 = vmatmul.f32.gmra.mxu3 %v2799_v60  ;;  %v2516_v60 = vld [vmem:[#allocation2 + $0x7c] sm:$0xff] }
 0x247   : > { %v1518_v61 = vpop.f32.mrf.mxu2  ;;  %v1801_v47 = vpop.f32.mrf.mxu3 }
 0x248   : > { %v4966_v17 = vadd.f32 %v1801_v47, %v1603_v21  ;;  %v1232_v45 = vpop.f32.mrf.mxu1  ;;  %v4968_v62 = vpop.f32.mrf.mxu0  ;;  %v2801_v21 = vld [vmem:[#allocation2 + $0x75] sm:$0xff] }
 0x249   : > { %v1318_v38 = vadd.f32 %v1232_v45, %v4569_v6 }
 0x24a   : > { %v5034_v29 = vadd.f32 %v4959_v43, %v4966_v17  ;;  %v2808_v43 = vld [vmem:[#allocation2 + $0xad] sm:$0xff] }
 0x24b   : > { %2315 = vmatmul.f32.gmra.mxu1 %v2512_v13  ;;  %3173 = vmatmul.f32.gmra.mxu0 %v3086_v56  ;;  %v1604_v53 = vadd.f32 %v1518_v61, %v1318_v38  ;;  %v3087_v13 = vld [vmem:[#allocation2 + $0x76] sm:$0xff] }
 0x24c   : > { %2604 = vmatmul.f32.gmra.mxu2 %v2515_v5  ;;  %2887 = vmatmul.f32.gmra.mxu3 %v2800_v30  ;;  %v2517_v30 = vld [vmem:[#allocation2 + $0x84] sm:$0xff] }
 0x24f   : > { %v1521_v40 = vpop.f32.mrf.mxu2  ;;  %v1804_v59 = vpop.f32.mrf.mxu3 }
 0x250   : > { %v4975_v24 = vadd.f32 %v1804_v59, %v1604_v53  ;;  %v1235_v25 = vpop.f32.mrf.mxu1  ;;  %v4977_v50 = vpop.f32.mrf.mxu0  ;;  %v2802_v53 = vld [vmem:[#allocation2 + $0x7d] sm:$0xff] }
 0x251   : > { %v1319_v6 = vadd.f32 %v1235_v25, %v4586_v57 }
 0x253   : > { %2318 = vmatmul.f32.gmra.mxu1 %v2513_v63  ;;  %3176 = vmatmul.f32.gmra.mxu0 %v3087_v13  ;;  %v1605_v28 = vadd.f32 %v1521_v40, %v1319_v6  ;;  %v3088_v63 = vld [vmem:[#allocation2 + $0x7e] sm:$0xff] }
 0x254   : > { %2607 = vmatmul.f32.gmra.mxu2 %v2516_v60  ;;  %2890 = vmatmul.f32.gmra.mxu3 %v2801_v21  ;;  %v2518_v21 = vld [vmem:[#allocation2 + $0x8c] sm:$0xff] }
 0x257   : > { %v1524_v61 = vpop.f32.mrf.mxu2  ;;  %v1807_v47 = vpop.f32.mrf.mxu3 }
 0x258   : > { %v4984_v45 = vadd.f32 %v1807_v47, %v1605_v28  ;;  %v1238_v38 = vpop.f32.mrf.mxu1  ;;  %v4986_v56 = vpop.f32.mrf.mxu0  ;;  %v2803_v28 = vld [vmem:[#allocation2 + $0x85] sm:$0xff] }
 0x259   : > { %v1320_v57 = vadd.f32 %v1238_v38, %v4597_v1 }
 0x25b   : > { %2321 = vmatmul.f32.gmra.mxu1 %v2514_v12  ;;  %3179 = vmatmul.f32.gmra.mxu0 %v3088_v63  ;;  %v1606_v42 = vadd.f32 %v1524_v61, %v1320_v57  ;;  %v3089_v12 = vld [vmem:[#allocation2 + $0x86] sm:$0xff] }
 0x25c   : > { %2610 = vmatmul.f32.gmra.mxu2 %v2517_v30  ;;  %2893 = vmatmul.f32.gmra.mxu3 %v2802_v53  ;;  %v2519_v53 = vld [vmem:[#allocation2 + $0x94] sm:$0xff] }
 0x25f   : > { %v1527_v40 = vpop.f32.mrf.mxu2  ;;  %v1810_v59 = vpop.f32.mrf.mxu3 }
 0x260   : > { %v4993_v25 = vadd.f32 %v1810_v59, %v1606_v42  ;;  %v1241_v6 = vpop.f32.mrf.mxu1  ;;  %v4995_v13 = vpop.f32.mrf.mxu0  ;;  %v2804_v42 = vld [vmem:[#allocation2 + $0x8d] sm:$0xff] }
 0x261   : > { %v1321_v1 = vadd.f32 %v1241_v6, %v4611_v14 }
 0x263   : > { %2324 = vmatmul.f32.gmra.mxu1 %v2515_v5  ;;  %3182 = vmatmul.f32.gmra.mxu0 %v3089_v12  ;;  %v1607_v35 = vadd.f32 %v1527_v40, %v1321_v1  ;;  %v3090_v5 = vld [vmem:[#allocation2 + $0x8e] sm:$0xff] }
 0x264   : > { %2613 = vmatmul.f32.gmra.mxu2 %v2518_v21  ;;  %2896 = vmatmul.f32.gmra.mxu3 %v2803_v28  ;;  %v2520_v28 = vld [vmem:[#allocation2 + $0x9c] sm:$0xff] }
 0x267   : > { %v1530_v61 = vpop.f32.mrf.mxu2  ;;  %v1813_v47 = vpop.f32.mrf.mxu3 }
 0x268   : > { %v5002_v38 = vadd.f32 %v1813_v47, %v1607_v35  ;;  %v1244_v57 = vpop.f32.mrf.mxu1  ;;  %v5004_v63 = vpop.f32.mrf.mxu0  ;;  %v2805_v35 = vld [vmem:[#allocation2 + $0x95] sm:$0xff] }
 0x269   : > { %v1322_v14 = vadd.f32 %v1244_v57, %v4625_v55 }
 0x26b   : > { %2327 = vmatmul.f32.gmra.mxu1 %v2516_v60  ;;  %3185 = vmatmul.f32.gmra.mxu0 %v3090_v5  ;;  %v1608_v11 = vadd.f32 %v1530_v61, %v1322_v14  ;;  %v3091_v60 = vld [vmem:[#allocation2 + $0x96] sm:$0xff] }
 0x26c   : > { %2616 = vmatmul.f32.gmra.mxu2 %v2519_v53  ;;  %2899 = vmatmul.f32.gmra.mxu3 %v2804_v42  ;;  %v2521_v42 = vld [vmem:[#allocation2 + $0xa4] sm:$0xff] }
 0x26f   : > { %v1533_v40 = vpop.f32.mrf.mxu2  ;;  %v1816_v59 = vpop.f32.mrf.mxu3 }
 0x270   : > { %v5011_v6 = vadd.f32 %v1816_v59, %v1608_v11  ;;  %v1247_v1 = vpop.f32.mrf.mxu1  ;;  %v5013_v12 = vpop.f32.mrf.mxu0  ;;  %v2806_v11 = vld [vmem:[#allocation2 + $0x9d] sm:$0xff] }
 0x271   : > { %v1323_v55 = vadd.f32 %v1247_v1, %v4642_v44 }
 0x273   : > { %2330 = vmatmul.f32.gmra.mxu1 %v2517_v30  ;;  %3188 = vmatmul.f32.gmra.mxu0 %v3091_v60  ;;  %v1609_v34 = vadd.f32 %v1533_v40, %v1323_v55  ;;  %v3092_v30 = vld [vmem:[#allocation2 + $0x9e] sm:$0xff] }
 0x274   : > { %2619 = vmatmul.f32.gmra.mxu2 %v2520_v28  ;;  %2902 = vmatmul.f32.gmra.mxu3 %v2805_v35  ;;  %v2522_v35 = vld [vmem:[#allocation2 + $0xac] sm:$0xff] }
 0x277   : > { %v1536_v61 = vpop.f32.mrf.mxu2  ;;  %v1819_v47 = vpop.f32.mrf.mxu3 }
 0x278   : > { %v5020_v57 = vadd.f32 %v1819_v47, %v1609_v34  ;;  %v1250_v14 = vpop.f32.mrf.mxu1  ;;  %v5022_v5 = vpop.f32.mrf.mxu0  ;;  %v2807_v34 = vld [vmem:[#allocation2 + $0xa5] sm:$0xff] }
 0x279   : > { %v1324_v44 = vadd.f32 %v1250_v14, %v4653_v54 }
 0x27b   : > { %2333 = vmatmul.f32.gmra.mxu1 %v2518_v21  ;;  %3191 = vmatmul.f32.gmra.mxu0 %v3092_v30  ;;  %v1610_v58 = vadd.f32 %v1536_v61, %v1324_v44  ;;  %v3093_v21 = vld [vmem:[#allocation2 + $0xa6] sm:$0xff] }
 0x27c   : > { %2622 = vmatmul.f32.gmra.mxu2 %v2521_v42  ;;  %2905 = vmatmul.f32.gmra.mxu3 %v2806_v11 }
 0x27f   : > { %v1822_v40 = vpop.f32.mrf.mxu3  ;;  %v2575_v59 = vpop.f32.mrf.mxu2 }
 0x280   : > { %v5029_v1 = vadd.f32 %v1822_v40, %v1610_v58  ;;  %v2289_v55 = vpop.f32.mrf.mxu1  ;;  %v3147_v60 = vpop.f32.mrf.mxu0  ;;  %v3094_v58 = vld [vmem:[#allocation2 + $0xae] sm:$0xff] }
 0x281   : > { %v2433_v54 = vadd.f32 %v2289_v55, %v4726_v51  ;;  %v5039_v51 = vld [vmem:[%s5195_s5] ss:$0 sm:$0xff]  ;;  %v2523_v40 = vld [vmem:[#allocation2 + $0xb4] sm:$0xff] }
 0x283   : > { %2336 = vmatmul.f32.gmra.mxu1 %v2519_v53  ;;  %3194 = vmatmul.f32.gmra.mxu0 %v3093_v21  ;;  %v2719_v4 = vadd.f32 %v2575_v59, %v2433_v54  ;;  %v5046_v59 = vadd.f32 %v4968_v62, %v4975_v24  ;;  %v3095_v24 = vld [vmem:[#allocation2 + $0xb6] sm:$0xff] }
 0x284   : > { %2625 = vmatmul.f32.gmra.mxu2 %v2522_v35  ;;  %2908 = vmatmul.f32.gmra.mxu3 %v2807_v34 }
 0x287   : > { %v2578_v61 = vpop.f32.mrf.mxu2  ;;  %v2861_v47 = vpop.f32.mrf.mxu3 }
 0x288   : > { %v3005_v14 = vadd.f32 %v2861_v47, %v2719_v4  ;;  %v2292_v44 = vpop.f32.mrf.mxu1  ;;  %v3150_v53 = vpop.f32.mrf.mxu0 }
 0x289   : > { %v2434_v11 = vadd.f32 %v2292_v44, %v4744_v26  ;;  %v2809_v44 = vld [vmem:[#allocation2 + $0xb5] sm:$0xff] }
 0x28a   : > { %v3291_v30 = vadd.f32 %v3147_v60, %v3005_v14  ;;  %v2524_v14 = vld [vmem:[#allocation2 + $0xbc] sm:$0xff] }
 0x28b   : > { %2339 = vmatmul.f32.gmra.mxu1 %v2520_v28  ;;  %3197 = vmatmul.f32.gmra.mxu0 %v3094_v58  ;;  %v2720_v28 = vadd.f32 %v2578_v61, %v2434_v11  ;;  %v5058_v61 = vadd.f32 %v4977_v50, %v4984_v45  ;;  %v5065_v45 = vadd.f32 %v4986_v56, %v4993_v25 }
 0x28c   : > { %v3403_v17 = vadd.f32 %v5039_v51, %v3291_v30  ;;  %2628 = vmatmul.f32.gmra.mxu2 %v2523_v40  ;;  %2911 = vmatmul.f32.gmra.mxu3 %v2808_v43  ;;  %v5072_v25 = vadd.f32 %v4995_v13, %v5002_v38  ;;  %v5079_v38 = vadd.f32 %v5004_v63, %v5011_v6 }
 0x28d   : > { %v5086_v6 = vadd.f32 %v5013_v12, %v5020_v57  ;;  %v5093_v57 = vadd.f32 %v5022_v5, %v5029_v1 }
 0x28e   : > { %vm3439_vm9 = vcmp.ge.f32.partialorder %v3403_v17, 0.0  ;;  %v3475_v26 = vmul.f32 0.1, %v3403_v17 }
 0x28f   : > { %v2581_v55 = vpop.f32.mrf.mxu2  ;;  %v2864_v60 = vpop.f32.mrf.mxu3 }
 0x290   : > { %v3511_v54 = vsel %vm3439_vm9, %v3403_v17, %v3475_v26  ;;  %v3006_v21 = vadd.f32 %v2864_v60, %v2720_v28  ;;  %v2295_v34 = vpop.f32.mrf.mxu1  ;;  %v3153_v4 = vpop.f32.mrf.mxu0 }
 0x291   : > { %3547 = vst [vmem:[%s5051_s22] sm:$0xff] %v3511_v54  ;;  %v2435_v62 = vadd.f32 %v2295_v34, %v4756_v33  ;;  %v3096_v54 = vld [vmem:[#allocation2 + $0xbe] sm:$0xff] }
 0x292   : > { %v3292_v47 = vadd.f32 %v3150_v53, %v3006_v21  ;;  %v2525_v21 = vld [vmem:[#allocation2 + $0xc4] sm:$0xff] }
 0x293   : > { %2342 = vmatmul.f32.gmra.mxu1 %v2521_v42  ;;  %3200 = vmatmul.f32.gmra.mxu0 %v3095_v24  ;;  %v2721_v58 = vadd.f32 %v2581_v55, %v2435_v62  ;;  %v2810_v34 = vld [vmem:[#allocation2 + $0xbd] sm:$0xff] }
 0x294   : > { %v3404_v30 = vadd.f32 %v5039_v51, %v3292_v47  ;;  %2631 = vmatmul.f32.gmra.mxu2 %v2524_v14  ;;  %2914 = vmatmul.f32.gmra.mxu3 %v2809_v44 }
 0x296   : > { %vm3440_vm10 = vcmp.ge.f32.partialorder %v3404_v30, 0.0  ;;  %v3476_v11 = vmul.f32 0.1, %v3404_v30 }
 0x297   : > { %v2584_v53 = vpop.f32.mrf.mxu2  ;;  %v2867_v43 = vpop.f32.mrf.mxu3 }
 0x298   : > { %v3512_v33 = vsel %vm3440_vm10, %v3404_v30, %v3476_v11  ;;  %v3007_v17 = vadd.f32 %v2867_v43, %v2721_v58  ;;  %v2298_v42 = vpop.f32.mrf.mxu1  ;;  %v3156_v26 = vpop.f32.mrf.mxu0  ;;  %v3097_v58 = vld [vmem:[#allocation2 + $0xc6] sm:$0xff] }
 0x299   : > { %3548 = vst [vmem:[%s5051_s22 + $0x8] sm:$0xff] %v3512_v33  ;;  %v2436_v60 = vadd.f32 %v2298_v42, %v4771_v22  ;;  %v2526_v43 = vld [vmem:[#allocation2 + $0xcc] sm:$0xff] }
 0x29a   : > { %v3293_v28 = vadd.f32 %v3153_v4, %v3007_v17  ;;  %v2811_v33 = vld [vmem:[#allocation2 + $0xc5] sm:$0xff] }
 0x29b   : > { %2345 = vmatmul.f32.gmra.mxu1 %v2522_v35  ;;  %3203 = vmatmul.f32.gmra.mxu0 %v3096_v54  ;;  %v2722_v47 = vadd.f32 %v2584_v53, %v2436_v60 }
 0x29c   : > { %v3405_v50 = vadd.f32 %v5039_v51, %v3293_v28  ;;  %2634 = vmatmul.f32.gmra.mxu2 %v2525_v21  ;;  %2917 = vmatmul.f32.gmra.mxu3 %v2810_v34 }
 0x29e   : > { %vm3441_vm11 = vcmp.ge.f32.partialorder %v3405_v50, 0.0  ;;  %v3477_v55 = vmul.f32 0.1, %v3405_v50 }
 0x29f   : > { %v2587_v4 = vpop.f32.mrf.mxu2  ;;  %v2870_v62 = vpop.f32.mrf.mxu3 }
 0x2a0   : > { %v3513_v22 = vsel %vm3441_vm11, %v3405_v50, %v3477_v55  ;;  %v3008_v24 = vadd.f32 %v2870_v62, %v2722_v47  ;;  %v2301_v35 = vpop.f32.mrf.mxu1  ;;  %v3159_v44 = vpop.f32.mrf.mxu0  ;;  %v3098_v50 = vld [vmem:[#allocation2 + $0xce] sm:$0xff] }
 0x2a1   : > { %3549 = vst [vmem:[%s5051_s22 + $0x10] sm:$0xff] %v3513_v22  ;;  %v2437_v11 = vadd.f32 %v2301_v35, %v4786_v39  ;;  %v2527_v55 = vld [vmem:[#allocation2 + $0xd4] sm:$0xff] }
 0x2a2   : > { %v3294_v30 = vadd.f32 %v3156_v26, %v3008_v24  ;;  %v2812_v47 = vld [vmem:[#allocation2 + $0xcd] sm:$0xff] }
 0x2a3   : > { %2348 = vmatmul.f32.gmra.mxu1 %v2523_v40  ;;  %3206 = vmatmul.f32.gmra.mxu0 %v3097_v58  ;;  %v2723_v17 = vadd.f32 %v2587_v4, %v2437_v11  ;;  %v3099_v58 = vld [vmem:[#allocation2 + $0xd6] sm:$0xff] }
 0x2a4   : > { %v3406_v56 = vadd.f32 %v5039_v51, %v3294_v30  ;;  %2637 = vmatmul.f32.gmra.mxu2 %v2526_v43  ;;  %2920 = vmatmul.f32.gmra.mxu3 %v2811_v33  ;;  %v2528_v33 = vld [vmem:[#allocation2 + $0xdc] sm:$0xff] }
 0x2a6   : > { %vm3442_vm12 = vcmp.ge.f32.partialorder %v3406_v56, 0.0  ;;  %v3478_v53 = vmul.f32 0.1, %v3406_v56 }
 0x2a7   : > { %v2590_v42 = vpop.f32.mrf.mxu2  ;;  %v2873_v26 = vpop.f32.mrf.mxu3 }
 0x2a8   : > { %v3514_v39 = vsel %vm3442_vm12, %v3406_v56, %v3478_v53  ;;  %v3009_v28 = vadd.f32 %v2873_v26, %v2723_v17  ;;  %v2304_v40 = vpop.f32.mrf.mxu1  ;;  %v3162_v60 = vpop.f32.mrf.mxu0  ;;  %v2813_v56 = vld [vmem:[#allocation2 + $0xd5] sm:$0xff] }
 0x2a9   : > { %3550 = vst [vmem:[%s5051_s22 + $0x18] sm:$0xff] %v3514_v39  ;;  %v2438_v34 = vadd.f32 %v2304_v40, %v4798_v0 }
 0x2aa   : > { %v3295_v54 = vadd.f32 %v3159_v44, %v3009_v28 }
 0x2ab   : > { %2351 = vmatmul.f32.gmra.mxu1 %v2524_v14  ;;  %3209 = vmatmul.f32.gmra.mxu0 %v3098_v50  ;;  %v2724_v62 = vadd.f32 %v2590_v42, %v2438_v34  ;;  %v2529_v34 = vld [vmem:[#allocation2 + $0xe4] sm:$0xff] }
 0x2ac   : > { %v3407_v13 = vadd.f32 %v5039_v51, %v3295_v54  ;;  %2640 = vmatmul.f32.gmra.mxu2 %v2527_v55  ;;  %2923 = vmatmul.f32.gmra.mxu3 %v2812_v47  ;;  %v3100_v54 = vld [vmem:[#allocation2 + $0xde] sm:$0xff] }
 0x2ad   : > { %v2814_v50 = vld [vmem:[#allocation2 + $0xdd] sm:$0xff] }
 0x2ae   : > { %vm3443_vm13 = vcmp.ge.f32.partialorder %v3407_v13, 0.0  ;;  %v3479_v4 = vmul.f32 0.1, %v3407_v13 }
 0x2af   : > { %v2593_v22 = vpop.f32.mrf.mxu2  ;;  %v2876_v24 = vpop.f32.mrf.mxu3 }
 0x2b0   : > { %v3515_v0 = vsel %vm3443_vm13, %v3407_v13, %v3479_v4  ;;  %v3010_v35 = vadd.f32 %v2876_v24, %v2724_v62  ;;  %v2307_v14 = vpop.f32.mrf.mxu1  ;;  %v3165_v44 = vpop.f32.mrf.mxu0 }
 0x2b1   : > { %3551 = vst [vmem:[%s5051_s22 + $0x20] sm:$0xff] %v3515_v0  ;;  %v2439_v11 = vadd.f32 %v2307_v14, %v4813_v7  ;;  %v3101_v14 = vld [vmem:[#allocation2 + $0xe6] sm:$0xff] }
 0x2b2   : > { %v3296_v30 = vadd.f32 %v3162_v60, %v3010_v35 }
 0x2b3   : > { %2354 = vmatmul.f32.gmra.mxu1 %v2525_v21  ;;  %3212 = vmatmul.f32.gmra.mxu0 %v3099_v58  ;;  %v2725_v17 = vadd.f32 %v2593_v22, %v2439_v11 }
 0x2b4   : > { %v3408_v63 = vadd.f32 %v5039_v51, %v3296_v30  ;;  %2643 = vmatmul.f32.gmra.mxu2 %v2528_v33  ;;  %2926 = vmatmul.f32.gmra.mxu3 %v2813_v56  ;;  %v2815_v30 = vld [vmem:[#allocation2 + $0xe5] sm:$0xff] }
 0x2b6   : > { %vm3444_vm14 = vcmp.ge.f32.partialorder %v3408_v63, 0.0  ;;  %v3480_v53 = vmul.f32 0.1, %v3408_v63 }
 0x2b7   : > { %v2596_v42 = vpop.f32.mrf.mxu2  ;;  %v2879_v26 = vpop.f32.mrf.mxu3 }
 0x2b8   : > { %v3516_v7 = vsel %vm3444_vm14, %v3408_v63, %v3480_v53  ;;  %v3011_v39 = vadd.f32 %v2879_v26, %v2725_v17  ;;  %v2310_v21 = vpop.f32.mrf.mxu1  ;;  %v3168_v28 = vpop.f32.mrf.mxu0  ;;  %v3102_v26 = vld [vmem:[#allocation2 + $0xee] sm:$0xff] }
 0x2b9   : > { %3552 = vst [vmem:[%s5051_s22 + $0x28] sm:$0xff] %v3516_v7  ;;  %v2440_v60 = vadd.f32 %v2310_v21, %v4839_v16  ;;  %v2531_v7 = vld [vmem:[#allocation2 + $0xf4] sm:$0xff] }
 0x2ba   : > { %v3297_v40 = vadd.f32 %v3165_v44, %v3011_v39  ;;  %v2530_v44 = vld [vmem:[#allocation2 + $0xec] sm:$0xff] }
 0x2bb   : > { %2357 = vmatmul.f32.gmra.mxu1 %v2526_v43  ;;  %3215 = vmatmul.f32.gmra.mxu0 %v3100_v54  ;;  %v2726_v13 = vadd.f32 %v2596_v42, %v2440_v60  ;;  %v2816_v39 = vld [vmem:[#allocation2 + $0xed] sm:$0xff] }
 0x2bc   : > { %v3409_v12 = vadd.f32 %v5039_v51, %v3297_v40  ;;  %2646 = vmatmul.f32.gmra.mxu2 %v2529_v34  ;;  %2929 = vmatmul.f32.gmra.mxu3 %v2814_v50 }
 0x2be   : > { %vm3445_vm15 = vcmp.ge.f32.partialorder %v3409_v12, 0.0  ;;  %v3481_v47 = vmul.f32 0.1, %v3409_v12 }
 0x2bf   : > { %v2599_v4 = vpop.f32.mrf.mxu2  ;;  %v2882_v62 = vpop.f32.mrf.mxu3 }
 0x2c0   : > { %v3517_v16 = vsel %vm3445_vm15, %v3409_v12, %v3481_v47  ;;  %v3012_v22 = vadd.f32 %v2882_v62, %v2726_v13  ;;  %v2313_v43 = vpop.f32.mrf.mxu1  ;;  %v3171_v24 = vpop.f32.mrf.mxu0  ;;  %v2532_v62 = vld [vmem:[#allocation2 + $0xfc] sm:$0xff] }
 0x2c1   : > { %3553 = vst [vmem:[%s5051_s22 + $0x30] sm:$0xff] %v3517_v16  ;;  %v2441_v35 = vadd.f32 %v2313_v43, %v4856_v41  ;;  %v2817_v16 = vld [vmem:[#allocation2 + $0xf5] sm:$0xff] }
 0x2c2   : > { %v3298_v0 = vadd.f32 %v3168_v28, %v3012_v22 }
 0x2c3   : > { %2360 = vmatmul.f32.gmra.mxu1 %v2527_v55  ;;  %3218 = vmatmul.f32.gmra.mxu0 %v3101_v14  ;;  %v2727_v11 = vadd.f32 %v2599_v4, %v2441_v35  ;;  %v3103_v4 = vld [vmem:[#allocation2 + $0xf6] sm:$0xff] }
 0x2c4   : > { %v3410_v5 = vadd.f32 %v5039_v51, %v3298_v0  ;;  %2649 = vmatmul.f32.gmra.mxu2 %v2530_v44  ;;  %2932 = vmatmul.f32.gmra.mxu3 %v2815_v30 }
 0x2c6   : > { %vm3446_vm0 = vcmp.ge.f32.partialorder %v3410_v5, 0.0  ;;  %v3482_v1 = vmul.f32 0.1, %v3410_v5 }
 0x2c7   : > { %v2602_v58 = vpop.f32.mrf.mxu2  ;;  %v2885_v56 = vpop.f32.mrf.mxu3 }
 0x2c8   : > { %v3518_v63 = vsel %vm3446_vm0, %v3410_v5, %v3482_v1  ;;  %v3013_v53 = vadd.f32 %v2885_v56, %v2727_v11  ;;  %v2316_v17 = vpop.f32.mrf.mxu1  ;;  %v3174_v42 = vpop.f32.mrf.mxu0  ;;  %v3104_v11 = vld [vmem:[#allocation2 + $0xfe] sm:$0xff] }
 0x2c9   : > { %3554 = vst [vmem:[%s5051_s22 + $0x38] sm:$0xff] %v3518_v63  ;;  %v2442_v55 = vadd.f32 %v2316_v17, %v4865_v31  ;;  %v2818_v56 = vld [vmem:[#allocation2 + $0xfd] sm:$0xff] }
 0x2ca   : > { %v3299_v41 = vadd.f32 %v3171_v24, %v3013_v53 }
 0x2cb   : > { %2363 = vmatmul.f32.gmra.mxu1 %v2528_v33  ;;  %3221 = vmatmul.f32.gmra.mxu0 %v3102_v26  ;;  %v2728_v40 = vadd.f32 %v2602_v58, %v2442_v55  ;;  %v2533_v58 = vld [vmem:[#allocation2 + $0x104] sm:$0xff] }
 0x2cc   : > { %v3411_v21 = vadd.f32 %v5039_v51, %v3299_v41  ;;  %2652 = vmatmul.f32.gmra.mxu2 %v2531_v7  ;;  %2935 = vmatmul.f32.gmra.mxu3 %v2816_v39 }
 0x2ce   : > { %vm3447_vm1 = vcmp.ge.f32.partialorder %v3411_v21, 0.0  ;;  %v3483_v28 = vmul.f32 0.1, %v3411_v21 }
 0x2cf   : > { %v2605_v60 = vpop.f32.mrf.mxu2  ;;  %v2888_v54 = vpop.f32.mrf.mxu3 }
 0x2d0   : > { %v3519_v50 = vsel %vm3447_vm1, %v3411_v21, %v3483_v28  ;;  %v3014_v12 = vadd.f32 %v2888_v54, %v2728_v40  ;;  %v2319_v47 = vpop.f32.mrf.mxu1  ;;  %v3177_v13 = vpop.f32.mrf.mxu0  ;;  %v3105_v28 = vld [vmem:[#allocation2 + $0x106] sm:$0xff] }
 0x2d1   : > { %3555 = vst [vmem:[%s5051_s22 + $0x40] sm:$0xff] %v3519_v50  ;;  %v2443_v33 = vadd.f32 %v2319_v47, %v4874_v19  ;;  %v2534_v40 = vld [vmem:[#allocation2 + $0x10c] sm:$0xff] }
 0x2d2   : > { %v3300_v31 = vadd.f32 %v3174_v42, %v3014_v12 }
 0x2d3   : > { %2366 = vmatmul.f32.gmra.mxu1 %v2529_v34  ;;  %3224 = vmatmul.f32.gmra.mxu0 %v3103_v4  ;;  %v2729_v24 = vadd.f32 %v2605_v60, %v2443_v33  ;;  %v2819_v60 = vld [vmem:[#allocation2 + $0x105] sm:$0xff] }
 0x2d4   : > { %v3412_v22 = vadd.f32 %v5039_v51, %v3300_v31  ;;  %2655 = vmatmul.f32.gmra.mxu2 %v2532_v62  ;;  %2938 = vmatmul.f32.gmra.mxu3 %v2817_v16 }
 0x2d6   : > { %vm3448_vm2 = vcmp.ge.f32.partialorder %v3412_v22, 0.0  ;;  %v3484_v43 = vmul.f32 0.1, %v3412_v22 }
 0x2d7   : > { %v2608_v0 = vpop.f32.mrf.mxu2  ;;  %v2891_v35 = vpop.f32.mrf.mxu3 }
 0x2d8   : > { %v3520_v14 = vsel %vm3448_vm2, %v3412_v22, %v3484_v43  ;;  %v3015_v30 = vadd.f32 %v2891_v35, %v2729_v24  ;;  %v2322_v5 = vpop.f32.mrf.mxu1  ;;  %v3180_v1 = vpop.f32.mrf.mxu0  ;;  %v3106_v22 = vld [vmem:[#allocation2 + $0x10e] sm:$0xff] }
 0x2d9   : > { %3556 = vst [vmem:[%s5051_s22 + $0x48] sm:$0xff] %v3520_v14  ;;  %v2444_v34 = vadd.f32 %v2322_v5, %v4883_v3  ;;  %v2535_v43 = vld [vmem:[#allocation2 + $0x114] sm:$0xff] }
 0x2da   : > { %v3301_v19 = vadd.f32 %v3177_v13, %v3015_v30  ;;  %v2820_v24 = vld [vmem:[#allocation2 + $0x10d] sm:$0xff] }
 0x2db   : > { %2369 = vmatmul.f32.gmra.mxu1 %v2530_v44  ;;  %3227 = vmatmul.f32.gmra.mxu0 %v3104_v11  ;;  %v2730_v17 = vadd.f32 %v2608_v0, %v2444_v34 }
 0x2dc   : > { %v3413_v63 = vadd.f32 %v5039_v51, %v3301_v19  ;;  %2658 = vmatmul.f32.gmra.mxu2 %v2533_v58  ;;  %2941 = vmatmul.f32.gmra.mxu3 %v2818_v56  ;;  %v3107_v56 = vld [vmem:[#allocation2 + $0x116] sm:$0xff] }
 0x2de   : > { %vm3449_vm3 = vcmp.ge.f32.partialorder %v3413_v63, 0.0  ;;  %v3485_v53 = vmul.f32 0.1, %v3413_v63 }
 0x2df   : > { %v2611_v42 = vpop.f32.mrf.mxu2  ;;  %v2894_v41 = vpop.f32.mrf.mxu3 }
 0x2e0   : > { %v3521_v55 = vsel %vm3449_vm3, %v3413_v63, %v3485_v53  ;;  %v3016_v26 = vadd.f32 %v2894_v41, %v2730_v17  ;;  %v2325_v39 = vpop.f32.mrf.mxu1  ;;  %v3183_v21 = vpop.f32.mrf.mxu0  ;;  %v2536_v63 = vld [vmem:[#allocation2 + $0x11c] sm:$0xff] }
 0x2e1   : > { %3557 = vst [vmem:[%s5051_s22 + $0x50] sm:$0xff] %v3521_v55  ;;  %v2445_v44 = vadd.f32 %v2325_v39, %v4892_v2  ;;  %v2821_v53 = vld [vmem:[#allocation2 + $0x115] sm:$0xff] }
 0x2e2   : > { %v3302_v3 = vadd.f32 %v3180_v1, %v3016_v26 }
 0x2e3   : > { %2372 = vmatmul.f32.gmra.mxu1 %v2531_v7  ;;  %3230 = vmatmul.f32.gmra.mxu0 %v3105_v28  ;;  %v2731_v12 = vadd.f32 %v2611_v42, %v2445_v44  ;;  %v3108_v28 = vld [vmem:[#allocation2 + $0x11e] sm:$0xff] }
 0x2e4   : > { %v3414_v54 = vadd.f32 %v5039_v51, %v3302_v3  ;;  %2661 = vmatmul.f32.gmra.mxu2 %v2534_v40  ;;  %2944 = vmatmul.f32.gmra.mxu3 %v2819_v60  ;;  %v2537_v60 = vld [vmem:[#allocation2 + $0x124] sm:$0xff] }
 0x2e6   : > { %vm3450_vm4 = vcmp.ge.f32.partialorder %v3414_v54, 0.0  ;;  %v3486_v50 = vmul.f32 0.1, %v3414_v54 }
 0x2e7   : > { %v2614_v47 = vpop.f32.mrf.mxu2  ;;  %v2897_v13 = vpop.f32.mrf.mxu3 }
 0x2e8   : > { %v3522_v31 = vsel %vm3450_vm4, %v3414_v54, %v3486_v50  ;;  %v3017_v33 = vadd.f32 %v2897_v13, %v2731_v12  ;;  %v2328_v4 = vpop.f32.mrf.mxu1  ;;  %v3186_v16 = vpop.f32.mrf.mxu0  ;;  %v2822_v54 = vld [vmem:[#allocation2 + $0x11d] sm:$0xff] }
 0x2e9   : > { %3558 = vst [vmem:[%s5051_s22 + $0x58] sm:$0xff] %v3522_v31  ;;  %v2446_v7 = vadd.f32 %v2328_v4, %v4901_v20 }
 0x2ea   : > { %v3303_v2 = vadd.f32 %v3183_v21, %v3017_v33 }
 0x2eb   : > { %2375 = vmatmul.f32.gmra.mxu1 %v2532_v62  ;;  %3233 = vmatmul.f32.gmra.mxu0 %v3106_v22  ;;  %v2732_v14 = vadd.f32 %v2614_v47, %v2446_v7  ;;  %v3109_v7 = vld [vmem:[#allocation2 + $0x126] sm:$0xff] }
 0x2ec   : > { %v3415_v0 = vadd.f32 %v5039_v51, %v3303_v2  ;;  %2664 = vmatmul.f32.gmra.mxu2 %v2535_v43  ;;  %2947 = vmatmul.f32.gmra.mxu3 %v2820_v24  ;;  %v2538_v22 = vld [vmem:[#allocation2 + $0x12c] sm:$0xff] }
 0x2ed   : > { %v2823_v24 = vld [vmem:[#allocation2 + $0x125] sm:$0xff] }
 0x2ee   : > { %vm3451_vm5 = vcmp.ge.f32.partialorder %v3415_v0, 0.0  ;;  %v3487_v35 = vmul.f32 0.1, %v3415_v0 }
 0x2ef   : > { %v2617_v30 = vpop.f32.mrf.mxu2  ;;  %v2900_v5 = vpop.f32.mrf.mxu3 }
 0x2f0   : > { %v3523_v1 = vsel %vm3451_vm5, %v3415_v0, %v3487_v35  ;;  %v3018_v19 = vadd.f32 %v2900_v5, %v2732_v14  ;;  %v2331_v34 = vpop.f32.mrf.mxu1  ;;  %v3189_v11 = vpop.f32.mrf.mxu0 }
 0x2f1   : > { %3559 = vst [vmem:[%s5051_s22 + $0x60] sm:$0xff] %v3523_v1  ;;  %v2447_v62 = vadd.f32 %v2331_v34, %v4910_v48 }
 0x2f2   : > { %v3304_v20 = vadd.f32 %v3186_v16, %v3018_v19 }
 0x2f3   : > { %2378 = vmatmul.f32.gmra.mxu1 %v2533_v58  ;;  %3236 = vmatmul.f32.gmra.mxu0 %v3107_v56  ;;  %v2733_v41 = vadd.f32 %v2617_v30, %v2447_v62  ;;  %v2539_v62 = vld [vmem:[#allocation2 + $0x134] sm:$0xff] }
 0x2f4   : > { %v3416_v17 = vadd.f32 %v5039_v51, %v3304_v20  ;;  %2667 = vmatmul.f32.gmra.mxu2 %v2536_v63  ;;  %2950 = vmatmul.f32.gmra.mxu3 %v2821_v53  ;;  %v3110_v20 = vld [vmem:[#allocation2 + $0x12e] sm:$0xff] }
 0x2f5   : > { %v2824_v56 = vld [vmem:[#allocation2 + $0x12d] sm:$0xff] }
 0x2f6   : > { %vm3452_vm6 = vcmp.ge.f32.partialorder %v3416_v17, 0.0  ;;  %v3488_v42 = vmul.f32 0.1, %v3416_v17 }
 0x2f7   : > { %v2620_v55 = vpop.f32.mrf.mxu2  ;;  %v2903_v26 = vpop.f32.mrf.mxu3 }
 0x2f8   : > { %v3524_v39 = vsel %vm3452_vm6, %v3416_v17, %v3488_v42  ;;  %v3019_v21 = vadd.f32 %v2903_v26, %v2733_v41  ;;  %v2334_v3 = vpop.f32.mrf.mxu1  ;;  %v3192_v44 = vpop.f32.mrf.mxu0 }
 0x2f9   : > { %3560 = vst [vmem:[%s5051_s22 + $0x68] sm:$0xff] %v3524_v39  ;;  %v2448_v58 = vadd.f32 %v2334_v3, %v4919_v23 }
 0x2fa   : > { %v3305_v48 = vadd.f32 %v3189_v11, %v3019_v21 }
 0x2fb   : > { %2381 = vmatmul.f32.gmra.mxu1 %v2534_v40  ;;  %3239 = vmatmul.f32.gmra.mxu0 %v3108_v28  ;;  %v2734_v47 = vadd.f32 %v2620_v55, %v2448_v58  ;;  %v2825_v58 = vld [vmem:[#allocation2 + $0x135] sm:$0xff] }
 0x2fc   : > { %v3417_v50 = vadd.f32 %v5039_v51, %v3305_v48  ;;  %2670 = vmatmul.f32.gmra.mxu2 %v2537_v60  ;;  %2953 = vmatmul.f32.gmra.mxu3 %v2822_v54  ;;  %v2540_v48 = vld [vmem:[#allocation2 + $0x13c] sm:$0xff] }
 0x2fe   : > { %vm3453_vm7 = vcmp.ge.f32.partialorder %v3417_v50, 0.0  ;;  %v3489_v12 = vmul.f32 0.1, %v3417_v50 }
 0x2ff   : > { %v2623_v13 = vpop.f32.mrf.mxu2  ;;  %v2906_v31 = vpop.f32.mrf.mxu3 }
 0x300   : > { %v3525_v33 = vsel %vm3453_vm7, %v3417_v50, %v3489_v12  ;;  %v3020_v4 = vadd.f32 %v2906_v31, %v2734_v47  ;;  %v2337_v16 = vpop.f32.mrf.mxu1  ;;  %v3195_v2 = vpop.f32.mrf.mxu0 }
 0x301   : > { %3561 = vst [vmem:[%s5051_s22 + $0x70] sm:$0xff] %v3525_v33  ;;  %v2449_v40 = vadd.f32 %v2337_v16, %v4928_v9  ;;  %v3112_v16 = vld [vmem:[#allocation2 + $0x13e] sm:$0xff] }
 0x302   : > { %v3306_v23 = vadd.f32 %v3192_v44, %v3020_v4  ;;  %v3111_v44 = vld [vmem:[#allocation2 + $0x136] sm:$0xff] }
 0x303   : > { %2384 = vmatmul.f32.gmra.mxu1 %v2535_v43  ;;  %3242 = vmatmul.f32.gmra.mxu0 %v3109_v7  ;;  %v2735_v14 = vadd.f32 %v2623_v13, %v2449_v40 }
 0x304   : > { %v3418_v0 = vadd.f32 %v5039_v51, %v3306_v23  ;;  %2673 = vmatmul.f32.gmra.mxu2 %v2538_v22  ;;  %2956 = vmatmul.f32.gmra.mxu3 %v2823_v24 }
 0x306   : > { %vm3454_vm8 = vcmp.ge.f32.partialorder %v3418_v0, 0.0  ;;  %v3490_v35 = vmul.f32 0.1, %v3418_v0 }
 0x307   : > { %v2626_v30 = vpop.f32.mrf.mxu2  ;;  %v2909_v5 = vpop.f32.mrf.mxu3 }
 0x308   : > { %v3526_v1 = vsel %vm3454_vm8, %v3418_v0, %v3490_v35  ;;  %v3021_v19 = vadd.f32 %v2909_v5, %v2735_v14  ;;  %v2340_v34 = vpop.f32.mrf.mxu1  ;;  %v3198_v11 = vpop.f32.mrf.mxu0 }
 0x309   : > { %3562 = vst [vmem:[%s5051_s22 + $0x78] sm:$0xff] %v3526_v1  ;;  %v2450_v43 = vadd.f32 %v2340_v34, %v4937_v46 }
 0x30a   : > { %v3307_v9 = vadd.f32 %v3195_v2, %v3021_v19  ;;  %v2826_v2 = vld [vmem:[#allocation2 + $0x13d] sm:$0xff] }
 0x30b   : > { %2387 = vmatmul.f32.gmra.mxu1 %v2536_v63  ;;  %3245 = vmatmul.f32.gmra.mxu0 %v3110_v20  ;;  %v2736_v42 = vadd.f32 %v2626_v30, %v2450_v43 }
 0x30c   : > { %v3419_v53 = vadd.f32 %v5039_v51, %v3307_v9  ;;  %2676 = vmatmul.f32.gmra.mxu2 %v2539_v62  ;;  %2959 = vmatmul.f32.gmra.mxu3 %v2824_v56 }
 0x30e   : > { %vm3455_vm9 = vcmp.ge.f32.partialorder %v3419_v53, 0.0  ;;  %v3491_v17 = vmul.f32 0.1, %v3419_v53 }
 0x30f   : > { %v2629_v41 = vpop.f32.mrf.mxu2  ;;  %v2912_v55 = vpop.f32.mrf.mxu3 }
 0x310   : > { %v3527_v26 = vsel %vm3455_vm9, %v3419_v53, %v3491_v17  ;;  %v3022_v39 = vadd.f32 %v2912_v55, %v2736_v42  ;;  %v2343_v21 = vpop.f32.mrf.mxu1  ;;  %v3201_v3 = vpop.f32.mrf.mxu0 }
 0x311   : > { %3563 = vst [vmem:[%s5051_s22 + $0x80] sm:$0xff] %v3527_v26  ;;  %v2451_v63 = vadd.f32 %v2343_v21, %v4946_v10 }
 0x312   : > { %v3308_v46 = vadd.f32 %v3198_v11, %v3022_v39 }
 0x313   : > { %2390 = vmatmul.f32.gmra.mxu1 %v2537_v60  ;;  %3248 = vmatmul.f32.gmra.mxu0 %v3111_v44  ;;  %v2737_v50 = vadd.f32 %v2629_v41, %v2451_v63 }
 0x314   : > { %v3420_v28 = vadd.f32 %v5039_v51, %v3308_v46  ;;  %2679 = vmatmul.f32.gmra.mxu2 %v2540_v48  ;;  %2962 = vmatmul.f32.gmra.mxu3 %v2825_v58 }
 0x316   : > { %vm3456_vm10 = vcmp.ge.f32.partialorder %v3420_v28, 0.0  ;;  %v3492_v54 = vmul.f32 0.1, %v3420_v28 }
 0x317   : > { %v2632_v12 = vpop.f32.mrf.mxu2  ;;  %v2915_v47 = vpop.f32.mrf.mxu3 }
 0x318   : > { %v3528_v13 = vsel %vm3456_vm10, %v3420_v28, %v3492_v54  ;;  %v3023_v31 = vadd.f32 %v2915_v47, %v2737_v50  ;;  %v2346_v33 = vpop.f32.mrf.mxu1  ;;  %v3204_v4 = vpop.f32.mrf.mxu0 }
 0x319   : > { %3564 = vst [vmem:[%s5051_s22 + $0x88] sm:$0xff] %v3528_v13  ;;  %v2452_v60 = vadd.f32 %v2346_v33, %v4955_v18 }
 0x31a   : > { %v3309_v10 = vadd.f32 %v3201_v3, %v3023_v31 }
 0x31b   : > { %2393 = vmatmul.f32.gmra.mxu1 %v2538_v22  ;;  %3251 = vmatmul.f32.gmra.mxu0 %v3112_v16  ;;  %v2738_v7 = vadd.f32 %v2632_v12, %v2452_v60 }
 0x31c   : > { %v3421_v23 = vadd.f32 %v5039_v51, %v3309_v10  ;;  %2965 = vmatmul.f32.gmra.mxu3 %v2826_v2 }
 0x31e   : > { %vm3457_vm11 = vcmp.ge.f32.partialorder %v3421_v23, 0.0  ;;  %v3493_v40 = vmul.f32 0.1, %v3421_v23 }
 0x31f   : > { %v2635_v24 = vpop.f32.mrf.mxu2  ;;  %v2918_v0 = vpop.f32.mrf.mxu3 }
 0x320   : > { %v3529_v35 = vsel %vm3457_vm11, %v3421_v23, %v3493_v40  ;;  %v3024_v14 = vadd.f32 %v2918_v0, %v2738_v7  ;;  %v2349_v30 = vpop.f32.mrf.mxu1  ;;  %v3207_v5 = vpop.f32.mrf.mxu0 }
 0x321   : > { %3565 = vst [vmem:[%s5051_s22 + $0x90] sm:$0xff] %v3529_v35  ;;  %v2453_v1 = vadd.f32 %v2349_v30, %v4964_v52 }
 0x322   : > { %v3310_v18 = vadd.f32 %v3204_v4, %v3024_v14 }
 0x323   : > { %v2739_v34 = vadd.f32 %v2635_v24, %v2453_v1 }
 0x324   : > { %v3422_v22 = vadd.f32 %v5039_v51, %v3310_v18 }
 0x326   : > { %vm3458_vm12 = vcmp.ge.f32.partialorder %v3422_v22, 0.0  ;;  %v3494_v19 = vmul.f32 0.1, %v3422_v22 }
 0x327   : > { %v2638_v11 = vpop.f32.mrf.mxu2  ;;  %v2921_v9 = vpop.f32.mrf.mxu3 }
 0x328   : > { %v3530_v43 = vsel %vm3458_vm12, %v3422_v22, %v3494_v19  ;;  %v3025_v20 = vadd.f32 %v2921_v9, %v2739_v34  ;;  %v2352_v62 = vpop.f32.mrf.mxu1  ;;  %v3210_v56 = vpop.f32.mrf.mxu0 }
 0x329   : > { %3566 = vst [vmem:[%s5051_s22 + $0x98] sm:$0xff] %v3530_v43  ;;  %v2454_v17 = vadd.f32 %v2352_v62, %v4973_v49 }
 0x32a   : > { %v3311_v53 = vadd.f32 %v3207_v5, %v3025_v20 }
 0x32b   : > { %v2740_v41 = vadd.f32 %v2638_v11, %v2454_v17 }
 0x32c   : > { %v3423_v42 = vadd.f32 %v5039_v51, %v3311_v53 }
 0x32e   : > { %vm3459_vm13 = vcmp.ge.f32.partialorder %v3423_v42, 0.0  ;;  %v3495_v52 = vmul.f32 0.1, %v3423_v42 }
 0x32f   : > { %v2641_v55 = vpop.f32.mrf.mxu2  ;;  %v2924_v26 = vpop.f32.mrf.mxu3 }
 0x330   : > { %v3531_v39 = vsel %vm3459_vm13, %v3423_v42, %v3495_v52  ;;  %v3026_v21 = vadd.f32 %v2924_v26, %v2740_v41  ;;  %v2355_v3 = vpop.f32.mrf.mxu1  ;;  %v3213_v46 = vpop.f32.mrf.mxu0 }
 0x331   : > { %3567 = vst [vmem:[%s5051_s22 + $0xa0] sm:$0xff] %v3531_v39  ;;  %v2455_v44 = vadd.f32 %v2355_v3, %v4982_v27 }
 0x332   : > { %v3312_v63 = vadd.f32 %v3210_v56, %v3026_v21 }
 0x333   : > { %v2741_v58 = vadd.f32 %v2641_v55, %v2455_v44 }
 0x334   : > { %v3424_v48 = vadd.f32 %v5039_v51, %v3312_v63 }
 0x336   : > { %vm3460_vm14 = vcmp.ge.f32.partialorder %v3424_v48, 0.0  ;;  %v3496_v49 = vmul.f32 0.1, %v3424_v48 }
 0x337   : > { %v2644_v28 = vpop.f32.mrf.mxu2  ;;  %v2927_v54 = vpop.f32.mrf.mxu3 }
 0x338   : > { %v3532_v50 = vsel %vm3460_vm14, %v3424_v48, %v3496_v49  ;;  %v3027_v12 = vadd.f32 %v2927_v54, %v2741_v58  ;;  %v2358_v47 = vpop.f32.mrf.mxu1  ;;  %v3216_v13 = vpop.f32.mrf.mxu0 }
 0x339   : > { %3568 = vst [vmem:[%s5051_s22 + $0xa8] sm:$0xff] %v3532_v50  ;;  %v2456_v33 = vadd.f32 %v2358_v47, %v4991_v37 }
 0x33a   : > { %v3313_v31 = vadd.f32 %v3213_v46, %v3027_v12 }
 0x33b   : > { %v2742_v10 = vadd.f32 %v2644_v28, %v2456_v33 }
 0x33c   : > { %v3425_v4 = vadd.f32 %v5039_v51, %v3313_v31 }
 0x33e   : > { %vm3461_vm15 = vcmp.ge.f32.partialorder %v3425_v4, 0.0  ;;  %v3497_v27 = vmul.f32 0.1, %v3425_v4 }
 0x33f   : > { %v2647_v60 = vpop.f32.mrf.mxu2  ;;  %v2930_v16 = vpop.f32.mrf.mxu3 }
 0x340   : > { %v3533_v2 = vsel %vm3461_vm15, %v3425_v4, %v3497_v27  ;;  %v3028_v23 = vadd.f32 %v2930_v16, %v2742_v10  ;;  %v2361_v40 = vpop.f32.mrf.mxu1  ;;  %v3219_v7 = vpop.f32.mrf.mxu0 }
 0x341   : > { %3569 = vst [vmem:[%s5051_s22 + $0xb0] sm:$0xff] %v3533_v2  ;;  %v2457_v0 = vadd.f32 %v2361_v40, %v5000_v32 }
 0x342   : > { %v3314_v24 = vadd.f32 %v3216_v13, %v3028_v23 }
 0x343   : > { %v2743_v14 = vadd.f32 %v2647_v60, %v2457_v0 }
 0x344   : > { %v3426_v35 = vadd.f32 %v5039_v51, %v3314_v24 }
 0x346   : > { %vm3462_vm0 = vcmp.ge.f32.partialorder %v3426_v35, 0.0  ;;  %v3498_v37 = vmul.f32 0.1, %v3426_v35 }
 0x347   : > { %v2650_v30 = vpop.f32.mrf.mxu2  ;;  %v2933_v5 = vpop.f32.mrf.mxu3 }
 0x348   : > { %v3534_v18 = vsel %vm3462_vm0, %v3426_v35, %v3498_v37  ;;  %v3029_v1 = vadd.f32 %v2933_v5, %v2743_v14  ;;  %v2364_v22 = vpop.f32.mrf.mxu1  ;;  %v3222_v19 = vpop.f32.mrf.mxu0 }
 0x349   : > { %3570 = vst [vmem:[%s5051_s22 + $0xb8] sm:$0xff] %v3534_v18  ;;  %v2458_v11 = vadd.f32 %v2364_v22, %v5009_v15 }
 0x34a   : > { %v3315_v34 = vadd.f32 %v3219_v7, %v3029_v1 }
 0x34b   : > { %v2744_v43 = vadd.f32 %v2650_v30, %v2458_v11 }
 0x34c   : > { %v3427_v9 = vadd.f32 %v5039_v51, %v3315_v34 }
 0x34e   : > { %vm3463_vm1 = vcmp.ge.f32.partialorder %v3427_v9, 0.0  ;;  %v3499_v32 = vmul.f32 0.1, %v3427_v9 }
 0x34f   : > { %v2653_v20 = vpop.f32.mrf.mxu2  ;;  %v2936_v62 = vpop.f32.mrf.mxu3 }
 0x350   : > { %v3535_v56 = vsel %vm3463_vm1, %v3427_v9, %v3499_v32  ;;  %v3030_v53 = vadd.f32 %v2936_v62, %v2744_v43  ;;  %v2367_v17 = vpop.f32.mrf.mxu1  ;;  %v3225_v42 = vpop.f32.mrf.mxu0 }
 0x351   : > { %3571 = vst [vmem:[%s5051_s22 + $0xc0] sm:$0xff] %v3535_v56  ;;  %v2459_v41 = vadd.f32 %v2367_v17, %v5018_v8 }
 0x352   : > { %v3316_v52 = vadd.f32 %v3222_v19, %v3030_v53 }
 0x353   : > { %v2745_v26 = vadd.f32 %v2653_v20, %v2459_v41 }
 0x354   : > { %v3428_v55 = vadd.f32 %v5039_v51, %v3316_v52 }
 0x356   : > { %vm3464_vm2 = vcmp.ge.f32.partialorder %v3428_v55, 0.0  ;;  %v3500_v15 = vmul.f32 0.1, %v3428_v55 }
 0x357   : > { %v2656_v39 = vpop.f32.mrf.mxu2  ;;  %v2939_v21 = vpop.f32.mrf.mxu3 }
 0x358   : > { %v3536_v3 = vsel %vm3464_vm2, %v3428_v55, %v3500_v15  ;;  %v3031_v46 = vadd.f32 %v2939_v21, %v2745_v26  ;;  %v2370_v63 = vpop.f32.mrf.mxu1  ;;  %v3228_v44 = vpop.f32.mrf.mxu0 }
 0x359   : > { %3572 = vst [vmem:[%s5051_s22 + $0xc8] sm:$0xff] %v3536_v3  ;;  %v2460_v49 = vadd.f32 %v2370_v63, %v5027_v36 }
 0x35a   : > { %v3317_v48 = vadd.f32 %v3225_v42, %v3031_v46 }
 0x35b   : > { %v2746_v28 = vadd.f32 %v2656_v39, %v2460_v49 }
 0x35c   : > { %v3429_v58 = vadd.f32 %v5039_v51, %v3317_v48 }
 0x35e   : > { %vm3465_vm3 = vcmp.ge.f32.partialorder %v3429_v58, 0.0  ;;  %v3501_v8 = vmul.f32 0.1, %v3429_v58 }
 0x35f   : > { %v2659_v54 = vpop.f32.mrf.mxu2  ;;  %v2942_v50 = vpop.f32.mrf.mxu3 }
 0x360   : > { %v3537_v12 = vsel %vm3465_vm3, %v3429_v58, %v3501_v8  ;;  %v3032_v47 = vadd.f32 %v2942_v50, %v2746_v28  ;;  %v2373_v13 = vpop.f32.mrf.mxu1  ;;  %v3231_v31 = vpop.f32.mrf.mxu0 }
 0x361   : > { %3573 = vst [vmem:[%s5051_s22 + $0xd0] sm:$0xff] %v3537_v12  ;;  %v2461_v4 = vadd.f32 %v2373_v13, %v5034_v29 }
 0x362   : > { %v3318_v33 = vadd.f32 %v3228_v44, %v3032_v47 }
 0x363   : > { %v2747_v10 = vadd.f32 %v2659_v54, %v2461_v4 }
 0x364   : > { %v3430_v27 = vadd.f32 %v5039_v51, %v3318_v33 }
 0x366   : > { %vm3466_vm4 = vcmp.ge.f32.partialorder %v3430_v27, 0.0  ;;  %v3502_v36 = vmul.f32 0.1, %v3430_v27 }
 0x367   : > { %v2662_v60 = vpop.f32.mrf.mxu2  ;;  %v2945_v16 = vpop.f32.mrf.mxu3 }
 0x368   : > { %v3538_v2 = vsel %vm3466_vm4, %v3430_v27, %v3502_v36  ;;  %v3033_v23 = vadd.f32 %v2945_v16, %v2747_v10  ;;  %v2376_v40 = vpop.f32.mrf.mxu1  ;;  %v3234_v7 = vpop.f32.mrf.mxu0 }
 0x369   : > { %3574 = vst [vmem:[%s5051_s22 + $0xd8] sm:$0xff] %v3538_v2  ;;  %v2462_v0 = vadd.f32 %v2376_v40, %v5046_v59  ;;  %v5166_v59 = vld [vmem:[%s5195_s5] ss:$0 sm:$0xff] }
 0x36a   : > { %v3319_v24 = vadd.f32 %v3231_v31, %v3033_v23 }
 0x36b   : > { %v2748_v37 = vadd.f32 %v2662_v60, %v2462_v0 }
 0x36c   : > { %v3431_v35 = vadd.f32 %v5039_v51, %v3319_v24 }
 0x36e   : > { %vm3467_vm5 = vcmp.ge.f32.partialorder %v3431_v35, 0.0  ;;  %v3503_v29 = vmul.f32 0.1, %v3431_v35 }
 0x36f   : > { %v2665_v14 = vpop.f32.mrf.mxu2  ;;  %v2948_v30 = vpop.f32.mrf.mxu3 }
 0x370   : > { %v3539_v5 = vsel %vm3467_vm5, %v3431_v35, %v3503_v29  ;;  %v3034_v18 = vadd.f32 %v2948_v30, %v2748_v37  ;;  %v2379_v1 = vpop.f32.mrf.mxu1  ;;  %v3237_v22 = vpop.f32.mrf.mxu0 }
 0x371   : > { %3575 = vst [vmem:[%s5051_s22 + $0xe0] sm:$0xff] %v3539_v5  ;;  %v2463_v34 = vadd.f32 %v2379_v1, %v5058_v61 }
 0x372   : > { %v3320_v19 = vadd.f32 %v3234_v7, %v3034_v18 }
 0x373   : > { %v2749_v9 = vadd.f32 %v2665_v14, %v2463_v34 }
 0x374   : > { %v3432_v51 = vadd.f32 %v5166_v59, %v3320_v19 }
 0x376   : > { %vm3468_vm6 = vcmp.ge.f32.partialorder %v3432_v51, 0.0  ;;  %v3504_v11 = vmul.f32 0.1, %v3432_v51 }
 0x377   : > { %v2668_v32 = vpop.f32.mrf.mxu2  ;;  %v2951_v43 = vpop.f32.mrf.mxu3 }
 0x378   : > { %v3540_v20 = vsel %vm3468_vm6, %v3432_v51, %v3504_v11  ;;  %v3035_v62 = vadd.f32 %v2951_v43, %v2749_v9  ;;  %v2382_v56 = vpop.f32.mrf.mxu1  ;;  %v3240_v53 = vpop.f32.mrf.mxu0 }
 0x379   : > { %3576 = vst [vmem:[%s5051_s22 + $0xe8] sm:$0xff] %v3540_v20  ;;  %v2464_v61 = vadd.f32 %v2382_v56, %v5065_v45 }
 0x37a   : > { %v3321_v17 = vadd.f32 %v3237_v22, %v3035_v62 }
 0x37b   : > { %v2750_v41 = vadd.f32 %v2668_v32, %v2464_v61 }
 0x37c   : > { %v3433_v42 = vadd.f32 %v5166_v59, %v3321_v17 }
 0x37e   : > { %vm3469_vm7 = vcmp.ge.f32.partialorder %v3433_v42, 0.0  ;;  %v3505_v52 = vmul.f32 0.1, %v3433_v42 }
 0x37f   : > { %v2671_v55 = vpop.f32.mrf.mxu2  ;;  %v2954_v15 = vpop.f32.mrf.mxu3 }
 0x380   : > { %v3541_v26 = vsel %vm3469_vm7, %v3433_v42, %v3505_v52  ;;  %v3036_v39 = vadd.f32 %v2954_v15, %v2750_v41  ;;  %v2385_v21 = vpop.f32.mrf.mxu1  ;;  %v3243_v63 = vpop.f32.mrf.mxu0 }
 0x381   : > { %3577 = vst [vmem:[%s5051_s22 + $0xf0] sm:$0xff] %v3541_v26  ;;  %v2465_v46 = vadd.f32 %v2385_v21, %v5072_v25 }
 0x382   : > { %v3322_v3 = vadd.f32 %v3240_v53, %v3036_v39 }
 0x383   : > { %v2751_v48 = vadd.f32 %v2671_v55, %v2465_v46 }
 0x384   : > { %v3434_v44 = vadd.f32 %v5166_v59, %v3322_v3 }
 0x386   : > { %vm3470_vm8 = vcmp.ge.f32.partialorder %v3434_v44, 0.0  ;;  %v3506_v45 = vmul.f32 0.1, %v3434_v44 }
 0x387   : > { %v2957_v49 = vpop.f32.mrf.mxu3  ;;  %v2674_v54 = vpop.f32.mrf.mxu2 }
 0x388   : > { %v3542_v58 = vsel %vm3470_vm8, %v3434_v44, %v3506_v45  ;;  %v3037_v8 = vadd.f32 %v2957_v49, %v2751_v48  ;;  %v2388_v28 = vpop.f32.mrf.mxu1  ;;  %v3246_v13 = vpop.f32.mrf.mxu0 }
 0x389   : > { %3578 = vst [vmem:[%s5051_s22 + $0xf8] sm:$0xff] %v3542_v58  ;;  %v2466_v12 = vadd.f32 %v2388_v28, %v5079_v38 }
 0x38a   : > { %v3323_v50 = vadd.f32 %v3243_v63, %v3037_v8 }
 0x38b   : > { %v2752_v31 = vadd.f32 %v2674_v54, %v2466_v12 }
 0x38c   : > { %v3435_v47 = vadd.f32 %v5166_v59, %v3323_v50 }
 0x38e   : > { %vm3471_vm9 = vcmp.ge.f32.partialorder %v3435_v47, 0.0  ;;  %v3507_v25 = vmul.f32 0.1, %v3435_v47 }
 0x38f   : > { %v2960_v33 = vpop.f32.mrf.mxu3  ;;  %v2677_v16 = vpop.f32.mrf.mxu2 }
 0x390   : > { %v3543_v4 = vsel %vm3471_vm9, %v3435_v47, %v3507_v25  ;;  %v3038_v27 = vadd.f32 %v2960_v33, %v2752_v31  ;;  %v2391_v36 = vpop.f32.mrf.mxu1  ;;  %v3249_v40 = vpop.f32.mrf.mxu0 }
 0x391   : > { %3579 = vst [vmem:[%s5051_s22 + $0x100] sm:$0xff] %v3543_v4  ;;  %v2467_v60 = vadd.f32 %v2391_v36, %v5086_v6 }
 0x392   : > { %v3324_v10 = vadd.f32 %v3246_v13, %v3038_v27 }
 0x393   : > { %v2753_v23 = vadd.f32 %v2677_v16, %v2467_v60 }
 0x394   : > { %v3436_v2 = vadd.f32 %v5166_v59, %v3324_v10 }
 0x396   : > { %vm3472_vm10 = vcmp.ge.f32.partialorder %v3436_v2, 0.0  ;;  %v3508_v38 = vmul.f32 0.1, %v3436_v2 }
 0x397   : > { %v2963_v7 = vpop.f32.mrf.mxu3  ;;  %v2680_v6 = vpop.f32.mrf.mxu2 }
 0x398   : > { %v3544_v24 = vsel %vm3472_vm10, %v3436_v2, %v3508_v38  ;;  %v3039_v0 = vadd.f32 %v2963_v7, %v2753_v23  ;;  %v2394_v35 = vpop.f32.mrf.mxu1  ;;  %v3252_v19 = vpop.f32.mrf.mxu0 }
 0x399   : > { %3580 = vst [vmem:[%s5051_s22 + $0x108] sm:$0xff] %v3544_v24  ;;  %v2468_v37 = vadd.f32 %v2394_v35, %v5093_v57 }
 0x39a   : > { %v3325_v29 = vadd.f32 %v3249_v40, %v3039_v0 }
 0x39b   : > { %v2754_v5 = vadd.f32 %v2680_v6, %v2468_v37 }
 0x39c   : > { %v3437_v14 = vadd.f32 %v5166_v59, %v3325_v29 }
 0x39e   : > { %vm3473_vm11 = vcmp.ge.f32.partialorder %v3437_v14, 0.0  ;;  %v3509_v30 = vmul.f32 0.1, %v3437_v14 }
 0x39f   : > { %v2966_v18 = vpop.f32.mrf.mxu3 }
 0x3a0   : > { %v3545_v1 = vsel %vm3473_vm11, %v3437_v14, %v3509_v30  ;;  %v3040_v22 = vadd.f32 %v2966_v18, %v2754_v5 }
 0x3a1   : > { %3581 = vst [vmem:[%s5051_s22 + $0x110] sm:$0xff] %v3545_v1 }
 0x3a2   : > { %v3326_v34 = vadd.f32 %v3252_v19, %v3040_v22 }
 0x3a4   : > { %v3438_v51 = vadd.f32 %v5166_v59, %v3326_v34 }
 0x3a6   : > { %vm3474_vm12 = vcmp.ge.f32.partialorder %v3438_v51, 0.0  ;;  %v3510_v11 = vmul.f32 0.1, %v3438_v51 }
 0x3a8   : > { %v3546_v9 = vsel %vm3474_vm12, %v3438_v51, %v3510_v11 }
 0x3a9   : > { %3582 = vst [vmem:[%s5051_s22 + $0x118] sm:$0xff] %v3546_v9 }
 0x3aa PF: > { %s16_s21 = sadd.s32 1, %s3849_s21  }
 0x3ab   : > { %p13_p4 = scmp.ge.s32.totalorder %s16_s21, 4  }
 0x3ad   :  { %15 = sbr.rel (!%p13_p4) target bundleno = 1 (0x1), region = 82 }

// kernel: basic_block_forward.3
= control target key start
LH: loop header
LB: loop body
LE: loop exit
PB: predicated region body
PF: predicated region fallthrough
CT: control target
= control target key end

     0   :  { %s1772_s27 = smov 0   ;;  %s2481_s0 = inlined_call_operand.vmem [shape: f32[2,110,128], index: 0, kind: input, shape index: {}]   ;;  %s2482_s1 = inlined_call_operand.vmem [shape: f32[9,128,128], index: 1, kind: input, shape index: {}]   ;;  %s2483_s2 = inlined_call_operand.vmem [shape: f32[1,128], index: 2, kind: input, shape index: {}]   ;;  %s2484_s3 = inlined_call_operand.vmem [shape: f32[2,80,128], index: 3, kind: input, shape index: {}]   ;;  %s2485_s4 = inlined_call_operand.vmem [shape: f32[1,128], index: 4, kind: input, shape index: {}]   ;;  %s2486_s5 = inlined_call_operand.vmem [shape: f32[1,128], index: 5, kind: input, shape index: {}]   ;;  %s2487_s6 = inlined_call_operand.vmem [shape: f32[128,128], index: 6, kind: input, shape index: {}]   ;;  %s2488_s7 = inlined_call_operand.vmem [shape: f32[1,128], index: 7, kind: input, shape index: {}]   ;;  %s2489_s8 = inlined_call_operand.vmem [shape: f32[2,80,128], index: 8, kind: output, shape index: {}]  }
   0x1 LB: > { %s1535_s28 = sadd.s32 4294967295, %s1725_s27   ;;  %p1539_p0 = scmp.ge.s32.totalorder %s1725_s27, 1  ;;  %s1725_s27 = sphi %s1772_s27, %s18_s27  }
   0x2   : > { %p272_p1 = scmp.lt.s32.totalorder %s1725_s27, 3 }
   0x4   : > { %p273_p2 = pnand %p1539_p0, %p272_p1 }
   0x5   : > { %p311_p3 = scmp.lt.s32.totalorder (!%p273_p2), %s1535_s28, 1 }
   0x6   : > { %276 = sbr.rel (%p273_p2) target bundleno = 376 (0x178), region = 52 }
   0xb   : > { %v437_v0 = vld [vmem:[%s2487_s6 + $0x78] sm:$0xff]  ;;  %v436_v1 = vld [vmem:[%s2487_s6 + $0x70] sm:$0xff]  ;;  %v435_v4 = vld [vmem:[%s2487_s6 + $0x68] sm:$0xff]  ;;  %s2491_s28 = smov (!%p311_p3, %s1535_s28), 1 }
   0xc   : > { %v548_v2 = vld [vmem:[%s2482_s1 + $0x78] sm:$0xff]  ;;  %1673 = vmatpush.msra.mxu2 %v437_v0  ;;  %v547_v3 = vld [vmem:[%s2482_s1 + $0x70] sm:$0xff]  ;;  %v546_v5 = vld [vmem:[%s2482_s1 + $0x68] sm:$0xff]  ;;  %442 = vmatpush.msra.mxu0 %v437_v0  ;;  %s1705_s23 = smul.u32 112, %s2491_s28 }
   0xd   : > { %1689 = vmatpush.msra.mxu3 %v548_v2  ;;  %549 = vmatpush.msra.mxu1 %v548_v2  ;;  %v434_v6 = vld [vmem:[%s2487_s6 + $0x60] sm:$0xff]  ;;  %v433_v8 = vld [vmem:[%s2487_s6 + $0x58] sm:$0xff]  ;;  %s1706_s30 = smul.u32 80, %s2491_s28  ;;  %v432_v10 = vld [vmem:[%s2487_s6 + $0x50] sm:$0xff] }
   0xe   : > { %1674 = vmatpush.msra.mxu2 %v436_v1  ;;  %v545_v7 = vld [vmem:[%s2482_s1 + $0x60] sm:$0xff]  ;;  %443 = vmatpush.msra.mxu0 %v436_v1  ;;  %v544_v9 = vld [vmem:[%s2482_s1 + $0x58] sm:$0xff]  ;;  %v543_v11 = vld [vmem:[%s2482_s1 + $0x50] sm:$0xff]  ;;  %s1823_s15 = scalar_lea.vmem %s2481_s0, %s1705_s23 }
   0xf   : > { %1690 = vmatpush.msra.mxu3 %v547_v3  ;;  %550 = vmatpush.msra.mxu1 %v547_v3  ;;  %v431_v12 = vld [vmem:[%s2487_s6 + $0x48] sm:$0xff]  ;;  %s1836_s22 = scalar_lea.vmem %s2484_s3, %s1706_s30  ;;  %v430_v14 = vld [vmem:[%s2487_s6 + $0x40] sm:$0xff]  ;;  %v429_v18 = vld [vmem:[%s2487_s6 + $0x38] sm:$0xff]  ;;  %s2457_s24 = scalar_lea.vmem %s2489_s8, %s1706_s30 }
  0x10   : > { %1675 = vmatpush.msra.mxu2 %v435_v4  ;;  %444 = vmatpush.msra.mxu0 %v435_v4  ;;  %v542_v13 = vld [vmem:[%s2482_s1 + $0x48] sm:$0xff]  ;;  %v541_v15 = vld [vmem:[%s2482_s1 + $0x40] sm:$0xff]  ;;  %v540_v19 = vld [vmem:[%s2482_s1 + $0x38] sm:$0xff] }
  0x11   : > { %1691 = vmatpush.msra.mxu3 %v546_v5  ;;  %551 = vmatpush.msra.mxu1 %v546_v5  ;;  %v1847_v16 = vld [vmem:[%s2485_s4] ss:$0 sm:$0xff]  ;;  %v1850_v17 = vld [vmem:[%s1823_s15 + $0x28] sm:$0xff]  ;;  %v428_v21 = vld [vmem:[%s2487_s6 + $0x30] sm:$0xff] }
  0x12   : > { %1676 = vmatpush.msra.mxu2 %v434_v6  ;;  %445 = vmatpush.msra.mxu0 %v434_v6  ;;  %v359_v20 = vld [vmem:[%s1836_s22 + $0x28] sm:$0xff]  ;;  %345 = vst [vmem:[#allocation2 + $0x28] sm:$0xff] %v1850_v17  ;;  %v539_v22 = vld [vmem:[%s2482_s1 + $0x30] sm:$0xff]  ;;  %v1876_v26 = vld [vmem:[%s2486_s5] ss:$0 sm:$0xff] }
  0x13   : > { %1692 = vmatpush.msra.mxu3 %v545_v7  ;;  %552 = vmatpush.msra.mxu1 %v545_v7  ;;  %v1867_v23 = vld [vmem:[%s1823_s15 + $0x30] sm:$0xff]  ;;  %v427_v24 = vld [vmem:[%s2487_s6 + $0x28] sm:$0xff]  ;;  %v373_v25 = vmul.f32 %v1847_v16, %v359_v20  ;;  %v354_v28 = vld [vmem:[%s1836_s22] sm:$0xff] }
  0x14   : > { %1677 = vmatpush.msra.mxu2 %v433_v8  ;;  %446 = vmatpush.msra.mxu0 %v433_v8  ;;  %346 = vst [vmem:[#allocation2 + $0x30] sm:$0xff] %v1867_v23  ;;  %v538_v27 = vld [vmem:[%s2482_s1 + $0x28] sm:$0xff]  ;;  %v1884_v29 = vld [vmem:[%s1823_s15] sm:$0xff]  ;;  %v368_v33 = vmul.f32 %v1847_v16, %v354_v28  ;;  %v425_v34 = vld [vmem:[%s2487_s6 + $0x18] sm:$0xff] }
  0x15   : > { %1693 = vmatpush.msra.mxu3 %v544_v9  ;;  %553 = vmatpush.msra.mxu1 %v544_v9  ;;  %340 = vst [vmem:[#allocation2] sm:$0xff] %v1884_v29  ;;  %v426_v30 = vld [vmem:[%s2487_s6 + $0x20] sm:$0xff]  ;;  %v387_v32 = vadd.f32 %v1876_v26, %v373_v25  ;;  %v536_v35 = vld [vmem:[%s2482_s1 + $0x18] sm:$0xff]  ;;  %v360_v36 = vld [vmem:[%s1836_s22 + $0x30] sm:$0xff] }
  0x16   : > { %1678 = vmatpush.msra.mxu2 %v432_v10  ;;  %447 = vmatpush.msra.mxu0 %v432_v10  ;;  %v537_v31 = vld [vmem:[%s2482_s1 + $0x20] sm:$0xff]  ;;  %v1903_v37 = vld [vmem:[%s1823_s15 + $0x38] sm:$0xff]  ;;  %v424_v38 = vld [vmem:[%s2487_s6 + $0x10] sm:$0xff]  ;;  %v382_v42 = vadd.f32 %v1876_v26, %v368_v33  ;;  %v374_v43 = vmul.f32 %v1847_v16, %v360_v36 }
  0x17   : > { %1694 = vmatpush.msra.mxu3 %v543_v11  ;;  %554 = vmatpush.msra.mxu1 %v543_v11  ;;  %v535_v39 = vld [vmem:[%s2482_s1 + $0x10] sm:$0xff]  ;;  %347 = vst [vmem:[#allocation2 + $0x38] sm:$0xff] %v1903_v37  ;;  %v1913_v40 = vld [vmem:[%s1823_s15 + $0x8] sm:$0xff]  ;;  %v407_v41 = vmul.f32 0.1, %v387_v32  ;;  %vm397_vm0 = vcmp.ge.f32.partialorder %v387_v32, 0.0 }
  0x18   : > { %1679 = vmatpush.msra.mxu2 %v431_v12  ;;  %448 = vmatpush.msra.mxu0 %v431_v12  ;;  %341 = vst [vmem:[#allocation2 + $0x8] sm:$0xff] %v1913_v40  ;;  %v423_v44 = vld [vmem:[%s2487_s6 + $0x8] sm:$0xff]  ;;  %v422_v47 = vld [vmem:[%s2487_s6] sm:$0xff]  ;;  %v1558_v50 = vld [vmem:[%s2482_s1 + $0xf8] sm:$0xff]  ;;  %v402_v51 = vmul.f32 0.1, %v382_v42  ;;  %v388_v52 = vadd.f32 %v1876_v26, %v374_v43 }
  0x19   : > { %1695 = vmatpush.msra.mxu3 %v542_v13  ;;  %555 = vmatpush.msra.mxu1 %v542_v13  ;;  %v534_v45 = vld [vmem:[%s2482_s1 + $0x8] sm:$0xff]  ;;  %v533_v48 = vld [vmem:[%s2482_s1] sm:$0xff]  ;;  %v417_v49 = vsel %vm397_vm0, %v387_v32, %v407_v41  ;;  %v1574_v53 = vld [vmem:[%s2482_s1 + $0x178] sm:$0xff]  ;;  %vm392_vm1 = vcmp.ge.f32.partialorder %v382_v42, 0.0 }
  0x1a   : > { %1680 = vmatpush.msra.mxu2 %v430_v14  ;;  %449 = vmatpush.msra.mxu0 %v430_v14  ;;  %v355_v46 = vld [vmem:[%s1836_s22 + $0x8] sm:$0xff]  ;;  %v361_v55 = vld [vmem:[%s1836_s22 + $0x38] sm:$0xff]  ;;  %v1941_v56 = vld [vmem:[%s1823_s15 + $0x40] sm:$0xff]  ;;  %v412_v60 = vsel %vm392_vm1, %v382_v42, %v402_v51  ;;  %v408_v61 = vmul.f32 0.1, %v388_v52  ;;  %vm398_vm2 = vcmp.ge.f32.partialorder %v388_v52, 0.0 }
  0x1b   : > { %1696 = vmatpush.msra.mxu3 %v541_v15  ;;  %556 = vmatpush.msra.mxu1 %v541_v15  ;;  %v369_v54 = vmul.f32 %v1847_v16, %v355_v46  ;;  %348 = vst [vmem:[#allocation2 + $0x40] sm:$0xff] %v1941_v56  ;;  %v1945_v57 = vld [vmem:[%s1823_s15 + $0x10] sm:$0xff]  ;;  %v375_v62 = vmul.f32 %v1847_v16, %v361_v55  ;;  %v1556_v63 = vld [vmem:[%s2482_s1 + $0xe8] sm:$0xff]  ;;  %v1590_v1 = vld [vmem:[%s2482_s1 + $0x1f8] sm:$0xff] }
  0x1c   : > { %1681 = vmatpush.msra.mxu2 %v429_v18  ;;  %450 = vmatpush.msra.mxu0 %v429_v18  ;;  %v1557_v58 = vld [vmem:[%s2482_s1 + $0xf0] sm:$0xff]  ;;  %342 = vst [vmem:[#allocation2 + $0x10] sm:$0xff] %v1945_v57  ;;  %v1572_v0 = vld [vmem:[%s2482_s1 + $0x168] sm:$0xff]  ;;  %v1606_v3 = vld [vmem:[%s2482_s1 + $0x278] sm:$0xff]  ;;  %v418_v8 = vsel %vm398_vm2, %v388_v52, %v408_v61 }
  0x1d   : > { %1697 = vmatpush.msra.mxu3 %v540_v19  ;;  %557 = vmatpush.msra.mxu1 %v540_v19  ;;  %v1573_v59 = vld [vmem:[%s2482_s1 + $0x170] sm:$0xff]  ;;  %v383_v2 = vadd.f32 %v1876_v26, %v369_v54  ;;  %v1972_v5 = vld [vmem:[%s1823_s15 + $0x48] sm:$0xff]  ;;  %v1555_v6 = vld [vmem:[%s2482_s1 + $0xe0] sm:$0xff]  ;;  %v389_v9 = vadd.f32 %v1876_v26, %v375_v62 }
  0x1e   : > { %1682 = vmatpush.msra.mxu2 %v428_v21  ;;  %451 = vmatpush.msra.mxu0 %v428_v21  ;;  %v356_v4 = vld [vmem:[%s1836_s22 + $0x10] sm:$0xff]  ;;  %v1571_v7 = vld [vmem:[%s2482_s1 + $0x160] sm:$0xff]  ;;  %349 = vst [vmem:[#allocation2 + $0x48] sm:$0xff] %v1972_v5  ;;  %v1985_v10 = vld [vmem:[%s1823_s15 + $0x18] sm:$0xff] }
  0x1f   : > { %1698 = vmatpush.msra.mxu3 %v539_v22  ;;  %558 = vmatpush.msra.mxu1 %v539_v22  ;;  %v1554_v11 = vld [vmem:[%s2482_s1 + $0xd8] sm:$0xff]  ;;  %v403_v13 = vmul.f32 0.1, %v383_v2  ;;  %v370_v14 = vmul.f32 %v1847_v16, %v356_v4  ;;  %v362_v15 = vld [vmem:[%s1836_s22 + $0x40] sm:$0xff]  ;;  %343 = vst [vmem:[#allocation2 + $0x18] sm:$0xff] %v1985_v10  ;;  %v1605_v18 = vld [vmem:[%s2482_s1 + $0x270] sm:$0xff] }
  0x20   : > { %1683 = vmatpush.msra.mxu2 %v427_v24  ;;  %452 = vmatpush.msra.mxu0 %v427_v24  ;;  %v1570_v12 = vld [vmem:[%s2482_s1 + $0x158] sm:$0xff]  ;;  %vm393_vm3 = vcmp.ge.f32.partialorder %v383_v2, 0.0  ;;  %v1553_v19 = vld [vmem:[%s2482_s1 + $0xd0] sm:$0xff]  ;;  %v1588_v21 = vld [vmem:[%s2482_s1 + $0x1e8] sm:$0xff]  ;;  %v409_v22 = vmul.f32 0.1, %v389_v9  ;;  %v376_v24 = vmul.f32 %v1847_v16, %v362_v15 }
  0x21   : > { %1699 = vmatpush.msra.mxu3 %v538_v27  ;;  %559 = vmatpush.msra.mxu1 %v538_v27  ;;  %v1569_v20 = vld [vmem:[%s2482_s1 + $0x150] sm:$0xff]  ;;  %v1552_v25 = vld [vmem:[%s2482_s1 + $0xc8] sm:$0xff]  ;;  %v413_v27 = vsel %vm393_vm3, %v383_v2, %v403_v13  ;;  %vm399_vm4 = vcmp.ge.f32.partialorder %v389_v9, 0.0  ;;  %v357_v32 = vld [vmem:[%s1836_s22 + $0x18] sm:$0xff] }
  0x22   : > { %1684 = vmatpush.msra.mxu2 %v426_v30  ;;  %453 = vmatpush.msra.mxu0 %v426_v30  ;;  %v1568_v28 = vld [vmem:[%s2482_s1 + $0x148] sm:$0xff]  ;;  %v2024_v30 = vld [vmem:[%s1823_s15 + $0x20] sm:$0xff]  ;;  %v1550_v36 = vld [vmem:[%s2482_s1 + $0xb8] sm:$0xff]  ;;  %v371_v41 = vmul.f32 %v1847_v16, %v357_v32 }
  0x23   : > { %1700 = vmatpush.msra.mxu3 %v537_v31  ;;  %560 = vmatpush.msra.mxu1 %v537_v31  ;;  %v1587_v31 = vld [vmem:[%s2482_s1 + $0x1e0] sm:$0xff]  ;;  %344 = vst [vmem:[#allocation2 + $0x20] sm:$0xff] %v2024_v30  ;;  %v363_v42 = vld [vmem:[%s1836_s22 + $0x48] sm:$0xff]  ;;  %v1586_v43 = vld [vmem:[%s2482_s1 + $0x1d8] sm:$0xff] }
  0x24   : > { %1685 = vmatpush.msra.mxu2 %v425_v34  ;;  %454 = vmatpush.msra.mxu0 %v425_v34  ;;  %v1551_v33 = vld [vmem:[%s2482_s1 + $0xc0] sm:$0xff]  ;;  %v419_v34 = vsel %vm399_vm4, %v389_v9, %v409_v22  ;;  %v1602_v46 = vld [vmem:[%s2482_s1 + $0x258] sm:$0xff]  ;;  %v385_v51 = vadd.f32 %v1876_v26, %v371_v41  ;;  %v1565_v52 = vld [vmem:[%s2482_s1 + $0x130] sm:$0xff] }
  0x25   : > { %1701 = vmatpush.msra.mxu3 %v536_v35  ;;  %561 = vmatpush.msra.mxu1 %v536_v35  ;;  %v390_v35 = vadd.f32 %v1876_v26, %v376_v24  ;;  %v358_v54 = vld [vmem:[%s1836_s22 + $0x20] sm:$0xff]  ;;  %v1601_v55 = vld [vmem:[%s2482_s1 + $0x250] sm:$0xff]  ;;  %v1564_v61 = vld [vmem:[%s2482_s1 + $0x128] sm:$0xff] }
  0x26   : > { %1686 = vmatpush.msra.mxu2 %v424_v38  ;;  %455 = vmatpush.msra.mxu0 %v424_v38  ;;  %v1567_v38 = vld [vmem:[%s2482_s1 + $0x140] sm:$0xff]  ;;  %v1600_v62 = vld [vmem:[%s2482_s1 + $0x248] sm:$0xff]  ;;  %vm395_vm7 = vcmp.ge.f32.partialorder %v385_v51, 0.0  ;;  %v1546_v2 = vld [vmem:[%s2482_s1 + $0x98] sm:$0xff] }
  0x27   : > { %1702 = vmatpush.msra.mxu3 %v535_v39  ;;  %562 = vmatpush.msra.mxu1 %v535_v39  ;;  %vm400_vm6 = vcmp.ge.f32.partialorder %v390_v35, 0.0  ;;  %v1599_v4 = vld [vmem:[%s2482_s1 + $0x240] sm:$0xff]  ;;  %v1598_v9 = vld [vmem:[%s2482_s1 + $0x238] sm:$0xff]  ;;  %v1544_v13 = vld [vmem:[%s2482_s1 + $0x88] sm:$0xff] }
  0x28   : > { %1687 = vmatpush.msra.mxu2 %v423_v44  ;;  %456 = vmatpush.msra.mxu0 %v423_v44  ;;  %v1603_v44 = vld [vmem:[%s2482_s1 + $0x260] sm:$0xff]  ;;  %v1621_v32 = vld [vmem:[%s2482_s1 + $0x2f0] sm:$0xff]  ;;  %v1592_v41 = vld [vmem:[%s2482_s1 + $0x208] sm:$0xff] }
  0x29   : > { %1703 = vmatpush.msra.mxu3 %v534_v45  ;;  %563 = vmatpush.msra.mxu1 %v534_v45  ;;  %v1566_v45 = vld [vmem:[%s2482_s1 + $0x138] sm:$0xff]  ;;  %v1595_v24 = vld [vmem:[%s2482_s1 + $0x220] sm:$0xff] }
  0x2a   : > { %1688 = vmatpush.msra.mxu2 %v422_v47  ;;  %457 = vmatpush.msra.mxu0 %v422_v47  ;;  %v1585_v47 = vld [vmem:[%s2482_s1 + $0x1d0] sm:$0xff] }
  0x2b   : > { %1704 = vmatpush.msra.mxu3 %v533_v48  ;;  %473 = vmatmul.f32.vlgmr.msra.gmra.mxu2 %v417_v49 }
  0x2c   : > { %580 = vmatmul.f32.vlgmr.msra.gmra.mxu3 %v1850_v17  ;;  %653 = vmatpush.msrb.mxu2 %v1558_v50  ;;  %v1589_v17 = vld [vmem:[%s2482_s1 + $0x1f0] sm:$0xff]  ;;  %v1548_v50 = vld [vmem:[%s2482_s1 + $0xa8] sm:$0xff] }
  0x2d   : > { %757 = vmatpush.msrb.mxu3 %v1574_v53  ;;  %564 = vmatpush.msra.mxu1 %v533_v48  ;;  %v377_v48 = vmul.f32 %v1847_v16, %v363_v42  ;;  %v1584_v53 = vld [vmem:[%s2482_s1 + $0x1c8] sm:$0xff] }
  0x2e   : > { %654 = vmatpush.msrb.mxu2 %v1557_v58  ;;  %458 = vmatmul.f32.vlgmr.msra.gmra.mxu0 %v412_v60  ;;  %v1547_v58 = vld [vmem:[%s2482_s1 + $0xa0] sm:$0xff]  ;;  %v731_v42 = vld [vmem:[#allocation2 + $0xa] sm:$0xff] }
  0x2f   : > { %758 = vmatpush.msrb.mxu3 %v1573_v59  ;;  %565 = vmatmul.f32.vlgmr.msra.gmra.mxu1 %v1884_v29  ;;  %v384_v29 = vadd.f32 %v1876_v26, %v370_v14  ;;  %v391_v60 = vadd.f32 %v1876_v26, %v377_v48  ;;  %v1580_v14 = vld [vmem:[%s2482_s1 + $0x1a8] sm:$0xff]  ;;  %v1618_v48 = vld [vmem:[%s2482_s1 + $0x2d8] sm:$0xff] }
  0x30   : > { %655 = vmatpush.msrb.mxu2 %v1556_v63  ;;  %861 = vmatpush.msrb.mxu0 %v1590_v1  ;;  %v405_v63 = vmul.f32 0.1, %v385_v51  ;;  %v1583_v1 = vld [vmem:[%s2482_s1 + $0x1c0] sm:$0xff] }
  0x31   : > { %759 = vmatpush.msrb.mxu3 %v1572_v0  ;;  %965 = vmatpush.msrb.mxu1 %v1606_v3  ;;  %v404_v39 = vmul.f32 0.1, %v384_v29  ;;  %vm394_vm5 = vcmp.ge.f32.partialorder %v384_v29, 0.0  ;;  %v372_v0 = vmul.f32 %v1847_v16, %v358_v54  ;;  %v1563_v3 = vld [vmem:[%s2482_s1 + $0x120] sm:$0xff]  ;;  %v1582_v16 = vld [vmem:[%s2482_s1 + $0x1b8] sm:$0xff]  ;;  %vm401_vm8 = vcmp.ge.f32.partialorder %v391_v60, 0.0 }
  0x32   : > { %656 = vmatpush.msrb.mxu2 %v1555_v6  ;;  %862 = vmatpush.msrb.mxu0 %v1589_v17  ;;  %v411_v6 = vmul.f32 0.1, %v391_v60  ;;  %v1597_v17 = vld [vmem:[%s2482_s1 + $0x230] sm:$0xff]  ;;  %v1668_v54 = vld [vmem:[%s2482_s1 + $0x468] sm:$0xff] }
  0x33   : > { %760 = vmatpush.msrb.mxu3 %v1571_v7  ;;  %476 = vmatmul.f32.gmra.mxu2 %v418_v8  ;;  %v414_v49 = vsel %vm394_vm5, %v384_v29, %v404_v39  ;;  %v1562_v7 = vld [vmem:[%s2482_s1 + $0x118] sm:$0xff]  ;;  %v386_v8 = vadd.f32 %v1876_v26, %v372_v0  ;;  %v1561_v26 = vld [vmem:[%s2482_s1 + $0x110] sm:$0xff]  ;;  %v1636_v39 = vld [vmem:[%s2482_s1 + $0x368] sm:$0xff] }
  0x34   : > { %583 = vmatmul.f32.gmra.mxu3 %v1867_v23  ;;  %657 = vmatpush.msrb.mxu2 %v1554_v11  ;;  %v1604_v23 = vld [vmem:[%s2482_s1 + $0x268] sm:$0xff]  ;;  %v1545_v11 = vld [vmem:[%s2482_s1 + $0x90] sm:$0xff]  ;;  %v1594_v29 = vld [vmem:[%s2482_s1 + $0x218] sm:$0xff] }
  0x35   : > { %761 = vmatpush.msrb.mxu3 %v1570_v12  ;;  %966 = vmatpush.msrb.mxu1 %v1605_v18  ;;  %v421_v12 = vsel %vm401_vm8, %v391_v60, %v411_v6  ;;  %v406_v15 = vmul.f32 0.1, %v386_v8  ;;  %v1560_v18 = vld [vmem:[%s2482_s1 + $0x108] sm:$0xff]  ;;  %vm396_vm9 = vcmp.ge.f32.partialorder %v386_v8, 0.0  ;;  %v1667_v60 = vld [vmem:[%s2482_s1 + $0x460] sm:$0xff]  ;;  %v939_v0 = vld [vmem:[#allocation2 + $0x13] sm:$0xff] }
  0x36   : > { %658 = vmatpush.msrb.mxu2 %v1553_v19  ;;  %863 = vmatpush.msrb.mxu0 %v1588_v21  ;;  %v1543_v19 = vld [vmem:[%s2482_s1 + $0x80] sm:$0xff] }
  0x37   : > { %762 = vmatpush.msrb.mxu3 %v1569_v20  ;;  %967 = vmatpush.msrb.mxu1 %v1604_v23  ;;  %v1596_v20 = vld [vmem:[%s2482_s1 + $0x228] sm:$0xff]  ;;  %v1579_v21 = vld [vmem:[%s2482_s1 + $0x1a0] sm:$0xff]  ;;  %v416_v22 = vsel %vm396_vm9, %v386_v8, %v406_v15  ;;  %v1578_v23 = vld [vmem:[%s2482_s1 + $0x198] sm:$0xff] }
  0x38   : > { %659 = vmatpush.msrb.mxu2 %v1552_v25  ;;  %461 = vmatmul.f32.gmra.mxu0 %v413_v27  ;;  %v1622_v25 = vld [vmem:[%s2482_s1 + $0x2f8] sm:$0xff]  ;;  %v1663_v15 = vld [vmem:[%s2482_s1 + $0x440] sm:$0xff] }
  0x39   : > { %763 = vmatpush.msrb.mxu3 %v1568_v28  ;;  %864 = vmatpush.msrb.mxu0 %v1587_v31  ;;  %v1638_v27 = vld [vmem:[%s2482_s1 + $0x378] sm:$0xff]  ;;  %v730_v28 = vld [vmem:[#allocation2 + $0x2] sm:$0xff]  ;;  %v1577_v31 = vld [vmem:[%s2482_s1 + $0x190] sm:$0xff] }
  0x3a   : > { %660 = vmatpush.msrb.mxu2 %v1551_v33  ;;  %568 = vmatmul.f32.gmra.mxu1 %v1913_v40  ;;  %v1549_v40 = vld [vmem:[%s2482_s1 + $0xb0] sm:$0xff]  ;;  %v733_v6 = vld [vmem:[#allocation2 + $0x1a] sm:$0xff] }
  0x3b   : > { %479 = vmatmul.f32.gmra.mxu2 %v419_v34  ;;  %764 = vmatpush.msrb.mxu3 %v1567_v38  ;;  %v1637_v33 = vld [vmem:[%s2482_s1 + $0x370] sm:$0xff]  ;;  %v1576_v34 = vld [vmem:[%s2482_s1 + $0x188] sm:$0xff]  ;;  %v1575_v38 = vld [vmem:[%s2482_s1 + $0x180] sm:$0xff] }
  0x3c   : > { %586 = vmatmul.f32.gmra.mxu3 %v1903_v37  ;;  %661 = vmatpush.msrb.mxu2 %v1550_v36  ;;  %v410_v37 = vmul.f32 0.1, %v390_v35  ;;  %v1620_v36 = vld [vmem:[%s2482_s1 + $0x2e8] sm:$0xff]  ;;  %v1630_v8 = vld [vmem:[%s2482_s1 + $0x338] sm:$0xff] }
  0x3d   : > { %865 = vmatpush.msrb.mxu0 %v1586_v43  ;;  %968 = vmatpush.msrb.mxu1 %v1603_v44  ;;  %v1654_v43 = vld [vmem:[%s2482_s1 + $0x3f8] sm:$0xff]  ;;  %v1619_v44 = vld [vmem:[%s2482_s1 + $0x2e0] sm:$0xff] }
  0x3e   : > { %765 = vmatpush.msrb.mxu3 %v1566_v45  ;;  %662 = vmatpush.msrb.mxu2 %v1549_v40  ;;  %v420_v59 = vsel %vm400_vm6, %v390_v35, %v410_v37  ;;  %v1593_v35 = vld [vmem:[%s2482_s1 + $0x210] sm:$0xff] }
  0x3f   : > { %969 = vmatpush.msrb.mxu1 %v1602_v46  ;;  %866 = vmatpush.msrb.mxu0 %v1585_v47  ;;  %v627_v45 = vld [vmem:[#allocation2 + $0x9] sm:$0xff]  ;;  %v1670_v46 = vld [vmem:[%s2482_s1 + $0x478] sm:$0xff]  ;;  %v1635_v47 = vld [vmem:[%s2482_s1 + $0x360] sm:$0xff] }
  0x40   : > { %464 = vmatmul.f32.gmra.mxu0 %v414_v49  ;;  %663 = vmatpush.msrb.mxu2 %v1548_v50  ;;  %v1653_v40 = vld [vmem:[%s2482_s1 + $0x3f0] sm:$0xff]  ;;  %v1652_v50 = vld [vmem:[%s2482_s1 + $0x3e8] sm:$0xff] }
  0x41   : > { %766 = vmatpush.msrb.mxu3 %v1565_v52  ;;  %867 = vmatpush.msrb.mxu0 %v1584_v53  ;;  %v938_v37 = vld [vmem:[#allocation2 + $0xb] sm:$0xff] }
  0x42   : > { %970 = vmatpush.msrb.mxu1 %v1601_v55  ;;  %664 = vmatpush.msrb.mxu2 %v1547_v58  ;;  %v1669_v49 = vld [vmem:[%s2482_s1 + $0x470] sm:$0xff]  ;;  %v1651_v55 = vld [vmem:[%s2482_s1 + $0x3e0] sm:$0xff] }
  0x43   : > { %482 = vmatmul.f32.gmra.mxu2 %v420_v59  ;;  %767 = vmatpush.msrb.mxu3 %v1564_v61  ;;  %v1617_v52 = vld [vmem:[%s2482_s1 + $0x2d0] sm:$0xff]  ;;  %v1616_v61 = vld [vmem:[%s2482_s1 + $0x2c8] sm:$0xff] }
  0x44   : > { %589 = vmatmul.f32.gmra.mxu3 %v1941_v56  ;;  %971 = vmatpush.msrb.mxu1 %v1600_v62  ;;  %v415_v56 = vsel %vm395_vm7, %v385_v51, %v405_v63  ;;  %v1634_v51 = vld [vmem:[%s2482_s1 + $0x358] sm:$0xff]  ;;  %v1633_v58 = vld [vmem:[%s2482_s1 + $0x350] sm:$0xff]  ;;  %v1632_v63 = vld [vmem:[%s2482_s1 + $0x348] sm:$0xff] }
  0x45   : > { %571 = vmatmul.f32.gmra.mxu1 %v1945_v57  ;;  %868 = vmatpush.msrb.mxu0 %v1583_v1  ;;  %v1581_v57 = vld [vmem:[%s2482_s1 + $0x1b0] sm:$0xff]  ;;  %v1650_v62 = vld [vmem:[%s2482_s1 + $0x3d8] sm:$0xff]  ;;  %v1615_v1 = vld [vmem:[%s2482_s1 + $0x2c0] sm:$0xff] }
  0x46   : > { %665 = vmatpush.msrb.mxu2 %v1546_v2  ;;  %768 = vmatpush.msrb.mxu3 %v1563_v3  ;;  %v732_v53 = vld [vmem:[#allocation2 + $0x12] sm:$0xff] }
  0x47   : > { %869 = vmatpush.msrb.mxu0 %v1582_v16  ;;  %972 = vmatpush.msrb.mxu1 %v1599_v4  ;;  %v628_v59 = vld [vmem:[#allocation2 + $0x11] sm:$0xff]  ;;  %v1631_v16 = vld [vmem:[%s2482_s1 + $0x340] sm:$0xff] }
  0x48   : > { %467 = vmatmul.f32.gmra.mxu0 %v415_v56  ;;  %769 = vmatpush.msrb.mxu3 %v1562_v7  ;;  %v1666_v2 = vld [vmem:[%s2482_s1 + $0x458] sm:$0xff]  ;;  %v1649_v3 = vld [vmem:[%s2482_s1 + $0x3d0] sm:$0xff]  ;;  %v1648_v7 = vld [vmem:[%s2482_s1 + $0x3c8] sm:$0xff] }
  0x49   : > { %973 = vmatpush.msrb.mxu1 %v1598_v9  ;;  %666 = vmatpush.msrb.mxu2 %v1545_v11  ;;  %v1614_v4 = vld [vmem:[%s2482_s1 + $0x2b8] sm:$0xff]  ;;  %v1665_v56 = vld [vmem:[%s2482_s1 + $0x450] sm:$0xff]  ;;  %v1664_v11 = vld [vmem:[%s2482_s1 + $0x448] sm:$0xff] }
  0x4a   : > { %870 = vmatpush.msrb.mxu0 %v1581_v57  ;;  %770 = vmatpush.msrb.mxu3 %v1561_v26  ;;  %v629_v9 = vld [vmem:[#allocation2 + $0x19] sm:$0xff]  ;;  %v1613_v57 = vld [vmem:[%s2482_s1 + $0x2b0] sm:$0xff] }
  0x4b   : > { %485 = vmatmul.f32.gmra.mxu2 %v421_v12  ;;  %974 = vmatpush.msrb.mxu1 %v1597_v17  ;;  %v1647_v26 = vld [vmem:[%s2482_s1 + $0x3c0] sm:$0xff]  ;;  %v1629_v12 = vld [vmem:[%s2482_s1 + $0x330] sm:$0xff]  ;;  %v1646_v17 = vld [vmem:[%s2482_s1 + $0x3b8] sm:$0xff] }
  0x4c   : > { %592 = vmatmul.f32.gmra.mxu3 %v1972_v5  ;;  %667 = vmatpush.msrb.mxu2 %v1544_v13  ;;  %v1559_v5 = vld [vmem:[%s2482_s1 + $0x100] sm:$0xff] }
  0x4d   : > { %871 = vmatpush.msrb.mxu0 %v1580_v14  ;;  %771 = vmatpush.msrb.mxu3 %v1560_v18  ;;  %v940_v13 = vld [vmem:[#allocation2 + $0x1b] sm:$0xff]  ;;  %v1612_v14 = vld [vmem:[%s2482_s1 + $0x2a8] sm:$0xff] }
  0x4e   : > { %574 = vmatmul.f32.gmra.mxu1 %v1985_v10  ;;  %668 = vmatpush.msrb.mxu2 %v1543_v19  ;;  %v626_v10 = vld [vmem:[#allocation2 + $0x1] sm:$0xff] }
  0x4f   : > { %975 = vmatpush.msrb.mxu1 %v1596_v20  ;;  %872 = vmatpush.msrb.mxu0 %v1579_v21  ;;  %v1628_v18 = vld [vmem:[%s2482_s1 + $0x328] sm:$0xff]  ;;  %v1611_v19 = vld [vmem:[%s2482_s1 + $0x2a0] sm:$0xff]  ;;  %v1662_v21 = vld [vmem:[%s2482_s1 + $0x438] sm:$0xff] }
  0x50   : > { %470 = vmatmul.f32.gmra.mxu0 %v416_v22  ;;  %772 = vmatpush.msrb.mxu3 %v1559_v5  ;;  %v734_v20 = vld [vmem:[#allocation2 + $0x22] sm:$0xff]  ;;  %v1645_v22 = vld [vmem:[%s2482_s1 + $0x3b0] sm:$0xff] }
  0x51   : > { %873 = vmatpush.msrb.mxu0 %v1578_v23  ;;  %976 = vmatpush.msrb.mxu1 %v1595_v24  ;;  %v1627_v5 = vld [vmem:[%s2482_s1 + $0x320] sm:$0xff]  ;;  %v1661_v24 = vld [vmem:[%s2482_s1 + $0x430] sm:$0xff] }
  0x52   : > { %1069 = vmatpush.msra.mxu2 %v1622_v25  ;;  %1173 = vmatpush.msra.mxu3 %v1638_v27  ;;  %v630_v23 = vld [vmem:[#allocation2 + $0x21] sm:$0xff]  ;;  %v1610_v25 = vld [vmem:[%s2482_s1 + $0x298] sm:$0xff] }
  0x53   : > { %669 = vmatmul.f32.vlgmr.msrb.gmra.mxu2 %v626_v10  ;;  %977 = vmatpush.msrb.mxu1 %v1594_v29  ;;  %v1644_v27 = vld [vmem:[%s2482_s1 + $0x3a8] sm:$0xff]  ;;  %v1626_v10 = vld [vmem:[%s2482_s1 + $0x318] sm:$0xff] }
  0x54   : > { %773 = vmatmul.f32.vlgmr.msrb.gmra.mxu3 %v730_v28  ;;  %874 = vmatpush.msrb.mxu0 %v1577_v31  ;;  %v336_v28 = vld [vmem:[%s1823_s15 + $0x50] sm:$0xff]  ;;  %v941_v29 = vld [vmem:[#allocation2 + $0x23] sm:$0xff] }
  0x55   : > { %1070 = vmatpush.msra.mxu2 %v1621_v32  ;;  %1174 = vmatpush.msra.mxu3 %v1637_v33  ;;  %v1609_v31 = vld [vmem:[%s2482_s1 + $0x290] sm:$0xff]  ;;  %350 = vst [vmem:[#allocation2 + $0x50] sm:$0xff] %v336_v28  ;;  %v1660_v32 = vld [vmem:[%s2482_s1 + $0x428] sm:$0xff]  ;;  %v1643_v33 = vld [vmem:[%s2482_s1 + $0x3a0] sm:$0xff] }
  0x56   : > { %577 = vmatmul.f32.gmra.mxu1 %v2024_v30  ;;  %875 = vmatpush.msrb.mxu0 %v1576_v34  ;;  %v1591_v30 = vld [vmem:[%s2482_s1 + $0x200] sm:$0xff]  ;;  %v1625_v34 = vld [vmem:[%s2482_s1 + $0x310] sm:$0xff] }
  0x57   : > { %978 = vmatpush.msrb.mxu1 %v1593_v35  ;;  %1071 = vmatpush.msra.mxu2 %v1620_v36  ;;  %v735_v35 = vld [vmem:[#allocation2 + $0x2a] sm:$0xff]  ;;  %v1659_v36 = vld [vmem:[%s2482_s1 + $0x420] sm:$0xff] }
  0x58   : > { %876 = vmatpush.msrb.mxu0 %v1575_v38  ;;  %1175 = vmatpush.msra.mxu3 %v1636_v39  ;;  %v1608_v38 = vld [vmem:[%s2482_s1 + $0x288] sm:$0xff]  ;;  %v1642_v39 = vld [vmem:[%s2482_s1 + $0x398] sm:$0xff] }
  0x59   : > { %979 = vmatpush.msrb.mxu1 %v1592_v41  ;;  %877 = vmatmul.f32.vlgmr.msrb.gmra.mxu0 %v731_v42  ;;  %v631_v41 = vld [vmem:[#allocation2 + $0x29] sm:$0xff] }
  0x5a   : > { %1277 = vmatpush.msra.mxu0 %v1654_v43  ;;  %1072 = vmatpush.msra.mxu2 %v1619_v44  ;;  %v1624_v43 = vld [vmem:[%s2482_s1 + $0x308] sm:$0xff]  ;;  %v1658_v44 = vld [vmem:[%s2482_s1 + $0x418] sm:$0xff] }
  0x5b   : > { %672 = vmatmul.f32.gmra.mxu2 %v627_v45  ;;  %980 = vmatpush.msrb.mxu1 %v1591_v30  ;;  %v1607_v45 = vld [vmem:[%s2482_s1 + $0x280] sm:$0xff]  ;;  %v1641_v30 = vld [vmem:[%s2482_s1 + $0x390] sm:$0xff] }
  0x5c   : > { %776 = vmatmul.f32.gmra.mxu3 %v731_v42  ;;  %1278 = vmatpush.msra.mxu0 %v1653_v40  ;;  %v942_v42 = vld [vmem:[#allocation2 + $0x2b] sm:$0xff]  ;;  %v337_v40 = vld [vmem:[%s1823_s15 + $0x58] sm:$0xff] }
  0x5d   : > { %1381 = vmatpush.msra.mxu1 %v1670_v46  ;;  %1176 = vmatpush.msra.mxu3 %v1635_v47  ;;  %v736_v46 = vld [vmem:[#allocation2 + $0x32] sm:$0xff]  ;;  %v1623_v47 = vld [vmem:[%s2482_s1 + $0x300] sm:$0xff]  ;;  %351 = vst [vmem:[#allocation2 + $0x58] sm:$0xff] %v337_v40 }
  0x5e   : > { %981 = vmatmul.f32.vlgmr.msrb.gmra.mxu1 %v938_v37  ;;  %1073 = vmatpush.msra.mxu2 %v1618_v48  ;;  %v1657_v37 = vld [vmem:[%s2482_s1 + $0x410] sm:$0xff]  ;;  %v338_v40 = vld [vmem:[%s1823_s15 + $0x60] sm:$0xff] }
  0x5f   : > { %1382 = vmatpush.msra.mxu1 %v1669_v49  ;;  %1279 = vmatpush.msra.mxu0 %v1652_v50  ;;  %v632_v48 = vld [vmem:[#allocation2 + $0x31] sm:$0xff]  ;;  %v1640_v50 = vld [vmem:[%s2482_s1 + $0x388] sm:$0xff]  ;;  %352 = vst [vmem:[#allocation2 + $0x60] sm:$0xff] %v338_v40 }
  0x60   : > { %1177 = vmatpush.msra.mxu3 %v1634_v51  ;;  %1074 = vmatpush.msra.mxu2 %v1617_v52  ;;  %v943_v49 = vld [vmem:[#allocation2 + $0x33] sm:$0xff]  ;;  %v1656_v51 = vld [vmem:[%s2482_s1 + $0x408] sm:$0xff] }
  0x61   : > { %880 = vmatmul.f32.gmra.mxu0 %v732_v53  ;;  %1383 = vmatpush.msra.mxu1 %v1668_v54  ;;  %v737_v52 = vld [vmem:[#allocation2 + $0x3a] sm:$0xff] }
  0x62   : > { %1280 = vmatpush.msra.mxu0 %v1651_v55  ;;  %1178 = vmatpush.msra.mxu3 %v1633_v58  ;;  %v1655_v54 = vld [vmem:[%s2482_s1 + $0x400] sm:$0xff] }
  0x63   : > { %675 = vmatmul.f32.gmra.mxu2 %v628_v59  ;;  %1384 = vmatpush.msra.mxu1 %v1667_v60  ;;  %v633_v55 = vld [vmem:[#allocation2 + $0x39] sm:$0xff]  ;;  %v738_v59 = vld [vmem:[#allocation2 + $0x42] sm:$0xff] }
  0x64   : > { %779 = vmatmul.f32.gmra.mxu3 %v732_v53  ;;  %1075 = vmatpush.msra.mxu2 %v1616_v61  ;;  %v1639_v53 = vld [vmem:[%s2482_s1 + $0x380] sm:$0xff] }
  0x65   : > { %1281 = vmatpush.msra.mxu0 %v1650_v62  ;;  %1179 = vmatpush.msra.mxu3 %v1632_v63  ;;  %v944_v58 = vld [vmem:[#allocation2 + $0x3b] sm:$0xff]  ;;  %v945_v61 = vld [vmem:[#allocation2 + $0x43] sm:$0xff] }
  0x66   : > { %984 = vmatmul.f32.gmra.mxu1 %v939_v0  ;;  %1076 = vmatpush.msra.mxu2 %v1615_v1  ;;  %v634_v60 = vld [vmem:[#allocation2 + $0x41] sm:$0xff]  ;;  %v739_v62 = vld [vmem:[#allocation2 + $0x4a] sm:$0xff]  ;;  %v843_v1 = vld [vmem:[#allocation2 + $0x52] sm:$0xff] }
  0x67   : > { %1385 = vmatpush.msra.mxu1 %v1666_v2  ;;  %1282 = vmatpush.msra.mxu0 %v1649_v3  ;;  %v635_v63 = vld [vmem:[#allocation2 + $0x49] sm:$0xff]  ;;  %v1146_v3 = vld [vmem:[#allocation2 + $0x14] sm:$0xff] }
  0x68   : > { %1180 = vmatpush.msra.mxu3 %v1631_v16  ;;  %1077 = vmatpush.msra.mxu2 %v1614_v4  ;;  %v946_v0 = vld [vmem:[#allocation2 + $0x4b] sm:$0xff]  ;;  %v947_v16 = vld [vmem:[#allocation2 + $0x53] sm:$0xff] }
  0x69   : > { %883 = vmatmul.f32.gmra.mxu0 %v733_v6  ;;  %1386 = vmatpush.msra.mxu1 %v1665_v56  ;;  %v1042_v2 = vld [vmem:[#allocation2 + $0xc] sm:$0xff]  ;;  %v1250_v4 = vld [vmem:[#allocation2 + $0x15] sm:$0xff]  ;;  %v2373_v56 = vld [vmem:[%s2488_s7] ss:$0 sm:$0xff] }
  0x6a   : > { %1283 = vmatpush.msra.mxu0 %v1648_v7  ;;  %1181 = vmatpush.msra.mxu3 %v1630_v8  ;;  %v1354_v7 = vld [vmem:[#allocation2 + $0x16] sm:$0xff] }
  0x6b   : > { %678 = vmatmul.f32.gmra.mxu2 %v629_v9  ;;  %1387 = vmatpush.msra.mxu1 %v1664_v11  ;;  %v2380_v9 = vld [vmem:[%s2483_s2] ss:$0 sm:$0xff] }
  0x6c   : > { %782 = vmatmul.f32.gmra.mxu3 %v733_v6  ;;  %1078 = vmatpush.msra.mxu2 %v1613_v57  ;;  %v1147_v6 = vld [vmem:[#allocation2 + $0x1c] sm:$0xff] }
  0x6d   : > { %1284 = vmatpush.msra.mxu0 %v1647_v26  ;;  %1182 = vmatpush.msra.mxu3 %v1629_v12  ;;  %v1251_v12 = vld [vmem:[#allocation2 + $0x1d] sm:$0xff] }
  0x6e   : > { %987 = vmatmul.f32.gmra.mxu1 %v940_v13  ;;  %1079 = vmatpush.msra.mxu2 %v1612_v14  ;;  %v1148_v14 = vld [vmem:[#allocation2 + $0x24] sm:$0xff] }
  0x6f   : > { %1388 = vmatpush.msra.mxu1 %v1663_v15  ;;  %1285 = vmatpush.msra.mxu0 %v1646_v17 }
  0x70   : > { %1183 = vmatpush.msra.mxu3 %v1628_v18  ;;  %1080 = vmatpush.msra.mxu2 %v1611_v19  ;;  %v1355_v18 = vld [vmem:[#allocation2 + $0x1e] sm:$0xff] }
  0x71   : > { %886 = vmatmul.f32.gmra.mxu0 %v734_v20  ;;  %1389 = vmatpush.msra.mxu1 %v1662_v21 }
  0x72   : > { %1286 = vmatpush.msra.mxu0 %v1645_v22  ;;  %1184 = vmatpush.msra.mxu3 %v1627_v5  ;;  %v1252_v5 = vld [vmem:[#allocation2 + $0x25] sm:$0xff] }
  0x73   : > { %681 = vmatmul.f32.gmra.mxu2 %v630_v23  ;;  %1390 = vmatpush.msra.mxu1 %v1661_v24 }
  0x74   : > { %785 = vmatmul.f32.gmra.mxu3 %v734_v20  ;;  %1081 = vmatpush.msra.mxu2 %v1610_v25 }
  0x75   : > { %1287 = vmatpush.msra.mxu0 %v1644_v27  ;;  %1185 = vmatpush.msra.mxu3 %v1626_v10  ;;  %v1149_v27 = vld [vmem:[#allocation2 + $0x2c] sm:$0xff] }
  0x76   : > { %990 = vmatmul.f32.gmra.mxu1 %v941_v29  ;;  %1082 = vmatpush.msra.mxu2 %v1609_v31  ;;  %v1356_v31 = vld [vmem:[#allocation2 + $0x26] sm:$0xff] }
  0x77   : > { %1391 = vmatpush.msra.mxu1 %v1660_v32  ;;  %1288 = vmatpush.msra.mxu0 %v1643_v33 }
  0x78   : > { %1186 = vmatpush.msra.mxu3 %v1625_v34  ;;  %1083 = vmatpush.msra.mxu2 %v1608_v38 }
  0x79   : > { %889 = vmatmul.f32.gmra.mxu0 %v735_v35  ;;  %1392 = vmatpush.msra.mxu1 %v1659_v36  ;;  %v1253_v36 = vld [vmem:[#allocation2 + $0x2d] sm:$0xff] }
  0x7a   : > { %1289 = vmatpush.msra.mxu0 %v1642_v39  ;;  %1187 = vmatpush.msra.mxu3 %v1624_v43 }
  0x7b   : > { %684 = vmatmul.f32.gmra.mxu2 %v631_v41  ;;  %1393 = vmatpush.msra.mxu1 %v1658_v44  ;;  %v1150_v41 = vld [vmem:[#allocation2 + $0x34] sm:$0xff] }
  0x7c   : > { %788 = vmatmul.f32.gmra.mxu3 %v735_v35  ;;  %1084 = vmatpush.msra.mxu2 %v1607_v45 }
  0x7d   : > { %1290 = vmatpush.msra.mxu0 %v1641_v30  ;;  %1188 = vmatpush.msra.mxu3 %v1623_v47  ;;  %v1357_v30 = vld [vmem:[#allocation2 + $0x2e] sm:$0xff] }
  0x7e   : > { %993 = vmatmul.f32.gmra.mxu1 %v942_v42 }
  0x7f   : > { %1394 = vmatpush.msra.mxu1 %v1657_v37  ;;  %1291 = vmatpush.msra.mxu0 %v1640_v50 }
  0x81   : > { %892 = vmatmul.f32.gmra.mxu0 %v736_v46  ;;  %1395 = vmatpush.msra.mxu1 %v1656_v51 }
  0x82   : > { %1292 = vmatpush.msra.mxu0 %v1639_v53 }
  0x83   : > { %687 = vmatmul.f32.gmra.mxu2 %v632_v48  ;;  %1396 = vmatpush.msra.mxu1 %v1655_v54 }
  0x84   : > { %791 = vmatmul.f32.gmra.mxu3 %v736_v46 }
  0x86   : > { %996 = vmatmul.f32.gmra.mxu1 %v943_v49  ;;  %v1254_v49 = vld [vmem:[#allocation2 + $0x35] sm:$0xff] }
  0x89   : > { %895 = vmatmul.f32.gmra.mxu0 %v737_v52 }
  0x8b   : > { %690 = vmatmul.f32.gmra.mxu2 %v633_v55 }
  0x8c   : > { %794 = vmatmul.f32.gmra.mxu3 %v737_v52  ;;  %v1151_v52 = vld [vmem:[#allocation2 + $0x3c] sm:$0xff] }
  0x8e   : > { %999 = vmatmul.f32.gmra.mxu1 %v944_v58  ;;  %v1358_v58 = vld [vmem:[#allocation2 + $0x36] sm:$0xff] }
  0x91   : > { %898 = vmatmul.f32.gmra.mxu0 %v738_v59 }
  0x93   : > { %693 = vmatmul.f32.gmra.mxu2 %v634_v60 }
  0x94   : > { %797 = vmatmul.f32.gmra.mxu3 %v738_v59 }
  0x96   : > { %1002 = vmatmul.f32.gmra.mxu1 %v945_v61 }
  0x99   : > { %901 = vmatmul.f32.gmra.mxu0 %v739_v62 }
  0x9b   : > { %696 = vmatmul.f32.gmra.mxu2 %v635_v63 }
  0x9c   : > { %800 = vmatmul.f32.gmra.mxu3 %v739_v62 }
  0x9e   : > { %1005 = vmatmul.f32.gmra.mxu1 %v946_v0 }
  0xa1   : > { %904 = vmatmul.f32.gmra.mxu0 %v843_v1  ;;  %v1255_v1 = vld [vmem:[#allocation2 + $0x3d] sm:$0xff] }
  0xa3   : > { %1085 = vmatmul.f32.vlgmr.msra.gmra.mxu2 %v1042_v2 }
  0xa4   : > { %1189 = vmatmul.f32.vlgmr.msra.gmra.mxu3 %v1146_v3 }
  0xa6   : > { %1008 = vmatmul.f32.gmra.mxu1 %v947_v16  ;;  %v1152_v16 = vld [vmem:[#allocation2 + $0x44] sm:$0xff] }
  0xa9   : > { %1293 = vmatmul.f32.vlgmr.msra.gmra.mxu0 %v1250_v4 }
  0xab   : > { %1088 = vmatmul.f32.gmra.mxu2 %v1146_v3  ;;  %v2375_v8 = vpop.f32.mrf.mxu0 }
  0xac   : > { %1192 = vmatmul.f32.gmra.mxu3 %v1147_v6  ;;  %v2382_v11 = vpop.f32.mrf.mxu1  ;;  %v460_v60 = vadd.f32 %v2373_v56, %v2375_v8 }
  0xae   : > { %v474_v57 = vpop.f32.mrf.mxu2  ;;  %1397 = vmatmul.f32.vlgmr.msra.gmra.mxu1 %v1354_v7  ;;  %v493_v4 = vadd.f32 %v2380_v9, %v460_v60 }
  0xaf   : > { %v581_v26 = vpop.f32.mrf.mxu3  ;;  %v475_v13 = vadd.f32 %v2373_v56, %v474_v57  ;;  %v1359_v57 = vld [vmem:[#allocation2 + $0x3e] sm:$0xff] }
  0xb1   : > { %v498_v15 = vadd.f32 %v2380_v9, %v475_v13  ;;  %1296 = vmatmul.f32.gmra.mxu0 %v1251_v12  ;;  %v596_v12 = vadd.f32 %v2382_v11, %v493_v4  ;;  %v1257_v11 = vld [vmem:[#allocation2 + $0x4d] sm:$0xff] }
  0xb3   : > { %v2386_v17 = vadd.f32 %v581_v26, %v498_v15  ;;  %1091 = vmatmul.f32.gmra.mxu2 %v1147_v6 }
  0xb4   : > { %1195 = vmatmul.f32.gmra.mxu3 %v1148_v14 }
  0xb5   : > { %v462_v19 = vpop.f32.mrf.mxu0 }
  0xb6   : > { %v477_v20 = vpop.f32.mrf.mxu2  ;;  %1400 = vmatmul.f32.gmra.mxu1 %v1355_v18  ;;  %v463_v21 = vadd.f32 %v2373_v56, %v462_v19  ;;  %v1153_v19 = vld [vmem:[#allocation2 + $0x4c] sm:$0xff] }
  0xb7   : > { %v584_v22 = vpop.f32.mrf.mxu3  ;;  %v478_v23 = vadd.f32 %v2373_v56, %v477_v20  ;;  %v569_v24 = vpop.f32.mrf.mxu1 }
  0xb8   : > { %v494_v25 = vadd.f32 %v2380_v9, %v463_v21 }
  0xb9   : > { %v499_v10 = vadd.f32 %v2380_v9, %v478_v23  ;;  %1299 = vmatmul.f32.gmra.mxu0 %v1252_v5 }
  0xba   : > { %v2392_v28 = vadd.f32 %v569_v24, %v494_v25 }
  0xbb   : > { %v2394_v29 = vadd.f32 %v584_v22, %v499_v10  ;;  %1094 = vmatmul.f32.gmra.mxu2 %v1148_v14  ;;  %v1256_v14 = vld [vmem:[#allocation2 + $0x45] sm:$0xff]  ;;  %v1154_v10 = vld [vmem:[#allocation2 + $0x54] sm:$0xff] }
  0xbc   : > { %1198 = vmatmul.f32.gmra.mxu3 %v1149_v27  ;;  %v1360_v22 = vld [vmem:[#allocation2 + $0x46] sm:$0xff] }
  0xbd   : > { %v465_v32 = vpop.f32.mrf.mxu0 }
  0xbe   : > { %v480_v33 = vpop.f32.mrf.mxu2  ;;  %1403 = vmatmul.f32.gmra.mxu1 %v1356_v31  ;;  %v466_v34 = vadd.f32 %v2373_v56, %v465_v32 }
  0xbf   : > { %v587_v35 = vpop.f32.mrf.mxu3  ;;  %v481_v38 = vadd.f32 %v2373_v56, %v480_v33 }
  0xc0   : > { %v495_v39 = vadd.f32 %v2380_v9, %v466_v34  ;;  %v1361_v34 = vld [vmem:[#allocation2 + $0x4e] sm:$0xff] }
  0xc1   : > { %v500_v42 = vadd.f32 %v2380_v9, %v481_v38  ;;  %1302 = vmatmul.f32.gmra.mxu0 %v1253_v36 }
  0xc2   : > { %v572_v43 = vpop.f32.mrf.mxu1 }
  0xc3   : > { %v2400_v44 = vadd.f32 %v587_v35, %v500_v42  ;;  %1097 = vmatmul.f32.gmra.mxu2 %v1149_v27  ;;  %v2402_v45 = vadd.f32 %v572_v43, %v495_v39  ;;  %v1258_v39 = vld [vmem:[#allocation2 + $0x55] sm:$0xff] }
  0xc4   : > { %1201 = vmatmul.f32.gmra.mxu3 %v1150_v41  ;;  %v1155_v43 = vld [vmem:[#allocation2 + $0x5c] sm:$0xff] }
  0xc5   : > { %v468_v46 = vpop.f32.mrf.mxu0 }
  0xc6   : > { %v483_v47 = vpop.f32.mrf.mxu2  ;;  %1406 = vmatmul.f32.gmra.mxu1 %v1357_v30  ;;  %v469_v37 = vadd.f32 %v2373_v56, %v468_v46  ;;  %v1362_v46 = vld [vmem:[#allocation2 + $0x56] sm:$0xff] }
  0xc7   : > { %v590_v48 = vpop.f32.mrf.mxu3  ;;  %v484_v50 = vadd.f32 %v2373_v56, %v483_v47 }
  0xc8   : > { %v496_v51 = vadd.f32 %v2380_v9, %v469_v37 }
  0xc9   : > { %v501_v53 = vadd.f32 %v2380_v9, %v484_v50  ;;  %1305 = vmatmul.f32.gmra.mxu0 %v1254_v49  ;;  %v1259_v49 = vld [vmem:[#allocation2 + $0x5d] sm:$0xff] }
  0xcb   : > { %v2409_v54 = vadd.f32 %v590_v48, %v501_v53  ;;  %1100 = vmatmul.f32.gmra.mxu2 %v1150_v41  ;;  %v575_v55 = vpop.f32.mrf.mxu1 }
  0xcc   : > { %1204 = vmatmul.f32.gmra.mxu3 %v1151_v52  ;;  %v2411_v59 = vadd.f32 %v575_v55, %v496_v51  ;;  %v1363_v55 = vld [vmem:[#allocation2 + $0x5e] sm:$0xff] }
  0xcd   : > { %v471_v61 = vpop.f32.mrf.mxu0 }
  0xce   : > { %v486_v62 = vpop.f32.mrf.mxu2  ;;  %1409 = vmatmul.f32.gmra.mxu1 %v1358_v58  ;;  %v472_v63 = vadd.f32 %v2373_v56, %v471_v61 }
  0xcf   : > { %v593_v0 = vpop.f32.mrf.mxu3  ;;  %v487_v2 = vadd.f32 %v2373_v56, %v486_v62 }
  0xd0   : > { %v497_v3 = vadd.f32 %v2380_v9, %v472_v63 }
  0xd1   : > { %v502_v6 = vadd.f32 %v2380_v9, %v487_v2  ;;  %1308 = vmatmul.f32.gmra.mxu0 %v1255_v1 }
  0xd3   : > { %v2420_v7 = vadd.f32 %v593_v0, %v502_v6  ;;  %1103 = vmatmul.f32.gmra.mxu2 %v1151_v52  ;;  %v578_v8 = vpop.f32.mrf.mxu1 }
  0xd4   : > { %1207 = vmatmul.f32.gmra.mxu3 %v1152_v16  ;;  %v600_v26 = vadd.f32 %v578_v8, %v497_v3 }
  0xd6   : > { %v670_v13 = vpop.f32.mrf.mxu2  ;;  %1412 = vmatmul.f32.gmra.mxu1 %v1359_v57  ;;  %v878_v18 = vpop.f32.mrf.mxu0 }
  0xd7   : > { %v774_v56 = vpop.f32.mrf.mxu3  ;;  %v700_v15 = vadd.f32 %v670_v13, %v596_v12 }
  0xd9   : > { %v804_v20 = vadd.f32 %v774_v56, %v700_v15  ;;  %1311 = vmatmul.f32.gmra.mxu0 %v1256_v14 }
  0xdb   : > { %v908_v9 = vadd.f32 %v878_v18, %v804_v20  ;;  %1106 = vmatmul.f32.gmra.mxu2 %v1152_v16  ;;  %v982_v21 = vpop.f32.mrf.mxu1 }
  0xdc   : > { %1210 = vmatmul.f32.gmra.mxu3 %v1153_v19 }
  0xdd   : > { %v2423_v5 = vadd.f32 %v982_v21, %v908_v9 }
  0xde   : > { %v673_v23 = vpop.f32.mrf.mxu2  ;;  %1415 = vmatmul.f32.gmra.mxu1 %v1360_v22  ;;  %v881_v27 = vpop.f32.mrf.mxu0 }
  0xdf   : > { %v777_v24 = vpop.f32.mrf.mxu3  ;;  %v701_v25 = vadd.f32 %v673_v23, %v2392_v28 }
  0xe1   : > { %v805_v31 = vadd.f32 %v777_v24, %v701_v25  ;;  %1314 = vmatmul.f32.gmra.mxu0 %v1257_v11 }
  0xe3   : > { %v909_v32 = vadd.f32 %v881_v27, %v805_v31  ;;  %1109 = vmatmul.f32.gmra.mxu2 %v1153_v19  ;;  %v985_v33 = vpop.f32.mrf.mxu1 }
  0xe4   : > { %1213 = vmatmul.f32.gmra.mxu3 %v1154_v10 }
  0xe5   : > { %v2426_v35 = vadd.f32 %v985_v33, %v909_v32 }
  0xe6   : > { %v676_v36 = vpop.f32.mrf.mxu2  ;;  %1418 = vmatmul.f32.gmra.mxu1 %v1361_v34  ;;  %v884_v42 = vpop.f32.mrf.mxu0 }
  0xe7   : > { %v780_v38 = vpop.f32.mrf.mxu3  ;;  %v702_v41 = vadd.f32 %v676_v36, %v2402_v45 }
  0xe9   : > { %v806_v28 = vadd.f32 %v780_v38, %v702_v41  ;;  %1317 = vmatmul.f32.gmra.mxu0 %v1258_v39 }
  0xeb   : > { %v910_v30 = vadd.f32 %v884_v42, %v806_v28  ;;  %1112 = vmatmul.f32.gmra.mxu2 %v1154_v10  ;;  %v988_v40 = vpop.f32.mrf.mxu1 }
  0xec   : > { %1216 = vmatmul.f32.gmra.mxu3 %v1155_v43 }
  0xed   : > { %v2429_v47 = vadd.f32 %v988_v40, %v910_v30 }
  0xee   : > { %v679_v37 = vpop.f32.mrf.mxu2  ;;  %1421 = vmatmul.f32.gmra.mxu1 %v1362_v46  ;;  %v887_v51 = vpop.f32.mrf.mxu0 }
  0xef   : > { %v783_v48 = vpop.f32.mrf.mxu3  ;;  %v703_v50 = vadd.f32 %v679_v37, %v2411_v59 }
  0xf1   : > { %v807_v52 = vadd.f32 %v783_v48, %v703_v50  ;;  %1320 = vmatmul.f32.gmra.mxu0 %v1259_v49 }
  0xf3   : > { %v911_v45 = vadd.f32 %v887_v51, %v807_v52  ;;  %v991_v53 = vpop.f32.mrf.mxu1 }
  0xf5   : > { %v2432_v58 = vadd.f32 %v991_v53, %v911_v45 }
  0xf6   : > { %v682_v60 = vpop.f32.mrf.mxu2  ;;  %1424 = vmatmul.f32.gmra.mxu1 %v1363_v55  ;;  %v890_v63 = vpop.f32.mrf.mxu0 }
  0xf7   : > { %v786_v61 = vpop.f32.mrf.mxu3  ;;  %v704_v62 = vadd.f32 %v682_v60, %v600_v26 }
  0xf9   : > { %v808_v0 = vadd.f32 %v786_v61, %v704_v62 }
  0xfb   : > { %v912_v1 = vadd.f32 %v890_v63, %v808_v0  ;;  %v994_v2 = vpop.f32.mrf.mxu1 }
  0xfd   : > { %v2434_v3 = vadd.f32 %v994_v2, %v912_v1 }
  0xfe   : > { %v685_v16 = vpop.f32.mrf.mxu2  ;;  %v893_v6 = vpop.f32.mrf.mxu0 }
  0xff   : > { %v789_v59 = vpop.f32.mrf.mxu3  ;;  %v705_v4 = vadd.f32 %v685_v16, %v2386_v17 }
 0x101   : > { %v809_v8 = vadd.f32 %v789_v59, %v705_v4 }
 0x103   : > { %v913_v57 = vadd.f32 %v893_v6, %v809_v8  ;;  %v997_v12 = vpop.f32.mrf.mxu1 }
 0x105   : > { %v2437_v13 = vadd.f32 %v997_v12, %v913_v57 }
 0x106   : > { %v688_v56 = vpop.f32.mrf.mxu2  ;;  %v896_v15 = vpop.f32.mrf.mxu0 }
 0x107   : > { %v792_v14 = vpop.f32.mrf.mxu3  ;;  %v706_v26 = vadd.f32 %v688_v56, %v2394_v29 }
 0x109   : > { %v810_v18 = vadd.f32 %v792_v14, %v706_v26 }
 0x10b   : > { %v914_v19 = vadd.f32 %v896_v15, %v810_v18  ;;  %v1000_v20 = vpop.f32.mrf.mxu1 }
 0x10d   : > { %v2440_v9 = vadd.f32 %v1000_v20, %v914_v19 }
 0x10e   : > { %v691_v21 = vpop.f32.mrf.mxu2  ;;  %v899_v23 = vpop.f32.mrf.mxu0 }
 0x10f   : > { %v795_v22 = vpop.f32.mrf.mxu3  ;;  %v707_v17 = vadd.f32 %v691_v21, %v2400_v44 }
 0x111   : > { %v811_v24 = vadd.f32 %v795_v22, %v707_v17 }
 0x113   : > { %v915_v11 = vadd.f32 %v899_v23, %v811_v24  ;;  %v1003_v25 = vpop.f32.mrf.mxu1 }
 0x115   : > { %v2443_v27 = vadd.f32 %v1003_v25, %v915_v11 }
 0x116   : > { %v694_v10 = vpop.f32.mrf.mxu2  ;;  %v902_v32 = vpop.f32.mrf.mxu0 }
 0x117   : > { %v798_v31 = vpop.f32.mrf.mxu3  ;;  %v708_v29 = vadd.f32 %v694_v10, %v2409_v54 }
 0x119   : > { %v812_v33 = vadd.f32 %v798_v31, %v708_v29 }
 0x11b   : > { %v916_v34 = vadd.f32 %v902_v32, %v812_v33  ;;  %v1006_v36 = vpop.f32.mrf.mxu1 }
 0x11d   : > { %v2446_v38 = vadd.f32 %v1006_v36, %v916_v34 }
 0x11e   : > { %v697_v39 = vpop.f32.mrf.mxu2  ;;  %v905_v42 = vpop.f32.mrf.mxu0 }
 0x11f   : > { %v801_v41 = vpop.f32.mrf.mxu3  ;;  %v709_v44 = vadd.f32 %v697_v39, %v2420_v7 }
 0x121   : > { %v813_v43 = vadd.f32 %v801_v41, %v709_v44 }
 0x123   : > { %v917_v28 = vadd.f32 %v905_v42, %v813_v43  ;;  %v1009_v30 = vpop.f32.mrf.mxu1 }
 0x125   : > { %v2449_v40 = vadd.f32 %v1009_v30, %v917_v28 }
 0x126   : > { %v1086_v46 = vpop.f32.mrf.mxu2  ;;  %v1294_v48 = vpop.f32.mrf.mxu0 }
 0x127   : > { %v1190_v37 = vpop.f32.mrf.mxu3  ;;  %v1116_v54 = vadd.f32 %v1086_v46, %v2423_v5 }
 0x129   : > { %v1220_v49 = vadd.f32 %v1190_v37, %v1116_v54 }
 0x12b   : > { %v1324_v50 = vadd.f32 %v1294_v48, %v1220_v49  ;;  %v1398_v51 = vpop.f32.mrf.mxu1 }
 0x12d   : > { %v1428_v7 = vadd.f32 %v1398_v51, %v1324_v50 }
 0x12e   : > { %v1089_v52 = vpop.f32.mrf.mxu2  ;;  %v1297_v55 = vpop.f32.mrf.mxu0 }
 0x12f   : > { %v1193_v45 = vpop.f32.mrf.mxu3  ;;  %1458 = vst [vmem:[%s2457_s24] sm:$0xff] %v1428_v7  ;;  %v1117_v53 = vadd.f32 %v1089_v52, %v2426_v35 }
 0x131   : > { %v1221_v5 = vadd.f32 %v1193_v45, %v1117_v53 }
 0x133   : > { %v1325_v60 = vadd.f32 %v1297_v55, %v1221_v5  ;;  %v1401_v61 = vpop.f32.mrf.mxu1 }
 0x135   : > { %v1429_v62 = vadd.f32 %v1401_v61, %v1325_v60 }
 0x136   : > { %v1092_v63 = vpop.f32.mrf.mxu2  ;;  %v1300_v2 = vpop.f32.mrf.mxu0 }
 0x137   : > { %v1196_v0 = vpop.f32.mrf.mxu3  ;;  %1459 = vst [vmem:[%s2457_s24 + $0x8] sm:$0xff] %v1429_v62  ;;  %v1118_v1 = vadd.f32 %v1092_v63, %v2429_v47 }
 0x139   : > { %v1222_v16 = vadd.f32 %v1196_v0, %v1118_v1 }
 0x13b   : > { %v1326_v59 = vadd.f32 %v1300_v2, %v1222_v16  ;;  %v1404_v4 = vpop.f32.mrf.mxu1 }
 0x13d   : > { %v1430_v6 = vadd.f32 %v1404_v4, %v1326_v59 }
 0x13e   : > { %v1095_v8 = vpop.f32.mrf.mxu2  ;;  %v1303_v12 = vpop.f32.mrf.mxu0 }
 0x13f   : > { %v1199_v57 = vpop.f32.mrf.mxu3  ;;  %1460 = vst [vmem:[%s2457_s24 + $0x10] sm:$0xff] %v1430_v6  ;;  %v1119_v35 = vadd.f32 %v1095_v8, %v2432_v58 }
 0x141   : > { %v1223_v56 = vadd.f32 %v1199_v57, %v1119_v35 }
 0x143   : > { %v1327_v14 = vadd.f32 %v1303_v12, %v1223_v56  ;;  %v1407_v26 = vpop.f32.mrf.mxu1 }
 0x145   : > { %v1431_v15 = vadd.f32 %v1407_v26, %v1327_v14 }
 0x146   : > { %v1098_v18 = vpop.f32.mrf.mxu2  ;;  %v1306_v20 = vpop.f32.mrf.mxu0 }
 0x147   : > { %v1202_v19 = vpop.f32.mrf.mxu3  ;;  %1461 = vst [vmem:[%s2457_s24 + $0x18] sm:$0xff] %v1431_v15  ;;  %v1120_v47 = vadd.f32 %v1098_v18, %v2434_v3 }
 0x149   : > { %v1224_v21 = vadd.f32 %v1202_v19, %v1120_v47 }
 0x14b   : > { %v1328_v22 = vadd.f32 %v1306_v20, %v1224_v21  ;;  %v1410_v17 = vpop.f32.mrf.mxu1 }
 0x14d   : > { %v1432_v23 = vadd.f32 %v1410_v17, %v1328_v22 }
 0x14e   : > { %v1101_v24 = vpop.f32.mrf.mxu2  ;;  %v1309_v25 = vpop.f32.mrf.mxu0 }
 0x14f   : > { %v1205_v11 = vpop.f32.mrf.mxu3  ;;  %1462 = vst [vmem:[%s2457_s24 + $0x20] sm:$0xff] %v1432_v23  ;;  %v1121_v58 = vadd.f32 %v1101_v24, %v2437_v13 }
 0x151   : > { %v1225_v10 = vadd.f32 %v1205_v11, %v1121_v58 }
 0x153   : > { %v1329_v31 = vadd.f32 %v1309_v25, %v1225_v10  ;;  %v1413_v29 = vpop.f32.mrf.mxu1 }
 0x155   : > { %v1433_v32 = vadd.f32 %v1413_v29, %v1329_v31 }
 0x156   : > { %v1104_v33 = vpop.f32.mrf.mxu2  ;;  %v1312_v36 = vpop.f32.mrf.mxu0 }
 0x157   : > { %v1208_v34 = vpop.f32.mrf.mxu3  ;;  %1463 = vst [vmem:[%s2457_s24 + $0x28] sm:$0xff] %v1433_v32  ;;  %v1122_v3 = vadd.f32 %v1104_v33, %v2440_v9 }
 0x159   : > { %v1226_v39 = vadd.f32 %v1208_v34, %v1122_v3 }
 0x15b   : > { %v1330_v41 = vadd.f32 %v1312_v36, %v1226_v39  ;;  %v1416_v44 = vpop.f32.mrf.mxu1 }
 0x15d   : > { %v1434_v42 = vadd.f32 %v1416_v44, %v1330_v41 }
 0x15e   : > { %v1107_v43 = vpop.f32.mrf.mxu2  ;;  %v1315_v30 = vpop.f32.mrf.mxu0 }
 0x15f   : > { %v1211_v28 = vpop.f32.mrf.mxu3  ;;  %1464 = vst [vmem:[%s2457_s24 + $0x30] sm:$0xff] %v1434_v42  ;;  %v1123_v13 = vadd.f32 %v1107_v43, %v2443_v27 }
 0x161   : > { %v1227_v46 = vadd.f32 %v1211_v28, %v1123_v13 }
 0x163   : > { %v1331_v37 = vadd.f32 %v1315_v30, %v1227_v46  ;;  %v1419_v54 = vpop.f32.mrf.mxu1 }
 0x165   : > { %v1435_v48 = vadd.f32 %v1419_v54, %v1331_v37 }
 0x166   : > { %v1110_v49 = vpop.f32.mrf.mxu2  ;;  %v1318_v51 = vpop.f32.mrf.mxu0 }
 0x167   : > { %v1214_v50 = vpop.f32.mrf.mxu3  ;;  %1465 = vst [vmem:[%s2457_s24 + $0x38] sm:$0xff] %v1435_v48  ;;  %v1124_v9 = vadd.f32 %v1110_v49, %v2446_v38 }
 0x169   : > { %v1228_v7 = vadd.f32 %v1214_v50, %v1124_v9 }
 0x16b   : > { %v1332_v52 = vadd.f32 %v1318_v51, %v1228_v7  ;;  %v1422_v45 = vpop.f32.mrf.mxu1 }
 0x16d   : > { %v1436_v53 = vadd.f32 %v1422_v45, %v1332_v52 }
 0x16e   : > { %v1113_v55 = vpop.f32.mrf.mxu2  ;;  %v1321_v60 = vpop.f32.mrf.mxu0 }
 0x16f   : > { %v1217_v5 = vpop.f32.mrf.mxu3  ;;  %1466 = vst [vmem:[%s2457_s24 + $0x40] sm:$0xff] %v1436_v53  ;;  %v1125_v27 = vadd.f32 %v1113_v55, %v2449_v40 }
 0x171   : > { %v1229_v61 = vadd.f32 %v1217_v5, %v1125_v27 }
 0x173   : > { %v1333_v62 = vadd.f32 %v1321_v60, %v1229_v61  ;;  %v1425_v63 = vpop.f32.mrf.mxu1 }
 0x175   : > { %v1437_v0 = vadd.f32 %v1425_v63, %v1333_v62 }
 0x177   : > { %1467 = vst [vmem:[%s2457_s24 + $0x48] sm:$0xff] %v1437_v0 }
 0x178 PF: > { %s18_s27 = sadd.s32 1, %s1725_s27  }
 0x179   : > { %p15_p4 = scmp.ge.s32.totalorder %s18_s27, 4  }
 0x17b   :  { %17 = sbr.rel (!%p15_p4) target bundleno = 1 (0x1), region = 93 }

</bundles_post_ra>
